<compile_context>
chip_gen: v5e
topology: v5e:2x2
jax: 0.10.0
libtpu: 0.0.40
codegen_flags: <defaults>
</compile_context>

<pallas_src>
import math

import jax
import jax.numpy as jnp
from jax.experimental import pallas as pl
from jax.experimental.pallas import tpu as pltpu

_OUT_LANES = 128  # lane-dense output width (unmasked vst)


def _round_up(x, m):
    return (x + m - 1) // m * m


def _ta_distmult_kernel(h_ref, t_ref, seq_ref, wih_ref, whh_ref, b_ref, out_ref):
    TB, D = h_ref.shape
    L = seq_ref.shape[0]

    wih = wih_ref[...]          # (D, 4D), resident in VMEM across the grid
    whh = whh_ref[...]          # (D, 4D)
    bias = b_ref[...]           # (1, 4D) == b_ih + b_hh

    h = jnp.zeros((TB, D), jnp.float32)
    c = jnp.zeros((TB, D), jnp.float32)

    # L is small and static -> full unroll (gives the scheduler visibility).
    for step in range(L):
        x_t = seq_ref[step]                                   # (TB, D)
        gates = (jnp.dot(x_t, wih, preferred_element_type=jnp.float32)
                 + jnp.dot(h, whh, preferred_element_type=jnp.float32)
                 + bias)                                       # (TB, 4D)
        i_g = jax.nn.sigmoid(gates[:, 0:D])
        f_g = jax.nn.sigmoid(gates[:, D:2 * D])
        g_g = jnp.tanh(gates[:, 2 * D:3 * D])
        o_g = jax.nn.sigmoid(gates[:, 3 * D:4 * D])
        c = f_g * c + i_g * g_g
        h = o_g * jnp.tanh(c)

    ht = h_ref[...] * t_ref[...]                               # reuse partial product
    score = jnp.sum(ht * h, axis=-1, keepdims=True)            # (TB, 1)
    out_ref[...] = jnp.broadcast_to(score, out_ref.shape)      # lane-dense store


def ta_distmult_forward(samples, ent_emb, rel_emb, tem_emb,
                        lstm_w_ih, lstm_w_hh, lstm_b_ih, lstm_b_hh, *, tb=256):
    """TA-DistMult forward: samples (B, 3+tem_len) int32 -> (scores (B,), factors dict)."""
    samples = samples.astype(jnp.int32)
    B = samples.shape[0]
    D = ent_emb.shape[1]
    assert D % 128 == 0, "embedding dim must be a multiple of 128 (lane axis)"
    assert tb % 8 == 0

    # --- glue (XLA): embedding gathers + relation/temporal token sequence ---
    h_e = ent_emb[samples[:, 0]].astype(jnp.float32)           # (B, D)
    t_e = ent_emb[samples[:, 2]].astype(jnp.float32)           # (B, D)
    r_e = rel_emb[samples[:, 1]].astype(jnp.float32)           # (B, D)
    tok_e = tem_emb[samples[:, 3:].T].astype(jnp.float32)      # (tem_len, B, D)
    seq_e = jnp.concatenate([r_e[None], tok_e], axis=0)        # (L, B, D)
    L = seq_e.shape[0]

    # LSTM parameters laid out for in-kernel x @ W form.
    w_ih_t = lstm_w_ih.T.astype(jnp.float32)                   # (D, 4D)
    w_hh_t = lstm_w_hh.T.astype(jnp.float32)                   # (D, 4D)
    bias = (lstm_b_ih + lstm_b_hh).astype(jnp.float32)[None, :]  # (1, 4D)

    # --- tiling over the batch ---
    TB = min(tb, _round_up(B, 8))
    padded_B = _round_up(B, TB)
    pad = padded_B - B
    if pad:
        h_e = jnp.pad(h_e, ((0, pad), (0, 0)))
        t_e = jnp.pad(t_e, ((0, pad), (0, 0)))
        seq_e = jnp.pad(seq_e, ((0, 0), (0, pad), (0, 0)))
    grid = (padded_B // TB,)

    flops = int(padded_B * L * 16 * D * D + padded_B * (L * 10 * D + 4 * D))
    transcendentals = int(padded_B * L * 5 * D)
    bytes_accessed = int(4 * (2 * padded_B * D + L * padded_B * D
                              + 8 * D * D + 4 * D + padded_B * _OUT_LANES))

    out = pl.pallas_call(
        _ta_distmult_kernel,
        out_shape=jax.ShapeDtypeStruct((padded_B, _OUT_LANES), jnp.float32),
        grid_spec=pltpu.PrefetchScalarGridSpec(
            num_scalar_prefetch=0,
            grid=grid,
            in_specs=[
                pl.BlockSpec((TB, D), lambda i: (i, 0)),        # h_e tile
                pl.BlockSpec((TB, D), lambda i: (i, 0)),        # t_e tile
                pl.BlockSpec((L, TB, D), lambda i: (0, i, 0)),  # seq tile (full L)
                pl.BlockSpec((D, 4 * D), lambda i: (0, 0)),     # W_ih^T (resident)
                pl.BlockSpec((D, 4 * D), lambda i: (0, 0)),     # W_hh^T (resident)
                pl.BlockSpec((1, 4 * D), lambda i: (0, 0)),     # bias   (resident)
            ],
            out_specs=pl.BlockSpec((TB, _OUT_LANES), lambda i: (i, 0)),
        ),
        compiler_params=pltpu.CompilerParams(
            dimension_semantics=("parallel",)),
        cost_estimate=pl.CostEstimate(
            flops=flops, transcendentals=transcendentals,
            bytes_accessed=bytes_accessed),
    )(h_e, t_e, seq_e, w_ih_t, w_hh_t, bias)

    scores = out[:B, 0]
    # Matches PyTorch: factors = {'norm': (ent.weight, rel.weight, tem.weight)}
    factors = {'norm': (ent_emb, rel_emb, tem_emb)}
    return scores, factors


def _ref_forward(samples, ent_emb, rel_emb, tem_emb, w_ih, w_hh, b_ih, b_hh):
    """Plain-JAX reference of the same forward (PyTorch LSTM semantics, eval mode)."""
    h_e = ent_emb[samples[:, 0]]
    t_e = ent_emb[samples[:, 2]]
    r_e = rel_emb[samples[:, 1]]
    tok_e = tem_emb[samples[:, 3:]]                            # (B, tem_len, D)
    seq = jnp.concatenate([r_e[:, None, :], tok_e], axis=1)    # (B, L, D)
    B, L, D = seq.shape
    h = jnp.zeros((B, D), jnp.float32)
    c = jnp.zeros((B, D), jnp.float32)
    for t in range(L):
        g = seq[:, t, :] @ w_ih.T + b_ih + h @ w_hh.T + b_hh
        i_g = jax.nn.sigmoid(g[:, :D])
        f_g = jax.nn.sigmoid(g[:, D:2 * D])
        g_g = jnp.tanh(g[:, 2 * D:3 * D])
        o_g = jax.nn.sigmoid(g[:, 3 * D:4 * D])
        c = f_g * c + i_g * g_g
        h = o_g * jnp.tanh(c)
    return jnp.sum(h_e * t_e * h, axis=-1)


if __name__ == "__main__":
    num_entities, num_relations, num_tem = 32, 8, 32
    D = 128          # emb_dim (lane axis)
    B = 20           # batch (exercises last-tile padding: 20 -> 24 with TB=8)
    tem_len = 7      # temporal token sequence length -> LSTM length L = 8

    key = jax.random.PRNGKey(0)
    ks = jax.random.split(key, 10)

    ent_emb = (0.5 * jax.random.normal(ks[0], (num_entities, D))).astype(jnp.float32)
    rel_emb = (0.5 * jax.random.normal(ks[1], (num_relations, D))).astype(jnp.float32)
    tem_emb = (0.5 * jax.random.normal(ks[2], (num_tem, D))).astype(jnp.float32)

    bound = 1.0 / math.sqrt(D)
    w_ih = jax.random.uniform(ks[3], (4 * D, D), minval=-bound, maxval=bound, dtype=jnp.float32)
    w_hh = jax.random.uniform(ks[4], (4 * D, D), minval=-bound, maxval=bound, dtype=jnp.float32)
    b_ih = jax.random.uniform(ks[5], (4 * D,), minval=-bound, maxval=bound, dtype=jnp.float32)
    b_hh = jax.random.uniform(ks[6], (4 * D,), minval=-bound, maxval=bound, dtype=jnp.float32)

    samples = jnp.concatenate([
        jax.random.randint(ks[7], (B, 1), 0, num_entities),
        jax.random.randint(ks[8], (B, 1), 0, num_relations),
        jax.random.randint(ks[9], (B, 1), 0, num_entities),
        jax.random.randint(jax.random.fold_in(key, 42), (B, tem_len), 0, num_tem),
    ], axis=1).astype(jnp.int32)

    scores, factors = ta_distmult_forward(
        samples, ent_emb, rel_emb, tem_emb, w_ih, w_hh, b_ih, b_hh, tb=8)
    jax.block_until_ready(scores)

    ref_scores = _ref_forward(samples, ent_emb, rel_emb, tem_emb, w_ih, w_hh, b_ih, b_hh)

    assert scores.shape == (B,)
    assert factors['norm'][0].shape == ent_emb.shape
    assert factors['norm'][1].shape == rel_emb.shape
    assert factors['norm'][2].shape == tem_emb.shape
    max_err = float(jnp.max(jnp.abs(scores - ref_scores)))
    assert jnp.allclose(scores, ref_scores, atol=1e-4, rtol=1e-4), max_err
    print("KERNEL_OK")
</pallas_src>

<mosaic_0001>
module attributes {stable_mosaic.version = 11 : i64} {
  func.func @_ta_distmult_kernel(%arg0: i32, %arg1: memref<8x128xf32, #tpu.memory_space<vmem>>, %arg2: memref<8x128xf32, #tpu.memory_space<vmem>>, %arg3: memref<8x8x128xf32, #tpu.memory_space<vmem>>, %arg4: memref<128x512xf32, #tpu.memory_space<vmem>>, %arg5: memref<128x512xf32, #tpu.memory_space<vmem>>, %arg6: memref<1x512xf32, #tpu.memory_space<vmem>>, %arg7: memref<8x128xf32, #tpu.memory_space<vmem>>) attributes {dimension_semantics = [#tpu.dimension_semantics<parallel>], iteration_bounds = array<i64: 3>, scalar_prefetch = 0 : i64, scratch_operands = 0 : i64, tpu.core_type = #tpu.core_type<tc>, window_params = [{transform_indices = @transform_0, window_bounds = array<i64: 8, 128>}, {transform_indices = @transform_1, window_bounds = array<i64: 8, 128>}, {transform_indices = @transform_2, window_bounds = array<i64: 8, 8, 128>}, {pipeline_mode = #tpu.pipeline_mode<synchronous>, transform_indices = @transform_3, window_bounds = array<i64: 128, 512>}, {pipeline_mode = #tpu.pipeline_mode<synchronous>, transform_indices = @transform_4, window_bounds = array<i64: 128, 512>}, {pipeline_mode = #tpu.pipeline_mode<synchronous>, transform_indices = @transform_5, window_bounds = array<i64: 1, 512>}, {transform_indices = @transform_6, window_bounds = array<i64: 8, 128>}]} {
    %c0 = arith.constant 0 : index
    %c0_0 = arith.constant 0 : index
    %0 = vector.load %arg4[%c0, %c0_0] : memref<128x512xf32, #tpu.memory_space<vmem>>, vector<128x512xf32>
    %c0_1 = arith.constant 0 : index
    %c0_2 = arith.constant 0 : index
    %1 = vector.load %arg5[%c0_1, %c0_2] : memref<128x512xf32, #tpu.memory_space<vmem>>, vector<128x512xf32>
    %c0_3 = arith.constant 0 : index
    %c0_4 = arith.constant 0 : index
    %2 = vector.load %arg6[%c0_3, %c0_4] : memref<1x512xf32, #tpu.memory_space<vmem>>, vector<1x512xf32>
    %cst = arith.constant 0.000000e+00 : f32
    %3 = vector.broadcast %cst : f32 to vector<8x128xf32>
    %cst_5 = arith.constant 0.000000e+00 : f32
    %4 = vector.broadcast %cst_5 : f32 to vector<8x128xf32>
    %c0_6 = arith.constant 0 : index
    %c0_7 = arith.constant 0 : index
    %c0_8 = arith.constant 0 : index
    %5 = vector.load %arg3[%c0_6, %c0_7, %c0_8] : memref<8x8x128xf32, #tpu.memory_space<vmem>>, vector<1x8x128xf32>
    %6 = vector.shape_cast %5 : vector<1x8x128xf32> to vector<8x128xf32>
    %cst_9 = arith.constant dense<0.000000e+00> : vector<8x512xf32>
    %7 = tpu.matmul %6, %0, %cst_9 {dimension_numbers = #tpu.dot_dimension_numbers<[1], [0], [0], [1], [0, 0, 1, 1], [], []>} : vector<8x128xf32>, vector<128x512xf32>, vector<8x512xf32> -> vector<8x512xf32>
    %cst_10 = arith.constant dense<0.000000e+00> : vector<8x512xf32>
    %8 = tpu.matmul %3, %1, %cst_10 {dimension_numbers = #tpu.dot_dimension_numbers<[1], [0], [0], [1], [0, 0, 1, 1], [], []>} : vector<8x128xf32>, vector<128x512xf32>, vector<8x512xf32> -> vector<8x512xf32>
    %9 = arith.addf %7, %8 : vector<8x512xf32>
    %10 = vector.broadcast %2 : vector<1x512xf32> to vector<8x512xf32>
    %11 = arith.addf %9, %10 : vector<8x512xf32>
    %12 = vector.extract_strided_slice %11 {offsets = [0, 0], sizes = [8, 128], strides = [1, 1]} : vector<8x512xf32> to vector<8x128xf32>
    %13 = arith.negf %12 : vector<8x128xf32>
    %14 = math.exp %13 : vector<8x128xf32>
    %cst_11 = arith.constant 1.000000e+00 : f32
    %15 = vector.broadcast %cst_11 : f32 to vector<8x128xf32>
    %16 = arith.addf %15, %14 : vector<8x128xf32>
    %17 = arith.divf %15, %16 : vector<8x128xf32>
    %18 = vector.extract_strided_slice %11 {offsets = [0, 128], sizes = [8, 128], strides = [1, 1]} : vector<8x512xf32> to vector<8x128xf32>
    %19 = arith.negf %18 : vector<8x128xf32>
    %20 = math.exp %19 : vector<8x128xf32>
    %cst_12 = arith.constant 1.000000e+00 : f32
    %21 = vector.broadcast %cst_12 : f32 to vector<8x128xf32>
    %22 = arith.addf %21, %20 : vector<8x128xf32>
    %23 = arith.divf %21, %22 : vector<8x128xf32>
    %24 = vector.extract_strided_slice %11 {offsets = [0, 256], sizes = [8, 128], strides = [1, 1]} : vector<8x512xf32> to vector<8x128xf32>
    %25 = math.tanh %24 : vector<8x128xf32>
    %26 = vector.extract_strided_slice %11 {offsets = [0, 384], sizes = [8, 128], strides = [1, 1]} : vector<8x512xf32> to vector<8x128xf32>
    %27 = arith.negf %26 : vector<8x128xf32>
    %28 = math.exp %27 : vector<8x128xf32>
    %cst_13 = arith.constant 1.000000e+00 : f32
    %29 = vector.broadcast %cst_13 : f32 to vector<8x128xf32>
    %30 = arith.addf %29, %28 : vector<8x128xf32>
    %31 = arith.divf %29, %30 : vector<8x128xf32>
    %32 = arith.mulf %23, %4 : vector<8x128xf32>
    %33 = arith.mulf %17, %25 : vector<8x128xf32>
    %34 = arith.addf %32, %33 : vector<8x128xf32>
    %35 = math.tanh %34 : vector<8x128xf32>
    %36 = arith.mulf %31, %35 : vector<8x128xf32>
    %c1 = arith.constant 1 : index
    %c0_14 = arith.constant 0 : index
    %c0_15 = arith.constant 0 : index
    %37 = vector.load %arg3[%c1, %c0_14, %c0_15] : memref<8x8x128xf32, #tpu.memory_space<vmem>>, vector<1x8x128xf32>
    %38 = vector.shape_cast %37 : vector<1x8x128xf32> to vector<8x128xf32>
    %cst_16 = arith.constant dense<0.000000e+00> : vector<8x512xf32>
    %39 = tpu.matmul %38, %0, %cst_16 {dimension_numbers = #tpu.dot_dimension_numbers<[1], [0], [0], [1], [0, 0, 1, 1], [], []>} : vector<8x128xf32>, vector<128x512xf32>, vector<8x512xf32> -> vector<8x512xf32>
    %cst_17 = arith.constant dense<0.000000e+00> : vector<8x512xf32>
    %40 = tpu.matmul %36, %1, %cst_17 {dimension_numbers = #tpu.dot_dimension_numbers<[1], [0], [0], [1], [0, 0, 1, 1], [], []>} : vector<8x128xf32>, vector<128x512xf32>, vector<8x512xf32> -> vector<8x512xf32>
    %41 = arith.addf %39, %40 : vector<8x512xf32>
    %42 = vector.broadcast %2 : vector<1x512xf32> to vector<8x512xf32>
    %43 = arith.addf %41, %42 : vector<8x512xf32>
    %44 = vector.extract_strided_slice %43 {offsets = [0, 0], sizes = [8, 128], strides = [1, 1]} : vector<8x512xf32> to vector<8x128xf32>
    %45 = arith.negf %44 : vector<8x128xf32>
    %46 = math.exp %45 : vector<8x128xf32>
    %cst_18 = arith.constant 1.000000e+00 : f32
    %47 = vector.broadcast %cst_18 : f32 to vector<8x128xf32>
    %48 = arith.addf %47, %46 : vector<8x128xf32>
    %49 = arith.divf %47, %48 : vector<8x128xf32>
    %50 = vector.extract_strided_slice %43 {offsets = [0, 128], sizes = [8, 128], strides = [1, 1]} : vector<8x512xf32> to vector<8x128xf32>
    %51 = arith.negf %50 : vector<8x128xf32>
    %52 = math.exp %51 : vector<8x128xf32>
    %cst_19 = arith.constant 1.000000e+00 : f32
    %53 = vector.broadcast %cst_19 : f32 to vector<8x128xf32>
    %54 = arith.addf %53, %52 : vector<8x128xf32>
    %55 = arith.divf %53, %54 : vector<8x128xf32>
    %56 = vector.extract_strided_slice %43 {offsets = [0, 256], sizes = [8, 128], strides = [1, 1]} : vector<8x512xf32> to vector<8x128xf32>
    %57 = math.tanh %56 : vector<8x128xf32>
    %58 = vector.extract_strided_slice %43 {offsets = [0, 384], sizes = [8, 128], strides = [1, 1]} : vector<8x512xf32> to vector<8x128xf32>
    %59 = arith.negf %58 : vector<8x128xf32>
    %60 = math.exp %59 : vector<8x128xf32>
    %cst_20 = arith.constant 1.000000e+00 : f32
    %61 = vector.broadcast %cst_20 : f32 to vector<8x128xf32>
    %62 = arith.addf %61, %60 : vector<8x128xf32>
    %63 = arith.divf %61, %62 : vector<8x128xf32>
    %64 = arith.mulf %55, %34 : vector<8x128xf32>
    %65 = arith.mulf %49, %57 : vector<8x128xf32>
    %66 = arith.addf %64, %65 : vector<8x128xf32>
    %67 = math.tanh %66 : vector<8x128xf32>
    %68 = arith.mulf %63, %67 : vector<8x128xf32>
    %c2 = arith.constant 2 : index
    %c0_21 = arith.constant 0 : index
    %c0_22 = arith.constant 0 : index
    %69 = vector.load %arg3[%c2, %c0_21, %c0_22] : memref<8x8x128xf32, #tpu.memory_space<vmem>>, vector<1x8x128xf32>
    %70 = vector.shape_cast %69 : vector<1x8x128xf32> to vector<8x128xf32>
    %cst_23 = arith.constant dense<0.000000e+00> : vector<8x512xf32>
    %71 = tpu.matmul %70, %0, %cst_23 {dimension_numbers = #tpu.dot_dimension_numbers<[1], [0], [0], [1], [0, 0, 1, 1], [], []>} : vector<8x128xf32>, vector<128x512xf32>, vector<8x512xf32> -> vector<8x512xf32>
    %cst_24 = arith.constant dense<0.000000e+00> : vector<8x512xf32>
    %72 = tpu.matmul %68, %1, %cst_24 {dimension_numbers = #tpu.dot_dimension_numbers<[1], [0], [0], [1], [0, 0, 1, 1], [], []>} : vector<8x128xf32>, vector<128x512xf32>, vector<8x512xf32> -> vector<8x512xf32>
    %73 = arith.addf %71, %72 : vector<8x512xf32>
    %74 = vector.broadcast %2 : vector<1x512xf32> to vector<8x512xf32>
    %75 = arith.addf %73, %74 : vector<8x512xf32>
    %76 = vector.extract_strided_slice %75 {offsets = [0, 0], sizes = [8, 128], strides = [1, 1]} : vector<8x512xf32> to vector<8x128xf32>
    %77 = arith.negf %76 : vector<8x128xf32>
    %78 = math.exp %77 : vector<8x128xf32>
    %cst_25 = arith.constant 1.000000e+00 : f32
    %79 = vector.broadcast %cst_25 : f32 to vector<8x128xf32>
    %80 = arith.addf %79, %78 : vector<8x128xf32>
    %81 = arith.divf %79, %80 : vector<8x128xf32>
    %82 = vector.extract_strided_slice %75 {offsets = [0, 128], sizes = [8, 128], strides = [1, 1]} : vector<8x512xf32> to vector<8x128xf32>
    %83 = arith.negf %82 : vector<8x128xf32>
    %84 = math.exp %83 : vector<8x128xf32>
    %cst_26 = arith.constant 1.000000e+00 : f32
    %85 = vector.broadcast %cst_26 : f32 to vector<8x128xf32>
    %86 = arith.addf %85, %84 : vector<8x128xf32>
    %87 = arith.divf %85, %86 : vector<8x128xf32>
    %88 = vector.extract_strided_slice %75 {offsets = [0, 256], sizes = [8, 128], strides = [1, 1]} : vector<8x512xf32> to vector<8x128xf32>
    %89 = math.tanh %88 : vector<8x128xf32>
    %90 = vector.extract_strided_slice %75 {offsets = [0, 384], sizes = [8, 128], strides = [1, 1]} : vector<8x512xf32> to vector<8x128xf32>
    %91 = arith.negf %90 : vector<8x128xf32>
    %92 = math.exp %91 : vector<8x128xf32>
    %cst_27 = arith.constant 1.000000e+00 : f32
    %93 = vector.broadcast %cst_27 : f32 to vector<8x128xf32>
    %94 = arith.addf %93, %92 : vector<8x128xf32>
    %95 = arith.divf %93, %94 : vector<8x128xf32>
    %96 = arith.mulf %87, %66 : vector<8x128xf32>
    %97 = arith.mulf %81, %89 : vector<8x128xf32>
    %98 = arith.addf %96, %97 : vector<8x128xf32>
    %99 = math.tanh %98 : vector<8x128xf32>
    %100 = arith.mulf %95, %99 : vector<8x128xf32>
    %c3 = arith.constant 3 : index
    %c0_28 = arith.constant 0 : index
    %c0_29 = arith.constant 0 : index
    %101 = vector.load %arg3[%c3, %c0_28, %c0_29] : memref<8x8x128xf32, #tpu.memory_space<vmem>>, vector<1x8x128xf32>
    %102 = vector.shape_cast %101 : vector<1x8x128xf32> to vector<8x128xf32>
    %cst_30 = arith.constant dense<0.000000e+00> : vector<8x512xf32>
    %103 = tpu.matmul %102, %0, %cst_30 {dimension_numbers = #tpu.dot_dimension_numbers<[1], [0], [0], [1], [0, 0, 1, 1], [], []>} : vector<8x128xf32>, vector<128x512xf32>, vector<8x512xf32> -> vector<8x512xf32>
    %cst_31 = arith.constant dense<0.000000e+00> : vector<8x512xf32>
    %104 = tpu.matmul %100, %1, %cst_31 {dimension_numbers = #tpu.dot_dimension_numbers<[1], [0], [0], [1], [0, 0, 1, 1], [], []>} : vector<8x128xf32>, vector<128x512xf32>, vector<8x512xf32> -> vector<8x512xf32>
    %105 = arith.addf %103, %104 : vector<8x512xf32>
    %106 = vector.broadcast %2 : vector<1x512xf32> to vector<8x512xf32>
    %107 = arith.addf %105, %106 : vector<8x512xf32>
    %108 = vector.extract_strided_slice %107 {offsets = [0, 0], sizes = [8, 128], strides = [1, 1]} : vector<8x512xf32> to vector<8x128xf32>
    %109 = arith.negf %108 : vector<8x128xf32>
    %110 = math.exp %109 : vector<8x128xf32>
    %cst_32 = arith.constant 1.000000e+00 : f32
    %111 = vector.broadcast %cst_32 : f32 to vector<8x128xf32>
    %112 = arith.addf %111, %110 : vector<8x128xf32>
    %113 = arith.divf %111, %112 : vector<8x128xf32>
    %114 = vector.extract_strided_slice %107 {offsets = [0, 128], sizes = [8, 128], strides = [1, 1]} : vector<8x512xf32> to vector<8x128xf32>
    %115 = arith.negf %114 : vector<8x128xf32>
    %116 = math.exp %115 : vector<8x128xf32>
    %cst_33 = arith.constant 1.000000e+00 : f32
    %117 = vector.broadcast %cst_33 : f32 to vector<8x128xf32>
    %118 = arith.addf %117, %116 : vector<8x128xf32>
    %119 = arith.divf %117, %118 : vector<8x128xf32>
    %120 = vector.extract_strided_slice %107 {offsets = [0, 256], sizes = [8, 128], strides = [1, 1]} : vector<8x512xf32> to vector<8x128xf32>
    %121 = math.tanh %120 : vector<8x128xf32>
    %122 = vector.extract_strided_slice %107 {offsets = [0, 384], sizes = [8, 128], strides = [1, 1]} : vector<8x512xf32> to vector<8x128xf32>
    %123 = arith.negf %122 : vector<8x128xf32>
    %124 = math.exp %123 : vector<8x128xf32>
    %cst_34 = arith.constant 1.000000e+00 : f32
    %125 = vector.broadcast %cst_34 : f32 to vector<8x128xf32>
    %126 = arith.addf %125, %124 : vector<8x128xf32>
    %127 = arith.divf %125, %126 : vector<8x128xf32>
    %128 = arith.mulf %119, %98 : vector<8x128xf32>
    %129 = arith.mulf %113, %121 : vector<8x128xf32>
    %130 = arith.addf %128, %129 : vector<8x128xf32>
    %131 = math.tanh %130 : vector<8x128xf32>
    %132 = arith.mulf %127, %131 : vector<8x128xf32>
    %c4 = arith.constant 4 : index
    %c0_35 = arith.constant 0 : index
    %c0_36 = arith.constant 0 : index
    %133 = vector.load %arg3[%c4, %c0_35, %c0_36] : memref<8x8x128xf32, #tpu.memory_space<vmem>>, vector<1x8x128xf32>
    %134 = vector.shape_cast %133 : vector<1x8x128xf32> to vector<8x128xf32>
    %cst_37 = arith.constant dense<0.000000e+00> : vector<8x512xf32>
    %135 = tpu.matmul %134, %0, %cst_37 {dimension_numbers = #tpu.dot_dimension_numbers<[1], [0], [0], [1], [0, 0, 1, 1], [], []>} : vector<8x128xf32>, vector<128x512xf32>, vector<8x512xf32> -> vector<8x512xf32>
    %cst_38 = arith.constant dense<0.000000e+00> : vector<8x512xf32>
    %136 = tpu.matmul %132, %1, %cst_38 {dimension_numbers = #tpu.dot_dimension_numbers<[1], [0], [0], [1], [0, 0, 1, 1], [], []>} : vector<8x128xf32>, vector<128x512xf32>, vector<8x512xf32> -> vector<8x512xf32>
    %137 = arith.addf %135, %136 : vector<8x512xf32>
    %138 = vector.broadcast %2 : vector<1x512xf32> to vector<8x512xf32>
    %139 = arith.addf %137, %138 : vector<8x512xf32>
    %140 = vector.extract_strided_slice %139 {offsets = [0, 0], sizes = [8, 128], strides = [1, 1]} : vector<8x512xf32> to vector<8x128xf32>
    %141 = arith.negf %140 : vector<8x128xf32>
    %142 = math.exp %141 : vector<8x128xf32>
    %cst_39 = arith.constant 1.000000e+00 : f32
    %143 = vector.broadcast %cst_39 : f32 to vector<8x128xf32>
    %144 = arith.addf %143, %142 : vector<8x128xf32>
    %145 = arith.divf %143, %144 : vector<8x128xf32>
    %146 = vector.extract_strided_slice %139 {offsets = [0, 128], sizes = [8, 128], strides = [1, 1]} : vector<8x512xf32> to vector<8x128xf32>
    %147 = arith.negf %146 : vector<8x128xf32>
    %148 = math.exp %147 : vector<8x128xf32>
    %cst_40 = arith.constant 1.000000e+00 : f32
    %149 = vector.broadcast %cst_40 : f32 to vector<8x128xf32>
    %150 = arith.addf %149, %148 : vector<8x128xf32>
    %151 = arith.divf %149, %150 : vector<8x128xf32>
    %152 = vector.extract_strided_slice %139 {offsets = [0, 256], sizes = [8, 128], strides = [1, 1]} : vector<8x512xf32> to vector<8x128xf32>
    %153 = math.tanh %152 : vector<8x128xf32>
    %154 = vector.extract_strided_slice %139 {offsets = [0, 384], sizes = [8, 128], strides = [1, 1]} : vector<8x512xf32> to vector<8x128xf32>
    %155 = arith.negf %154 : vector<8x128xf32>
    %156 = math.exp %155 : vector<8x128xf32>
    %cst_41 = arith.constant 1.000000e+00 : f32
    %157 = vector.broadcast %cst_41 : f32 to vector<8x128xf32>
    %158 = arith.addf %157, %156 : vector<8x128xf32>
    %159 = arith.divf %157, %158 : vector<8x128xf32>
    %160 = arith.mulf %151, %130 : vector<8x128xf32>
    %161 = arith.mulf %145, %153 : vector<8x128xf32>
    %162 = arith.addf %160, %161 : vector<8x128xf32>
    %163 = math.tanh %162 : vector<8x128xf32>
    %164 = arith.mulf %159, %163 : vector<8x128xf32>
    %c5 = arith.constant 5 : index
    %c0_42 = arith.constant 0 : index
    %c0_43 = arith.constant 0 : index
    %165 = vector.load %arg3[%c5, %c0_42, %c0_43] : memref<8x8x128xf32, #tpu.memory_space<vmem>>, vector<1x8x128xf32>
    %166 = vector.shape_cast %165 : vector<1x8x128xf32> to vector<8x128xf32>
    %cst_44 = arith.constant dense<0.000000e+00> : vector<8x512xf32>
    %167 = tpu.matmul %166, %0, %cst_44 {dimension_numbers = #tpu.dot_dimension_numbers<[1], [0], [0], [1], [0, 0, 1, 1], [], []>} : vector<8x128xf32>, vector<128x512xf32>, vector<8x512xf32> -> vector<8x512xf32>
    %cst_45 = arith.constant dense<0.000000e+00> : vector<8x512xf32>
    %168 = tpu.matmul %164, %1, %cst_45 {dimension_numbers = #tpu.dot_dimension_numbers<[1], [0], [0], [1], [0, 0, 1, 1], [], []>} : vector<8x128xf32>, vector<128x512xf32>, vector<8x512xf32> -> vector<8x512xf32>
    %169 = arith.addf %167, %168 : vector<8x512xf32>
    %170 = vector.broadcast %2 : vector<1x512xf32> to vector<8x512xf32>
    %171 = arith.addf %169, %170 : vector<8x512xf32>
    %172 = vector.extract_strided_slice %171 {offsets = [0, 0], sizes = [8, 128], strides = [1, 1]} : vector<8x512xf32> to vector<8x128xf32>
    %173 = arith.negf %172 : vector<8x128xf32>
    %174 = math.exp %173 : vector<8x128xf32>
    %cst_46 = arith.constant 1.000000e+00 : f32
    %175 = vector.broadcast %cst_46 : f32 to vector<8x128xf32>
    %176 = arith.addf %175, %174 : vector<8x128xf32>
    %177 = arith.divf %175, %176 : vector<8x128xf32>
    %178 = vector.extract_strided_slice %171 {offsets = [0, 128], sizes = [8, 128], strides = [1, 1]} : vector<8x512xf32> to vector<8x128xf32>
    %179 = arith.negf %178 : vector<8x128xf32>
    %180 = math.exp %179 : vector<8x128xf32>
    %cst_47 = arith.constant 1.000000e+00 : f32
    %181 = vector.broadcast %cst_47 : f32 to vector<8x128xf32>
    %182 = arith.addf %181, %180 : vector<8x128xf32>
    %183 = arith.divf %181, %182 : vector<8x128xf32>
    %184 = vector.extract_strided_slice %171 {offsets = [0, 256], sizes = [8, 128], strides = [1, 1]} : vector<8x512xf32> to vector<8x128xf32>
    %185 = math.tanh %184 : vector<8x128xf32>
    %186 = vector.extract_strided_slice %171 {offsets = [0, 384], sizes = [8, 128], strides = [1, 1]} : vector<8x512xf32> to vector<8x128xf32>
    %187 = arith.negf %186 : vector<8x128xf32>
    %188 = math.exp %187 : vector<8x128xf32>
    %cst_48 = arith.constant 1.000000e+00 : f32
    %189 = vector.broadcast %cst_48 : f32 to vector<8x128xf32>
    %190 = arith.addf %189, %188 : vector<8x128xf32>
    %191 = arith.divf %189, %190 : vector<8x128xf32>
    %192 = arith.mulf %183, %162 : vector<8x128xf32>
    %193 = arith.mulf %177, %185 : vector<8x128xf32>
    %194 = arith.addf %192, %193 : vector<8x128xf32>
    %195 = math.tanh %194 : vector<8x128xf32>
    %196 = arith.mulf %191, %195 : vector<8x128xf32>
    %c6 = arith.constant 6 : index
    %c0_49 = arith.constant 0 : index
    %c0_50 = arith.constant 0 : index
    %197 = vector.load %arg3[%c6, %c0_49, %c0_50] : memref<8x8x128xf32, #tpu.memory_space<vmem>>, vector<1x8x128xf32>
    %198 = vector.shape_cast %197 : vector<1x8x128xf32> to vector<8x128xf32>
    %cst_51 = arith.constant dense<0.000000e+00> : vector<8x512xf32>
    %199 = tpu.matmul %198, %0, %cst_51 {dimension_numbers = #tpu.dot_dimension_numbers<[1], [0], [0], [1], [0, 0, 1, 1], [], []>} : vector<8x128xf32>, vector<128x512xf32>, vector<8x512xf32> -> vector<8x512xf32>
    %cst_52 = arith.constant dense<0.000000e+00> : vector<8x512xf32>
    %200 = tpu.matmul %196, %1, %cst_52 {dimension_numbers = #tpu.dot_dimension_numbers<[1], [0], [0], [1], [0, 0, 1, 1], [], []>} : vector<8x128xf32>, vector<128x512xf32>, vector<8x512xf32> -> vector<8x512xf32>
    %201 = arith.addf %199, %200 : vector<8x512xf32>
    %202 = vector.broadcast %2 : vector<1x512xf32> to vector<8x512xf32>
    %203 = arith.addf %201, %202 : vector<8x512xf32>
    %204 = vector.extract_strided_slice %203 {offsets = [0, 0], sizes = [8, 128], strides = [1, 1]} : vector<8x512xf32> to vector<8x128xf32>
    %205 = arith.negf %204 : vector<8x128xf32>
    %206 = math.exp %205 : vector<8x128xf32>
    %cst_53 = arith.constant 1.000000e+00 : f32
    %207 = vector.broadcast %cst_53 : f32 to vector<8x128xf32>
    %208 = arith.addf %207, %206 : vector<8x128xf32>
    %209 = arith.divf %207, %208 : vector<8x128xf32>
    %210 = vector.extract_strided_slice %203 {offsets = [0, 128], sizes = [8, 128], strides = [1, 1]} : vector<8x512xf32> to vector<8x128xf32>
    %211 = arith.negf %210 : vector<8x128xf32>
    %212 = math.exp %211 : vector<8x128xf32>
    %cst_54 = arith.constant 1.000000e+00 : f32
    %213 = vector.broadcast %cst_54 : f32 to vector<8x128xf32>
    %214 = arith.addf %213, %212 : vector<8x128xf32>
    %215 = arith.divf %213, %214 : vector<8x128xf32>
    %216 = vector.extract_strided_slice %203 {offsets = [0, 256], sizes = [8, 128], strides = [1, 1]} : vector<8x512xf32> to vector<8x128xf32>
    %217 = math.tanh %216 : vector<8x128xf32>
    %218 = vector.extract_strided_slice %203 {offsets = [0, 384], sizes = [8, 128], strides = [1, 1]} : vector<8x512xf32> to vector<8x128xf32>
    %219 = arith.negf %218 : vector<8x128xf32>
    %220 = math.exp %219 : vector<8x128xf32>
    %cst_55 = arith.constant 1.000000e+00 : f32
    %221 = vector.broadcast %cst_55 : f32 to vector<8x128xf32>
    %222 = arith.addf %221, %220 : vector<8x128xf32>
    %223 = arith.divf %221, %222 : vector<8x128xf32>
    %224 = arith.mulf %215, %194 : vector<8x128xf32>
    %225 = arith.mulf %209, %217 : vector<8x128xf32>
    %226 = arith.addf %224, %225 : vector<8x128xf32>
    %227 = math.tanh %226 : vector<8x128xf32>
    %228 = arith.mulf %223, %227 : vector<8x128xf32>
    %c7 = arith.constant 7 : index
    %c0_56 = arith.constant 0 : index
    %c0_57 = arith.constant 0 : index
    %229 = vector.load %arg3[%c7, %c0_56, %c0_57] : memref<8x8x128xf32, #tpu.memory_space<vmem>>, vector<1x8x128xf32>
    %230 = vector.shape_cast %229 : vector<1x8x128xf32> to vector<8x128xf32>
    %cst_58 = arith.constant dense<0.000000e+00> : vector<8x512xf32>
    %231 = tpu.matmul %230, %0, %cst_58 {dimension_numbers = #tpu.dot_dimension_numbers<[1], [0], [0], [1], [0, 0, 1, 1], [], []>} : vector<8x128xf32>, vector<128x512xf32>, vector<8x512xf32> -> vector<8x512xf32>
    %cst_59 = arith.constant dense<0.000000e+00> : vector<8x512xf32>
    %232 = tpu.matmul %228, %1, %cst_59 {dimension_numbers = #tpu.dot_dimension_numbers<[1], [0], [0], [1], [0, 0, 1, 1], [], []>} : vector<8x128xf32>, vector<128x512xf32>, vector<8x512xf32> -> vector<8x512xf32>
    %233 = arith.addf %231, %232 : vector<8x512xf32>
    %234 = vector.broadcast %2 : vector<1x512xf32> to vector<8x512xf32>
    %235 = arith.addf %233, %234 : vector<8x512xf32>
    %236 = vector.extract_strided_slice %235 {offsets = [0, 0], sizes = [8, 128], strides = [1, 1]} : vector<8x512xf32> to vector<8x128xf32>
    %237 = arith.negf %236 : vector<8x128xf32>
    %238 = math.exp %237 : vector<8x128xf32>
    %cst_60 = arith.constant 1.000000e+00 : f32
    %239 = vector.broadcast %cst_60 : f32 to vector<8x128xf32>
    %240 = arith.addf %239, %238 : vector<8x128xf32>
    %241 = arith.divf %239, %240 : vector<8x128xf32>
    %242 = vector.extract_strided_slice %235 {offsets = [0, 128], sizes = [8, 128], strides = [1, 1]} : vector<8x512xf32> to vector<8x128xf32>
    %243 = arith.negf %242 : vector<8x128xf32>
    %244 = math.exp %243 : vector<8x128xf32>
    %cst_61 = arith.constant 1.000000e+00 : f32
    %245 = vector.broadcast %cst_61 : f32 to vector<8x128xf32>
    %246 = arith.addf %245, %244 : vector<8x128xf32>
    %247 = arith.divf %245, %246 : vector<8x128xf32>
    %248 = vector.extract_strided_slice %235 {offsets = [0, 256], sizes = [8, 128], strides = [1, 1]} : vector<8x512xf32> to vector<8x128xf32>
    %249 = math.tanh %248 : vector<8x128xf32>
    %250 = vector.extract_strided_slice %235 {offsets = [0, 384], sizes = [8, 128], strides = [1, 1]} : vector<8x512xf32> to vector<8x128xf32>
    %251 = arith.negf %250 : vector<8x128xf32>
    %252 = math.exp %251 : vector<8x128xf32>
    %cst_62 = arith.constant 1.000000e+00 : f32
    %253 = vector.broadcast %cst_62 : f32 to vector<8x128xf32>
    %254 = arith.addf %253, %252 : vector<8x128xf32>
    %255 = arith.divf %253, %254 : vector<8x128xf32>
    %256 = arith.mulf %247, %226 : vector<8x128xf32>
    %257 = arith.mulf %241, %249 : vector<8x128xf32>
    %258 = arith.addf %256, %257 : vector<8x128xf32>
    %259 = math.tanh %258 : vector<8x128xf32>
    %260 = arith.mulf %255, %259 : vector<8x128xf32>
    %c0_63 = arith.constant 0 : index
    %c0_64 = arith.constant 0 : index
    %261 = vector.load %arg1[%c0_63, %c0_64] : memref<8x128xf32, #tpu.memory_space<vmem>>, vector<8x128xf32>
    %c0_65 = arith.constant 0 : index
    %c0_66 = arith.constant 0 : index
    %262 = vector.load %arg2[%c0_65, %c0_66] : memref<8x128xf32, #tpu.memory_space<vmem>>, vector<8x128xf32>
    %263 = arith.mulf %261, %262 : vector<8x128xf32>
    %264 = arith.mulf %263, %260 : vector<8x128xf32>
    %cst_67 = arith.constant dense<0.000000e+00> : vector<8xf32>
    %265 = vector.multi_reduction <add>, %264, %cst_67 [1] : vector<8x128xf32> to vector<8xf32>
    %266 = vector.shape_cast %265 : vector<8xf32> to vector<8x1xf32>
    %267 = vector.shape_cast %266 : vector<8x1xf32> to vector<8x1xf32>
    %268 = vector.broadcast %267 : vector<8x1xf32> to vector<8x128xf32>
    %c0_68 = arith.constant 0 : index
    %c0_69 = arith.constant 0 : index
    %269 = vector.load %arg7[%c0_68, %c0_69] : memref<8x128xf32, #tpu.memory_space<vmem>>, vector<8x128xf32>
    tpu.vector_store %arg7[%c0_68, %c0_69], %268 {strides = array<i32>} : memref<8x128xf32, #tpu.memory_space<vmem>>, vector<8x128xf32>,
    return
  }
  func.func @transform_0(%arg0: i32) -> (i32, i32) {
    %c0_i32 = arith.constant 0 : i32
    %c0_i32_0 = arith.constant 0 : i32
    return %arg0, %c0_i32 : i32, i32
  }
  func.func @transform_1(%arg0: i32) -> (i32, i32) {
    %c0_i32 = arith.constant 0 : i32
    %c0_i32_0 = arith.constant 0 : i32
    return %arg0, %c0_i32 : i32, i32
  }
  func.func @transform_2(%arg0: i32) -> (i32, i32, i32) {
    %c0_i32 = arith.constant 0 : i32
    %c0_i32_0 = arith.constant 0 : i32
    %c0_i32_1 = arith.constant 0 : i32
    return %c0_i32, %arg0, %c0_i32_0 : i32, i32, i32
  }
  func.func @transform_3(%arg0: i32) -> (i32, i32) {
    %c0_i32 = arith.constant 0 : i32
    %c0_i32_0 = arith.constant 0 : i32
    %c0_i32_1 = arith.constant 0 : i32
    return %c0_i32, %c0_i32_0 : i32, i32
  }
  func.func @transform_4(%arg0: i32) -> (i32, i32) {
    %c0_i32 = arith.constant 0 : i32
    %c0_i32_0 = arith.constant 0 : i32
    %c0_i32_1 = arith.constant 0 : i32
    return %c0_i32, %c0_i32_0 : i32, i32
  }
  func.func @transform_5(%arg0: i32) -> (i32, i32) {
    %c0_i32 = arith.constant 0 : i32
    %c0_i32_0 = arith.constant 0 : i32
    %c0_i32_1 = arith.constant 0 : i32
    return %c0_i32, %c0_i32_0 : i32, i32
  }
  func.func @transform_6(%arg0: i32) -> (i32, i32) {
    %c0_i32 = arith.constant 0 : i32
    %c0_i32_0 = arith.constant 0 : i32
    return %arg0, %c0_i32 : i32, i32
  }
}

</mosaic_0001>

<bundles_post_ra>
// kernel: tpu_custom_call.1
= control target key start
LH: loop header
LB: loop body
LE: loop exit
PB: predicated region body
PF: predicated region fallthrough
CT: control target
= control target key end

     0   :  { %s5391_s0 = inlined_call_operand.hbm [shape: f32[24,128], index: 0, kind: input, shape index: {}]   ;;  %s5392_s1 = inlined_call_operand.hbm [shape: f32[24,128], index: 1, kind: input, shape index: {}]   ;;  %s5393_s2 = inlined_call_operand.hbm [shape: f32[8,24,128], index: 2, kind: input, shape index: {}]   ;;  %s5394_s3 = inlined_call_operand.hbm [shape: f32[128,512], index: 3, kind: input, shape index: {}]   ;;  %s5395_s4 = inlined_call_operand.hbm [shape: f32[128,512], index: 4, kind: input, shape index: {}]   ;;  %s5396_s5 = inlined_call_operand.vmem [shape: f32[1,512], index: 5, kind: input, shape index: {}]   ;;  %s5397_s6 = inlined_call_operand.hbm [shape: f32[24,128], index: 6, kind: output, shape index: {}]  }
   0x1   :  { %5850 = sst [smem:[#allocation116_spill]] %s5392_s1 }
   0x2   :  { %5851 = sst [smem:[#allocation117_spill]] %s5394_s3 }
   0x3   :  { %11 = vsyncpa [#allocation3], 0 }
   0x4   :  { %13 = vsyncpa [#allocation3 + $0x1], 0 }
   0x5   :  { %14 = vsyncpa [#allocation6], 0 }
   0x6   :  { %16 = vsyncpa [#allocation6 + $0x1], 0 }
   0x7   :  { %17 = vsyncpa [#allocation9], 0 }
   0x8   :  { %18 = vsyncpa [#allocation4], 0 }
   0x9   :  { %20 = vsyncpa [#allocation4 + $0x1], 0  ;;  %s3292_s21 = smov 0   ;;  %s3294_s22 = smov 0  }
   0xa   :  { %s3296_s23 = smov 0   ;;  %s3298_s24 = smov 0  }
   0xb LB: > { %5852 = sst [smem:[#allocation16_spill]] %s3235_s21  ;;  %s3316_s28 = sadd.s32 4294967295, %s3247_s24   ;;  %s3247_s24 = sphi %s3298_s24, %s6591_s24   ;;  %s3243_s23 = sphi %s3296_s23, %s6596_s23   ;;  %s3239_s22 = sphi %s3294_s22, %s6595_s22   ;;  %s3235_s21 = sphi %s3292_s21, %s6594_s21  }
   0xc   : > { %5853 = sst [smem:[#allocation17_spill]] %s3243_s23  ;;  %p2504_p0 = scmp.ge.s32.totalorder %s3247_s24, 1 }
   0xd   : > { %s5854_s3 = sld [smem:[#allocation117_spill]]  ;;  %p5402_p1 = scmp.eq.s32.totalorder %s3316_s28, 0 }
   0xe   : > { %p198_p2 = scmp.lt.s32.totalorder %s3247_s24, 4  ;;  %s3249_s30 = smov [#allocation8]  }
   0xf   : > { %s211_s7 = sshll.u32 %s3249_s30, 4  ;;  %s5398_s9 = smov 512   ;;  %s212_s7 = int_to_ptr.vmem [resolvable:$true] %s211_s7 }
  0x10   : > { %p3321_p3 = pnand %p2504_p0, %p198_p2  ;;  %s5399_s10 = smov 32  }
  0x11   : > { %s2503_s11 = sadd.s32 4294967294, %s3247_s24   ;;  %s3340_s12 = sadd.s32 1, %s3247_s24  }
  0x12   : > { %p2572_p4 = pneg %p3321_p3  ;;  %5857 = sst [smem:[#allocation18_spill]] %s3340_s12 }
  0x13   : > { %s209_s27 = sshll.u32 %s5854_s3, 4  ;;  %s33_s13 = sadd.s32 1, %s3243_s23  ;;  %s210_s27 = int_to_ptr.hbm [resolvable:$true] %s209_s27 }
  0x14   : > { %p3329_p5 = pnand %p2572_p4, %p5402_p1  ;;  %s30_s14 = ssub.s32 %s3247_s24, %s3340_s12 }
  0x15   : > { %p40_p6 = scmp.ne.s32.totalorder %s3243_s23, %s3239_s22  ;;  %p31_p7 = scmp.eq.s32.totalorder %s30_s14, 0 }
  0x16   : > { %2575 = dma.hbm_to_vmem [thread:$0]  (!%p3329_p5), %s210_s27, 8192, %s212_s7, [#allocation9], %s5398_s9, %s5398_s9, %s5399_s10  }
  0x17   : > { %p41_p8 = scmp.eq.s32.totalorder %s3247_s24, 0  ;;  %p46_p9 = scmp.ne.s32.totalorder %s3239_s22, %s3235_s21 }
  0x18   : > { %p185_p10 = scmp.eq.s32.totalorder %s3316_s28, 2  ;;  %p191_p0 = scmp.eq.s32.totalorder %s2503_s11, 2 }
  0x19   : > { %s3352_s15 = scalar_select %p31_p7, %s3243_s23, %s33_s13  }
  0x1a   : > { %p42_p11 = por %p41_p8, %p40_p6  ;;  %p3356_p12 = por %p5402_p1, %p46_p9 }
  0x1b   : > { %5858 = sst [smem:[#allocation19_spill]] %s3352_s15  ;;  %p3360_p13 = por %p185_p10, %p40_p6 }
  0x1c   : > { %p2595_p2 = scmp.lt.s32.totalorder %s3247_s24, 3  ;;  %s3366_s18 = sand.u32 1, %s3243_s23  }
  0x1d   : > { %p3368_p4 = por %p191_p0, %p46_p9  ;;  %s5401_s20 = sshll.u32 %s3366_s18, 3 }
  0x1e   : > { %s3374_s25 = sshll.u32 %s3247_s24, 3  ;;  %p3376_p7 = pnand %p2595_p2, %p42_p11 }
  0x1f   : > { %s5861_s19 = scalar_select %p3368_p4, 1, 0 }
  0x20   : > { %s261_s27 = sand.u32 1, %s3247_s24   ;;  %s5864_s1 = sld [smem:[#allocation116_spill]] }
  0x21   : > { %5862 = sst [smem:[#allocation20_spill]] %s5861_s19  ;;  %s265_s13 = scalar_lea.vmem [#allocation5], %s5401_s20 }
  0x22   : > { %s273_s14 = sshll.u32 %s265_s13, 4  ;;  %s2512_s10 = sshll.u32 %s3366_s18, 6  ;;  %s274_s14 = int_to_ptr.vmem [resolvable:$true] %s273_s14 }
  0x23   : > { %s3388_s3 = scalar_lea.sflag [#allocation6], %s261_s27  ;;  %p3057_p8 = pneg %p3376_p7 }
  0x26   : > { %s269_s11 = scalar_lea.hbm %s5864_s1, %s3374_s25  ;;  %s3060_s13 = scalar_lea.hbm %s5864_s1, 24 }
  0x27   : > { %s271_s9 = sshll.u32 %s269_s11, 4  ;;  %s272_s9 = int_to_ptr.hbm [resolvable:$true] %s271_s9 }
  0x28   : > { %s3053_s15 = sshra.s32 %s272_s9, 4  ;;  %s3054_s15 = int_to_ptr.hbm [resolvable:$true] %s3053_s15 }
  0x29   : > { %s3055_s23 = scalar_lea.hbm %s3054_s15, 8  ;;  %p3061_p11 = scmp.lt.s32.totalorder %s3054_s15, %s5864_s1 }
  0x2a   : > { %p3056_p6 = scmp.ne.s32.totalorder %s3054_s15, %s3055_s23  ;;  %p3062_p0 = scmp.lt.s32.totalorder %s3060_s13, %s3055_s23 }
  0x2c   : > { %p3058_p9 = pnand %p3057_p8, %p3056_p6  ;;  %p3063_p2 = por %p3062_p0, %p3061_p11 }
  0x2e   : > { %p3059_p10 = pneg %p3058_p9 }
  0x30   : > { %p3064_p1 = pnand %p3063_p2, %p3059_p10 }
  0x32   : > { %3067 = shalt.err (!%p3064_p1)
}
  0x33   : > { %2585 = dma.hbm_to_vmem [thread:$0]  (!%p3376_p7), %s272_s9, 128, %s274_s14, %s3388_s3  }
  0x34   : > { %s288_s30 = scalar_lea.hbm %s5393_s2, %s3374_s25  ;;  %s284_s15 = scalar_lea.vmem [#allocation7], %s2512_s10 }
  0x35   : > { %s3408_s7 = sshll.u32 %s288_s30, 4  ;;  %s291_s23 = sshll.u32 %s284_s15, 4  ;;  %s3411_s23 = int_to_ptr.vmem [resolvable:$true] %s291_s23 }
  0x36   : > { %5865 = sst [smem:[#allocation21_spill]] %s3408_s7  ;;  %s223_s11 = sshll.u32 %s5395_s4, 4  ;;  %s224_s11 = int_to_ptr.hbm [resolvable:$true] %s223_s11 }
  0x37   : > { %s3252_s9 = smov [#allocation10]   ;;  %s5866_s12 = smov 32  }
  0x38   : > { %s225_s14 = sshll.u32 %s3252_s9, 4  ;;  %s5867_s27 = smov 512   ;;  %s226_s14 = int_to_ptr.vmem [resolvable:$true] %s225_s14 }
  0x39   : > { %2578 = dma.hbm_to_vmem [thread:$0]  (!%p3329_p5), %s224_s11, 8192, %s226_s14, [#allocation9], %s5867_s27, %s5867_s27, %s5866_s12  }
  0x3a   : > { %s250_s15 = scalar_lea.hbm %s5391_s0, %s3374_s25  ;;  %s5868_s1 = sshll.u32 %s3366_s18, 3 }
  0x3b   : > { %s252_s7 = sshll.u32 %s250_s15, 4  ;;  %s246_s19 = scalar_lea.vmem [#allocation2], %s5868_s1  ;;  %s253_s7 = int_to_ptr.hbm [resolvable:$true] %s252_s7 }
  0x3c   : > { %s254_s21 = sshll.u32 %s246_s19, 4  ;;  %s243_s20 = scalar_lea.sflag [#allocation3], %s3366_s18  ;;  %s255_s21 = int_to_ptr.vmem [resolvable:$true] %s254_s21 }
  0x3d   : > { %s3113_s13 = sshra.s32 %s253_s7, 4  ;;  %s3120_s14 = scalar_lea.hbm %s5391_s0, 24  ;;  %s3114_s13 = int_to_ptr.hbm [resolvable:$true] %s3113_s13 }
  0x3e   : > { %s3115_s9 = scalar_lea.hbm %s3114_s13, 8  ;;  %p3121_p5 = scmp.lt.s32.totalorder %s3114_s13, %s5391_s0 }
  0x3f   : > { %p3116_p1 = scmp.ne.s32.totalorder %s3114_s13, %s3115_s9  ;;  %p3122_p10 = scmp.lt.s32.totalorder %s3120_s14, %s3115_s9 }
  0x41   : > { %p3118_p6 = pnand %p3116_p1, %p3057_p8  ;;  %p3123_p11 = por %p3122_p10, %p3121_p5 }
  0x43   : > { %p3119_p9 = pneg %p3118_p6 }
  0x45   : > { %p3124_p0 = pnand %p3123_p11, %p3119_p9 }
  0x47   : > { %3127 = shalt.err (!%p3124_p0)
}
  0x48   : > { %s5869_s1 = sld [smem:[#allocation21_spill]]  ;;  %s3150_s15 = scalar_lea.hbm %s5393_s2, 192 }
  0x49   : > { %2582 = dma.hbm_to_vmem [thread:$0]  (!%p3376_p7), %s253_s7, 128, %s255_s21, %s243_s20  }
  0x4e   : > { %s5870_s18 = int_to_ptr.hbm [resolvable:$true] %s5869_s1 }
  0x4f   : > { %s3143_s19 = sshra.s32 %s5870_s18, 4  ;;  %s3144_s19 = int_to_ptr.hbm [resolvable:$true] %s3143_s19 }
  0x50   : > { %s3145_s27 = scalar_lea.hbm %s3144_s19, 64  ;;  %p3151_p9 = scmp.lt.s32.totalorder %s3144_s19, %s5393_s2 }
  0x51   : > { %p3146_p2 = scmp.ne.s32.totalorder %s3144_s19, %s3145_s27  ;;  %p3152_p5 = scmp.lt.s32.totalorder %s3150_s15, %s3145_s27 }
  0x53   : > { %p3148_p1 = pnand %p3146_p2, %p3057_p8  ;;  %p3153_p10 = por %p3152_p5, %p3151_p9 }
  0x55   : > { %p3149_p6 = pneg %p3148_p1 }
  0x57   : > { %p3154_p11 = pnand %p3153_p10, %p3149_p6 }
  0x59   : > { %3157 = shalt.err (!%p3154_p11)
}
  0x5a   : > { %s3253_s21 = smov 384   ;;  %s3254_s7 = smov 128  }
  0x5b   : > { %s3255_s20 = smov 8   ;;  %s5871_s8 = smov %s5870_s18 }
  0x5c   : > { %2588 = dma.hbm_to_vmem [thread:$0]  (!%p3376_p7), %s5871_s8, 1024, %s3411_s23, %s3388_s3, %s3253_s21, %s3254_s7, %s3255_s20  }
  0x5d   : > { %303 = sbr.rel (%p3321_p3) target bundleno = 1751 (0x6d7), region = 44 }
  0x62   : > { %s3459_s11 = sand.u32 1, %s3239_s22  }
  0x63   : > { %s3462_s14 = sshll.u32 %s3459_s11, 3  ;;  %s306_s25 = scalar_lea.sflag [#allocation3], %s3459_s11 }
  0x64   : > { %s309_s12 = scalar_lea.vmem [#allocation2], %s3462_s14 }
  0x65   : > { %3218 = dma.done.wait (%p3356_p12), %s306_s25, 128  }
  0x66   : > { %3220 = vsyncadd (%p3356_p12), %s306_s25, 4294967168  ;;  %s315_s3 = sand.u32 1, %s3316_s28   ;;  %s319_s26 = scalar_lea.vmem [#allocation5], %s3462_s14 }
  0x67   : > { %s316_s29 = scalar_lea.sflag [#allocation6], %s315_s3 }
  0x68   : > { %3222 = dma.done.wait (%p3356_p12), %s316_s29, 1152  }
  0x69   : > { %3224 = vsyncadd (%p3356_p12), %s316_s29, 4294966144  ;;  %s2517_s23 = sshll.u32 %s3459_s11, 6  ;;  %p5872_p3 = scmp.eq.s32.totalorder %s3316_s28, 0 }
  0x6a   : > { %s3477_s1 = scalar_lea.vmem [#allocation7], %s2517_s23 }
  0x6b   : > { %3226 = dma.done.wait (%p5872_p3), [#allocation9], 16384   ;;  %p5873_p7 = pmov %p5872_p3 }
  0x6c   : > { %v3483_v0 = vld [vmem:[#allocation10 + $0x1e0] sm:$0xff]  ;;  %v3485_v1 = vld [vmem:[#allocation10 + $0x1e8] sm:$0xff]  ;;  %v3487_v2 = vld [vmem:[#allocation10 + $0x1f8] sm:$0xff]  ;;  %s2553_s19 = sshll.u32 %s3316_s28, 3  ;;  %s378_s15 = scalar_lea.vmem [#allocation11], %s3462_s14 }
  0x6d   : > { %3228 = vsyncadd (%p5873_p7), [#allocation9], 4294950912  ;;  %509 = vmatpush.msra.mxu0 %v3483_v0  ;;  %529 = vmatpush.msra.mxu1 %v3485_v1  ;;  %v3491_v3 = vld [vmem:[#allocation10 + $0x1c0] sm:$0xff]  ;;  %v3493_v4 = vld [vmem:[#allocation10 + $0x1c8] sm:$0xff]  ;;  %s2366_s30 = scalar_lea.hbm %s5397_s6, %s2553_s19  ;;  %s2368_s13 = sshll.u32 %s378_s15, 4  ;;  %s2369_s13 = int_to_ptr.vmem [resolvable:$true] %s2368_s13 }
  0x6e   : > { %v3495_v5 = vld [vmem:[#allocation10 + $0x1d8] sm:$0xff]  ;;  %569 = vmatpush.msra.mxu3 %v3487_v2  ;;  %v3498_v6 = vld [vmem:[#allocation10 + $0x1a0] sm:$0xff]  ;;  %v3500_v7 = vld [vmem:[#allocation10 + $0x1a8] sm:$0xff]  ;;  %s2370_s9 = sshll.u32 %s2366_s30, 4  ;;  %s2356_s21 = scalar_lea.sflag [#allocation4], %s3459_s11  ;;  %s2371_s9 = int_to_ptr.hbm [resolvable:$true] %s2370_s9 }
  0x6f   : > { %510 = vmatpush.msra.mxu0 %v3491_v3  ;;  %530 = vmatpush.msra.mxu1 %v3493_v4  ;;  %v3504_v8 = vld [vmem:[#allocation10 + $0x1b8] sm:$0xff]  ;;  %v3507_v9 = vld [vmem:[#allocation10 + $0x180] sm:$0xff]  ;;  %v3509_v10 = vld [vmem:[#allocation10 + $0x188] sm:$0xff]  ;;  %s3187_s7 = sshra.s32 %s2371_s9, 4  ;;  %s3193_s25 = scalar_lea.hbm %s5397_s6, 24  ;;  %s3188_s7 = int_to_ptr.hbm [resolvable:$true] %s3187_s7 }
  0x70   : > { %570 = vmatpush.msra.mxu3 %v3495_v5  ;;  %v3511_v11 = vld [vmem:[#allocation10 + $0x1f0] sm:$0xff]  ;;  %v3515_v12 = vld [vmem:[#allocation10 + $0x198] sm:$0xff]  ;;  %v3521_v14 = vld [vmem:[#allocation10 + $0x160] sm:$0xff]  ;;  %s3189_s20 = scalar_lea.hbm %s3188_s7, 8  ;;  %p3194_p2 = scmp.lt.s32.totalorder %s3188_s7, %s5397_s6 }
  0x71   : > { %511 = vmatpush.msra.mxu0 %v3498_v6  ;;  %531 = vmatpush.msra.mxu1 %v3500_v7  ;;  %v3517_v13 = vld [vmem:[#allocation10 + $0x1d0] sm:$0xff]  ;;  %v3523_v15 = vld [vmem:[#allocation10 + $0x168] sm:$0xff]  ;;  %v3527_v16 = vld [vmem:[#allocation10 + $0x178] sm:$0xff]  ;;  %p3190_p12 = scmp.ne.s32.totalorder %s3188_s7, %s3189_s20  ;;  %p3195_p1 = scmp.lt.s32.totalorder %s3193_s25, %s3189_s20 }
  0x72   : > { %571 = vmatpush.msra.mxu3 %v3504_v8  ;;  %549 = vmatpush.msra.mxu2 %v3511_v11  ;;  %v3529_v17 = vld [vmem:[#allocation10 + $0x1b0] sm:$0xff]  ;;  %v3533_v18 = vld [vmem:[#allocation10 + $0x140] sm:$0xff]  ;;  %v3535_v19 = vld [vmem:[#allocation10 + $0x148] sm:$0xff] }
  0x73   : > { %512 = vmatpush.msra.mxu0 %v3507_v9  ;;  %532 = vmatpush.msra.mxu1 %v3509_v10  ;;  %v3539_v20 = vld [vmem:[#allocation10 + $0x158] sm:$0xff]  ;;  %v3541_v21 = vld [vmem:[#allocation10 + $0x190] sm:$0xff]  ;;  %v3545_v22 = vld [vmem:[#allocation10 + $0x120] sm:$0xff]  ;;  %p3191_p8 = pnand %p3190_p12, %p3360_p13  ;;  %p3196_p6 = por %p3195_p1, %p3194_p2 }
  0x74   : > { %572 = vmatpush.msra.mxu3 %v3515_v12  ;;  %550 = vmatpush.msra.mxu2 %v3517_v13  ;;  %v3547_v23 = vld [vmem:[#allocation10 + $0x128] sm:$0xff]  ;;  %v3551_v24 = vld [vmem:[#allocation10 + $0x138] sm:$0xff]  ;;  %v3553_v25 = vld [vmem:[#allocation10 + $0x170] sm:$0xff] }
  0x75   : > { %513 = vmatpush.msra.mxu0 %v3521_v14  ;;  %533 = vmatpush.msra.mxu1 %v3523_v15  ;;  %v3557_v26 = vld [vmem:[#allocation10 + $0x100] sm:$0xff]  ;;  %v3559_v27 = vld [vmem:[#allocation10 + $0x108] sm:$0xff]  ;;  %v3563_v28 = vld [vmem:[#allocation10 + $0x118] sm:$0xff]  ;;  %p3192_p0 = pneg %p3191_p8 }
  0x76   : > { %573 = vmatpush.msra.mxu3 %v3527_v16  ;;  %551 = vmatpush.msra.mxu2 %v3529_v17  ;;  %v3565_v29 = vld [vmem:[#allocation10 + $0x150] sm:$0xff]  ;;  %v3569_v30 = vld [vmem:[#allocation10 + $0xe0] sm:$0xff]  ;;  %v3571_v31 = vld [vmem:[#allocation10 + $0xe8] sm:$0xff] }
  0x77   : > { %514 = vmatpush.msra.mxu0 %v3533_v18  ;;  %534 = vmatpush.msra.mxu1 %v3535_v19  ;;  %v3575_v32 = vld [vmem:[#allocation10 + $0xf8] sm:$0xff]  ;;  %v3577_v33 = vld [vmem:[#allocation10 + $0x130] sm:$0xff]  ;;  %v3581_v34 = vld [vmem:[#allocation10 + $0xc0] sm:$0xff]  ;;  %p3197_p9 = pnand %p3196_p6, %p3192_p0 }
  0x78   : > { %574 = vmatpush.msra.mxu3 %v3539_v20  ;;  %552 = vmatpush.msra.mxu2 %v3541_v21  ;;  %v3583_v35 = vld [vmem:[#allocation10 + $0xc8] sm:$0xff]  ;;  %v3587_v36 = vld [vmem:[#allocation10 + $0xd8] sm:$0xff]  ;;  %v3589_v37 = vld [vmem:[#allocation10 + $0x110] sm:$0xff] }
  0x79   : > { %515 = vmatpush.msra.mxu0 %v3545_v22  ;;  %535 = vmatpush.msra.mxu1 %v3547_v23  ;;  %5874 = vst [vmem:[#allocation22_spill] sm:$0xff] %v3587_v36  ;;  %v3593_v38 = vld [vmem:[#allocation10 + $0xa0] sm:$0xff]  ;;  %v3595_v39 = vld [vmem:[#allocation10 + $0xa8] sm:$0xff]  ;;  %v3599_v40 = vld [vmem:[#allocation10 + $0xb8] sm:$0xff] }
  0x7a   : > { %575 = vmatpush.msra.mxu3 %v3551_v24  ;;  %553 = vmatpush.msra.mxu2 %v3553_v25  ;;  %5875 = vst [vmem:[#allocation23_spill] sm:$0xff] %v3593_v38  ;;  %v3601_v41 = vld [vmem:[#allocation10 + $0xf0] sm:$0xff]  ;;  %v3605_v42 = vld [vmem:[#allocation10 + $0x80] sm:$0xff]  ;;  %v3607_v43 = vld [vmem:[#allocation10 + $0x88] sm:$0xff] }
  0x7b   : > { %516 = vmatpush.msra.mxu0 %v3557_v26  ;;  %536 = vmatpush.msra.mxu1 %v3559_v27  ;;  %5876 = vst [vmem:[#allocation24_spill] sm:$0xff] %v3595_v39  ;;  %v3611_v44 = vld [vmem:[#allocation10 + $0x98] sm:$0xff]  ;;  %v3613_v45 = vld [vmem:[#allocation10 + $0xd0] sm:$0xff]  ;;  %v3617_v46 = vld [vmem:[#allocation10 + $0x60] sm:$0xff] }
  0x7c   : > { %576 = vmatpush.msra.mxu3 %v3563_v28  ;;  %554 = vmatpush.msra.mxu2 %v3565_v29  ;;  %5877 = vst [vmem:[#allocation25_spill] sm:$0xff] %v3599_v40  ;;  %v3619_v47 = vld [vmem:[#allocation10 + $0x68] sm:$0xff]  ;;  %v3623_v48 = vld [vmem:[#allocation10 + $0x78] sm:$0xff]  ;;  %v3625_v49 = vld [vmem:[#allocation10 + $0xb0] sm:$0xff] }
  0x7d   : > { %517 = vmatpush.msra.mxu0 %v3569_v30  ;;  %537 = vmatpush.msra.mxu1 %v3571_v31  ;;  %5878 = vst [vmem:[#allocation26_spill] sm:$0xff] %v3605_v42  ;;  %v3629_v50 = vld [vmem:[#allocation10 + $0x40] sm:$0xff]  ;;  %v3631_v51 = vld [vmem:[#allocation10 + $0x48] sm:$0xff]  ;;  %v3635_v52 = vld [vmem:[#allocation10 + $0x58] sm:$0xff] }
  0x7e   : > { %577 = vmatpush.msra.mxu3 %v3575_v32  ;;  %555 = vmatpush.msra.mxu2 %v3577_v33  ;;  %5879 = vst [vmem:[#allocation27_spill] sm:$0xff] %v3607_v43  ;;  %v3637_v53 = vld [vmem:[#allocation10 + $0x90] sm:$0xff]  ;;  %v3641_v54 = vld [vmem:[#allocation10 + $0x20] sm:$0xff]  ;;  %v3643_v55 = vld [vmem:[#allocation10 + $0x28] sm:$0xff] }
  0x7f   : > { %518 = vmatpush.msra.mxu0 %v3581_v34  ;;  %538 = vmatpush.msra.mxu1 %v3583_v35  ;;  %5880 = vst [vmem:[#allocation28_spill] sm:$0xff] %v3611_v44  ;;  %v3647_v56 = vld [vmem:[#allocation10 + $0x38] sm:$0xff]  ;;  %v3649_v57 = vld [vmem:[#allocation10 + $0x70] sm:$0xff]  ;;  %v3653_v58 = vld [vmem:[#allocation10] sm:$0xff] }
  0x80   : > { %578 = vmatpush.msra.mxu3 %v3587_v36  ;;  %556 = vmatpush.msra.mxu2 %v3589_v37  ;;  %5881 = vst [vmem:[#allocation29_spill] sm:$0xff] %v3613_v45  ;;  %v3655_v59 = vld [vmem:[#allocation10 + $0x8] sm:$0xff]  ;;  %v3659_v60 = vld [vmem:[#allocation10 + $0x18] sm:$0xff]  ;;  %v3661_v61 = vld [vmem:[#allocation8 + $0x1e0] sm:$0xff] }
  0x81   : > { %519 = vmatpush.msra.mxu0 %v3593_v38  ;;  %539 = vmatpush.msra.mxu1 %v3595_v39  ;;  %5882 = vst [vmem:[#allocation30_spill] sm:$0xff] %v3617_v46  ;;  %v3665_v62 = vld [vmem:[#allocation8 + $0x1e8] sm:$0xff]  ;;  %v3667_v63 = vld [vmem:[#allocation8 + $0x1f8] sm:$0xff] }
  0x82   : > { %579 = vmatpush.msra.mxu3 %v3599_v40  ;;  %557 = vmatpush.msra.mxu2 %v3601_v41  ;;  %5883 = vst [vmem:[#allocation31_spill] sm:$0xff] %v3619_v47 }
  0x83   : > { %520 = vmatpush.msra.mxu0 %v3605_v42  ;;  %540 = vmatpush.msra.mxu1 %v3607_v43  ;;  %5884 = vst [vmem:[#allocation32_spill] sm:$0xff] %v3623_v48 }
  0x84   : > { %5885 = vst [vmem:[#allocation33_spill] sm:$0xff] %v3625_v49  ;;  %580 = vmatpush.msra.mxu3 %v3611_v44  ;;  %558 = vmatpush.msra.mxu2 %v3613_v45 }
  0x85   : > { %5886 = vst [vmem:[#allocation34_spill] sm:$0xff] %v3629_v50  ;;  %521 = vmatpush.msra.mxu0 %v3617_v46  ;;  %541 = vmatpush.msra.mxu1 %v3619_v47 }
  0x86   : > { %5887 = vst [vmem:[#allocation35_spill] sm:$0xff] %v3631_v51  ;;  %581 = vmatpush.msra.mxu3 %v3623_v48  ;;  %559 = vmatpush.msra.mxu2 %v3625_v49 }
  0x87   : > { %5888 = vst [vmem:[#allocation36_spill] sm:$0xff] %v3635_v52  ;;  %522 = vmatpush.msra.mxu0 %v3629_v50  ;;  %542 = vmatpush.msra.mxu1 %v3631_v51 }
  0x88   : > { %5889 = vst [vmem:[#allocation37_spill] sm:$0xff] %v3637_v53  ;;  %582 = vmatpush.msra.mxu3 %v3635_v52  ;;  %560 = vmatpush.msra.mxu2 %v3637_v53  ;;  %v3671_v53 = vld [vmem:[#allocation10 + $0x50] sm:$0xff]  ;;  %v3848_v52 = vld [vmem:[#allocation8 + $0x18] sm:$0xff] }
  0x89   : > { %5890 = vst [vmem:[#allocation38_spill] sm:$0xff] %v3641_v54  ;;  %523 = vmatpush.msra.mxu0 %v3641_v54  ;;  %543 = vmatpush.msra.mxu1 %v3643_v55  ;;  %v3673_v54 = vld [vmem:[#allocation8 + $0x1c0] sm:$0xff] }
  0x8a   : > { %5891 = vst [vmem:[#allocation39_spill] sm:$0xff] %v3643_v55  ;;  %583 = vmatpush.msra.mxu3 %v3647_v56  ;;  %561 = vmatpush.msra.mxu2 %v3649_v57  ;;  %v3677_v55 = vld [vmem:[#allocation8 + $0x1c8] sm:$0xff] }
  0x8b   : > { %5892 = vst [vmem:[#allocation40_spill] sm:$0xff] %v3647_v56  ;;  %524 = vmatpush.msra.mxu0 %v3653_v58  ;;  %544 = vmatpush.msra.mxu1 %v3655_v59  ;;  %v3679_v56 = vld [vmem:[#allocation8 + $0x1d8] sm:$0xff] }
  0x8c   : > { %5893 = vst [vmem:[#allocation41_spill] sm:$0xff] %v3649_v57  ;;  %584 = vmatpush.msra.mxu3 %v3659_v60  ;;  %v3683_v57 = vld [vmem:[#allocation10 + $0x30] sm:$0xff]  ;;  %562 = vmatpush.msra.mxu2 %v3671_v53 }
  0x8d   : > { %5894 = vst [vmem:[#allocation42_spill] sm:$0xff] %v3653_v58  ;;  %589 = vmatpush.msrb.mxu0 %v3661_v61  ;;  %609 = vmatpush.msrb.mxu1 %v3665_v62  ;;  %v3685_v58 = vld [vmem:[#allocation8 + $0x1a0] sm:$0xff] }
  0x8e   : > { %5895 = vst [vmem:[#allocation43_spill] sm:$0xff] %v3655_v59  ;;  %649 = vmatpush.msrb.mxu3 %v3667_v63  ;;  %v3689_v59 = vld [vmem:[#allocation8 + $0x1a8] sm:$0xff]  ;;  %563 = vmatpush.msra.mxu2 %v3683_v57 }
  0x8f   : > { %5896 = vst [vmem:[#allocation44_spill] sm:$0xff] %v3659_v60  ;;  %590 = vmatpush.msrb.mxu0 %v3673_v54  ;;  %v3691_v60 = vld [vmem:[#allocation8 + $0x1b8] sm:$0xff]  ;;  %610 = vmatpush.msrb.mxu1 %v3677_v55 }
  0x90   : > { %5897 = vst [vmem:[#allocation45_spill] sm:$0xff] %v3661_v61  ;;  %650 = vmatpush.msrb.mxu3 %v3679_v56  ;;  %v3695_v61 = vld [vmem:[#allocation10 + $0x10] sm:$0xff] }
  0x91   : > { %5898 = vst [vmem:[#allocation46_spill] sm:$0xff] %v3665_v62  ;;  %v3697_v62 = vld [vmem:[#allocation8 + $0x180] sm:$0xff]  ;;  %591 = vmatpush.msrb.mxu0 %v3685_v58  ;;  %611 = vmatpush.msrb.mxu1 %v3689_v59 }
  0x92   : > { %5899 = vst [vmem:[#allocation47_spill] sm:$0xff] %v3667_v63  ;;  %v3701_v63 = vld [vmem:[#allocation8 + $0x188] sm:$0xff]  ;;  %651 = vmatpush.msrb.mxu3 %v3691_v60  ;;  %564 = vmatpush.msra.mxu2 %v3695_v61 }
  0x93   : > { %5900 = vst [vmem:[#allocation48_spill] sm:$0xff] %v3671_v53  ;;  %v3703_v53 = vld [vmem:[#allocation8 + $0x198] sm:$0xff]  ;;  %592 = vmatpush.msrb.mxu0 %v3697_v62  ;;  %612 = vmatpush.msrb.mxu1 %v3701_v63 }
  0x94   : > { %5901 = vst [vmem:[#allocation49_spill] sm:$0xff] %v3673_v54  ;;  %v3707_v54 = vld [vmem:[#allocation8 + $0x1f0] sm:$0xff]  ;;  %652 = vmatpush.msrb.mxu3 %v3703_v53 }
  0x95   : > { %5902 = vst [vmem:[#allocation50_spill] sm:$0xff] %v3677_v55  ;;  %v3709_v55 = vld [vmem:[#allocation8 + $0x160] sm:$0xff]  ;;  %629 = vmatpush.msrb.mxu2 %v3707_v54 }
  0x96   : > { %5903 = vst [vmem:[#allocation51_spill] sm:$0xff] %v3679_v56  ;;  %v3713_v56 = vld [vmem:[#allocation8 + $0x168] sm:$0xff]  ;;  %593 = vmatpush.msrb.mxu0 %v3709_v55 }
  0x97   : > { %5904 = vst [vmem:[#allocation52_spill] sm:$0xff] %v3683_v57  ;;  %v3715_v57 = vld [vmem:[#allocation8 + $0x178] sm:$0xff]  ;;  %613 = vmatpush.msrb.mxu1 %v3713_v56 }
  0x98   : > { %5905 = vst [vmem:[#allocation53_spill] sm:$0xff] %v3685_v58  ;;  %v3719_v58 = vld [vmem:[#allocation8 + $0x1d0] sm:$0xff]  ;;  %653 = vmatpush.msrb.mxu3 %v3715_v57 }
  0x99   : > { %5906 = vst [vmem:[#allocation54_spill] sm:$0xff] %v3689_v59  ;;  %v3721_v59 = vld [vmem:[#allocation8 + $0x140] sm:$0xff]  ;;  %630 = vmatpush.msrb.mxu2 %v3719_v58 }
  0x9a   : > { %5907 = vst [vmem:[#allocation55_spill] sm:$0xff] %v3691_v60  ;;  %v3725_v60 = vld [vmem:[#allocation8 + $0x148] sm:$0xff]  ;;  %594 = vmatpush.msrb.mxu0 %v3721_v59 }
  0x9b   : > { %5908 = vst [vmem:[#allocation56_spill] sm:$0xff] %v3695_v61  ;;  %v3727_v61 = vld [vmem:[#allocation8 + $0x158] sm:$0xff]  ;;  %614 = vmatpush.msrb.mxu1 %v3725_v60 }
  0x9c   : > { %5909 = vst [vmem:[#allocation57_spill] sm:$0xff] %v3697_v62  ;;  %v3731_v62 = vld [vmem:[#allocation8 + $0x1b0] sm:$0xff]  ;;  %654 = vmatpush.msrb.mxu3 %v3727_v61 }
  0x9d   : > { %5910 = vst [vmem:[#allocation58_spill] sm:$0xff] %v3701_v63  ;;  %v3733_v63 = vld [vmem:[#allocation8 + $0x120] sm:$0xff]  ;;  %631 = vmatpush.msrb.mxu2 %v3731_v62 }
  0x9e   : > { %5911 = vst [vmem:[#allocation59_spill] sm:$0xff] %v3703_v53  ;;  %v3737_v53 = vld [vmem:[#allocation8 + $0x128] sm:$0xff]  ;;  %595 = vmatpush.msrb.mxu0 %v3733_v63 }
  0x9f   : > { %5912 = vst [vmem:[#allocation60_spill] sm:$0xff] %v3707_v54  ;;  %v3739_v54 = vld [vmem:[#allocation8 + $0x138] sm:$0xff]  ;;  %615 = vmatpush.msrb.mxu1 %v3737_v53 }
  0xa0   : > { %5913 = vst [vmem:[#allocation61_spill] sm:$0xff] %v3709_v55  ;;  %v3743_v55 = vld [vmem:[#allocation8 + $0x190] sm:$0xff]  ;;  %655 = vmatpush.msrb.mxu3 %v3739_v54 }
  0xa1   : > { %5914 = vst [vmem:[#allocation62_spill] sm:$0xff] %v3713_v56  ;;  %v3745_v56 = vld [vmem:[#allocation8 + $0x100] sm:$0xff]  ;;  %632 = vmatpush.msrb.mxu2 %v3743_v55 }
  0xa2   : > { %5915 = vst [vmem:[#allocation63_spill] sm:$0xff] %v3715_v57  ;;  %v3749_v57 = vld [vmem:[#allocation8 + $0x108] sm:$0xff]  ;;  %596 = vmatpush.msrb.mxu0 %v3745_v56 }
  0xa3   : > { %5916 = vst [vmem:[#allocation64_spill] sm:$0xff] %v3719_v58  ;;  %v3751_v58 = vld [vmem:[#allocation8 + $0x118] sm:$0xff]  ;;  %616 = vmatpush.msrb.mxu1 %v3749_v57 }
  0xa4   : > { %5917 = vst [vmem:[#allocation65_spill] sm:$0xff] %v3721_v59  ;;  %v3755_v59 = vld [vmem:[#allocation8 + $0x170] sm:$0xff]  ;;  %656 = vmatpush.msrb.mxu3 %v3751_v58 }
  0xa5   : > { %5918 = vst [vmem:[#allocation66_spill] sm:$0xff] %v3725_v60  ;;  %v3757_v60 = vld [vmem:[#allocation8 + $0xe0] sm:$0xff]  ;;  %633 = vmatpush.msrb.mxu2 %v3755_v59 }
  0xa6   : > { %5919 = vst [vmem:[#allocation67_spill] sm:$0xff] %v3727_v61  ;;  %v3761_v61 = vld [vmem:[#allocation8 + $0xe8] sm:$0xff]  ;;  %597 = vmatpush.msrb.mxu0 %v3757_v60 }
  0xa7   : > { %5920 = vst [vmem:[#allocation68_spill] sm:$0xff] %v3731_v62  ;;  %v3763_v62 = vld [vmem:[#allocation8 + $0xf8] sm:$0xff]  ;;  %617 = vmatpush.msrb.mxu1 %v3761_v61 }
  0xa8   : > { %5921 = vst [vmem:[#allocation69_spill] sm:$0xff] %v3733_v63  ;;  %v3767_v63 = vld [vmem:[#allocation8 + $0x150] sm:$0xff]  ;;  %657 = vmatpush.msrb.mxu3 %v3763_v62 }
  0xa9   : > { %5922 = vst [vmem:[#allocation70_spill] sm:$0xff] %v3737_v53  ;;  %v3769_v53 = vld [vmem:[#allocation8 + $0xc0] sm:$0xff]  ;;  %634 = vmatpush.msrb.mxu2 %v3767_v63 }
  0xaa   : > { %5923 = vst [vmem:[#allocation71_spill] sm:$0xff] %v3739_v54  ;;  %v3773_v54 = vld [vmem:[#allocation8 + $0xc8] sm:$0xff]  ;;  %598 = vmatpush.msrb.mxu0 %v3769_v53 }
  0xab   : > { %5924 = vst [vmem:[#allocation72_spill] sm:$0xff] %v3743_v55  ;;  %v3775_v55 = vld [vmem:[#allocation8 + $0xd8] sm:$0xff]  ;;  %618 = vmatpush.msrb.mxu1 %v3773_v54 }
  0xac   : > { %5925 = vst [vmem:[#allocation73_spill] sm:$0xff] %v3745_v56  ;;  %v3779_v56 = vld [vmem:[#allocation8 + $0x130] sm:$0xff]  ;;  %658 = vmatpush.msrb.mxu3 %v3775_v55 }
  0xad   : > { %5926 = vst [vmem:[#allocation74_spill] sm:$0xff] %v3749_v57  ;;  %v3781_v57 = vld [vmem:[#allocation8 + $0xa0] sm:$0xff]  ;;  %635 = vmatpush.msrb.mxu2 %v3779_v56 }
  0xae   : > { %5927 = vst [vmem:[#allocation75_spill] sm:$0xff] %v3751_v58  ;;  %v3785_v58 = vld [vmem:[#allocation8 + $0xa8] sm:$0xff]  ;;  %599 = vmatpush.msrb.mxu0 %v3781_v57 }
  0xaf   : > { %5928 = vst [vmem:[#allocation76_spill] sm:$0xff] %v3755_v59  ;;  %v3787_v59 = vld [vmem:[#allocation8 + $0xb8] sm:$0xff]  ;;  %619 = vmatpush.msrb.mxu1 %v3785_v58 }
  0xb0   : > { %5929 = vst [vmem:[#allocation77_spill] sm:$0xff] %v3757_v60  ;;  %v3791_v60 = vld [vmem:[#allocation8 + $0x110] sm:$0xff]  ;;  %659 = vmatpush.msrb.mxu3 %v3787_v59 }
  0xb1   : > { %5930 = vst [vmem:[#allocation78_spill] sm:$0xff] %v3761_v61  ;;  %v3793_v61 = vld [vmem:[#allocation8 + $0x80] sm:$0xff]  ;;  %636 = vmatpush.msrb.mxu2 %v3791_v60 }
  0xb2   : > { %5931 = vst [vmem:[#allocation79_spill] sm:$0xff] %v3763_v62  ;;  %v3797_v62 = vld [vmem:[#allocation8 + $0x88] sm:$0xff]  ;;  %600 = vmatpush.msrb.mxu0 %v3793_v61 }
  0xb3   : > { %5932 = vst [vmem:[#allocation80_spill] sm:$0xff] %v3767_v63  ;;  %v3799_v63 = vld [vmem:[#allocation8 + $0x98] sm:$0xff]  ;;  %620 = vmatpush.msrb.mxu1 %v3797_v62 }
  0xb4   : > { %5933 = vst [vmem:[#allocation81_spill] sm:$0xff] %v3769_v53  ;;  %660 = vmatpush.msrb.mxu3 %v3799_v63  ;;  %v3256_v53 = vmov 0.0  }
  0xb5   : > { %5934 = vst [vmem:[#allocation82_spill] sm:$0xff] %v3773_v54  ;;  %v3809_v54 = vld [vmem:[#allocation8 + $0x60] sm:$0xff]  ;;  %525 = vmatmul.f32.vlgmr.msra.gmra.mxu0 %v3256_v53  ;;  %545 = vmatmul.f32.vlgmr.msra.gmra.mxu1 %v3256_v53 }
  0xb6   : > { %5935 = vst [vmem:[#allocation83_spill] sm:$0xff] %v3775_v55  ;;  %v3805_v55 = vld [vmem:[#allocation8 + $0xf0] sm:$0xff]  ;;  %585 = vmatmul.f32.vlgmr.msra.gmra.mxu3 %v3256_v53  ;;  %601 = vmatpush.msrb.mxu0 %v3809_v54 }
  0xb7   : > { %5936 = vst [vmem:[#allocation84_spill] sm:$0xff] %v3779_v56  ;;  %637 = vmatpush.msrb.mxu2 %v3805_v55  ;;  %v3830_v56 = vld [vmem:[#allocation8 + $0x20] sm:$0xff] }
  0xb8   : > { %5937 = vst [vmem:[#allocation85_spill] sm:$0xff] %v3781_v57  ;;  %v3811_v57 = vld [vmem:[#allocation8 + $0x68] sm:$0xff]  ;;  %565 = vmatmul.f32.vlgmr.msra.gmra.mxu2 %v3256_v53  ;;  %v3867_v53 = vld [vmem:[#allocation8 + $0x10] sm:$0xff] }
  0xb9   : > { %5938 = vst [vmem:[#allocation86_spill] sm:$0xff] %v3785_v58  ;;  %v3813_v58 = vld [vmem:[#allocation8 + $0x78] sm:$0xff]  ;;  %621 = vmatpush.msrb.mxu1 %v3811_v57 }
  0xba   : > { %5939 = vst [vmem:[#allocation87_spill] sm:$0xff] %v3787_v59  ;;  %v3815_v59 = vld [vmem:[#allocation8 + $0xd0] sm:$0xff]  ;;  %661 = vmatpush.msrb.mxu3 %v3813_v58 }
  0xbb   : > { %5940 = vst [vmem:[#allocation88_spill] sm:$0xff] %v3791_v60  ;;  %v3820_v60 = vld [vmem:[#allocation8 + $0x48] sm:$0xff]  ;;  %638 = vmatpush.msrb.mxu2 %v3815_v59 }
  0xbc   : > { %5941 = vst [vmem:[#allocation89_spill] sm:$0xff] %v3793_v61  ;;  %v3818_v61 = vld [vmem:[#allocation8 + $0x40] sm:$0xff]  ;;  %622 = vmatpush.msrb.mxu1 %v3820_v60 }
  0xbd   : > { %5942 = vst [vmem:[#allocation90_spill] sm:$0xff] %v3797_v62  ;;  %v3826_v62 = vld [vmem:[#allocation8 + $0xb0] sm:$0xff]  ;;  %602 = vmatpush.msrb.mxu0 %v3818_v61 }
  0xbe   : > { %5943 = vst [vmem:[#allocation91_spill] sm:$0xff] %v3799_v63  ;;  %v3824_v63 = vld [vmem:[#allocation8 + $0x58] sm:$0xff]  ;;  %639 = vmatpush.msrb.mxu2 %v3826_v62 }
  0xbf   : > { %5944 = vst [vmem:[#allocation92_spill] sm:$0xff] %v3805_v55  ;;  %v3832_v55 = vld [vmem:[#allocation8 + $0x28] sm:$0xff]  ;;  %662 = vmatpush.msrb.mxu3 %v3824_v63  ;;  %603 = vmatpush.msrb.mxu0 %v3830_v56 }
  0xc0   : > { %5945 = vst [vmem:[#allocation93_spill] sm:$0xff] %v3809_v54  ;;  %v3836_v54 = vld [vmem:[#allocation8 + $0x38] sm:$0xff]  ;;  %623 = vmatpush.msrb.mxu1 %v3832_v55 }
  0xc1   : > { %5946 = vst [vmem:[#allocation94_spill] sm:$0xff] %v3811_v57  ;;  %v3838_v57 = vld [vmem:[#allocation8 + $0x90] sm:$0xff]  ;;  %663 = vmatpush.msrb.mxu3 %v3836_v54 }
  0xc2   : > { %5947 = vst [vmem:[#allocation95_spill] sm:$0xff] %v3813_v58  ;;  %v3842_v58 = vld [vmem:[#allocation8] sm:$0xff]  ;;  %640 = vmatpush.msrb.mxu2 %v3838_v57 }
  0xc3   : > { %5948 = vst [vmem:[#allocation96_spill] sm:$0xff] %v3815_v59  ;;  %v3846_v59 = vld [vmem:[#allocation8 + $0x8] sm:$0xff]  ;;  %604 = vmatpush.msrb.mxu0 %v3842_v58  ;;  %664 = vmatpush.msrb.mxu3 %v3848_v52 }
  0xc4   : > { %5949 = vst [vmem:[#allocation97_spill] sm:$0xff] %v3818_v61  ;;  %624 = vmatpush.msrb.mxu1 %v3846_v59 }
  0xc5   : > { %5950 = vst [vmem:[#allocation98_spill] sm:$0xff] %v3820_v60  ;;  %v508_v60 = vld [vmem:[%s3477_s1] sm:$0xff]  ;;  %747 = vmatpush.msra.mxu0 %v3483_v0  ;;  %807 = vmatpush.msra.mxu3 %v3487_v2 }
  0xc6   : > { %5951 = vst [vmem:[#allocation99_spill] sm:$0xff] %v3824_v63  ;;  %v3854_v63 = vld [vmem:[#allocation8 + $0x70] sm:$0xff]  ;;  %605 = vmatmul.f32.vlgmr.msrb.gmra.mxu0 %v508_v60  ;;  %625 = vmatmul.f32.vlgmr.msrb.gmra.mxu1 %v508_v60 }
  0xc7   : > { %5952 = vst [vmem:[#allocation100_spill] sm:$0xff] %v3826_v62  ;;  %641 = vmatpush.msrb.mxu2 %v3854_v63  ;;  %665 = vmatmul.f32.vlgmr.msrb.gmra.mxu3 %v508_v60 }
  0xc8   : > { %5953 = vst [vmem:[#allocation101_spill] sm:$0xff] %v3830_v56  ;;  %767 = vmatpush.msra.mxu1 %v3485_v1  ;;  %748 = vmatpush.msra.mxu0 %v3491_v3 }
  0xc9   : > { %5954 = vst [vmem:[#allocation102_spill] sm:$0xff] %v3832_v55  ;;  %v3858_v55 = vld [vmem:[#allocation8 + $0x50] sm:$0xff]  ;;  %808 = vmatpush.msra.mxu3 %v3495_v5 }
  0xca   : > { %5955 = vst [vmem:[#allocation103_spill] sm:$0xff] %v3836_v54  ;;  %v3861_v54 = vld [vmem:[#allocation8 + $0x30] sm:$0xff]  ;;  %642 = vmatpush.msrb.mxu2 %v3858_v55  ;;  %768 = vmatpush.msra.mxu1 %v3493_v4 }
  0xcb   : > { %5956 = vst [vmem:[#allocation104_spill] sm:$0xff] %v3838_v57  ;;  %749 = vmatpush.msra.mxu0 %v3498_v6  ;;  %809 = vmatpush.msra.mxu3 %v3504_v8 }
  0xcc   : > { %5957 = vst [vmem:[#allocation105_spill] sm:$0xff] %v3842_v58  ;;  %643 = vmatpush.msrb.mxu2 %v3861_v54  ;;  %769 = vmatpush.msra.mxu1 %v3500_v7 }
  0xcd   : > { %5958 = vst [vmem:[#allocation106_spill] sm:$0xff] %v3846_v59  ;;  %750 = vmatpush.msra.mxu0 %v3507_v9  ;;  %810 = vmatpush.msra.mxu3 %v3515_v12 }
  0xce   : > { %5959 = vst [vmem:[#allocation107_spill] sm:$0xff] %v3848_v52  ;;  %644 = vmatpush.msrb.mxu2 %v3867_v53  ;;  %770 = vmatpush.msra.mxu1 %v3509_v10 }
  0xcf   : > { %5960 = vst [vmem:[#allocation108_spill] sm:$0xff] %v3854_v63  ;;  %645 = vmatmul.f32.vlgmr.msrb.gmra.mxu2 %v508_v60  ;;  %751 = vmatpush.msra.mxu0 %v3521_v14  ;;  %v5964_v60 = vld [vmem:[#allocation36_spill] sm:$0xff] }
  0xd0   : > { %5961 = vst [vmem:[#allocation109_spill] sm:$0xff] %v3858_v55  ;;  %787 = vmatpush.msra.mxu2 %v3511_v11  ;;  %771 = vmatpush.msra.mxu1 %v3523_v15 }
  0xd1   : > { %5962 = vst [vmem:[#allocation110_spill] sm:$0xff] %v3861_v54  ;;  %811 = vmatpush.msra.mxu3 %v3527_v16  ;;  %752 = vmatpush.msra.mxu0 %v3533_v18 }
  0xd2   : > { %5963 = vst [vmem:[#allocation111_spill] sm:$0xff] %v3867_v53  ;;  %788 = vmatpush.msra.mxu2 %v3517_v13  ;;  %772 = vmatpush.msra.mxu1 %v3535_v19 }
  0xd3   : > { %812 = vmatpush.msra.mxu3 %v3539_v20  ;;  %753 = vmatpush.msra.mxu0 %v3545_v22 }
  0xd4   : > { %789 = vmatpush.msra.mxu2 %v3529_v17  ;;  %773 = vmatpush.msra.mxu1 %v3547_v23 }
  0xd5   : > { %813 = vmatpush.msra.mxu3 %v3551_v24  ;;  %754 = vmatpush.msra.mxu0 %v3557_v26 }
  0xd6   : > { %790 = vmatpush.msra.mxu2 %v3541_v21  ;;  %774 = vmatpush.msra.mxu1 %v3559_v27 }
  0xd7   : > { %814 = vmatpush.msra.mxu3 %v3563_v28  ;;  %755 = vmatpush.msra.mxu0 %v3569_v30 }
  0xd8   : > { %791 = vmatpush.msra.mxu2 %v3553_v25  ;;  %775 = vmatpush.msra.mxu1 %v3571_v31 }
  0xd9   : > { %815 = vmatpush.msra.mxu3 %v3575_v32  ;;  %756 = vmatpush.msra.mxu0 %v3581_v34 }
  0xda   : > { %792 = vmatpush.msra.mxu2 %v3565_v29  ;;  %776 = vmatpush.msra.mxu1 %v3583_v35 }
  0xdb   : > { %816 = vmatpush.msra.mxu3 %v3587_v36  ;;  %757 = vmatpush.msra.mxu0 %v3593_v38 }
  0xdc   : > { %793 = vmatpush.msra.mxu2 %v3577_v33  ;;  %777 = vmatpush.msra.mxu1 %v3595_v39 }
  0xdd   : > { %817 = vmatpush.msra.mxu3 %v3599_v40  ;;  %758 = vmatpush.msra.mxu0 %v3605_v42  ;;  %v5965_v42 = vld [vmem:[#allocation38_spill] sm:$0xff] }
  0xde   : > { %794 = vmatpush.msra.mxu2 %v3589_v37  ;;  %778 = vmatpush.msra.mxu1 %v3607_v43  ;;  %v5966_v43 = vld [vmem:[#allocation37_spill] sm:$0xff]  ;;  %v5969_v40 = vld [vmem:[#allocation42_spill] sm:$0xff] }
  0xdf   : > { %818 = vmatpush.msra.mxu3 %v3611_v44  ;;  %759 = vmatpush.msra.mxu0 %v3617_v46  ;;  %v5967_v44 = vld [vmem:[#allocation39_spill] sm:$0xff]  ;;  %v5968_v46 = vld [vmem:[#allocation40_spill] sm:$0xff] }
  0xe0   : > { %795 = vmatpush.msra.mxu2 %v3601_v41  ;;  %779 = vmatpush.msra.mxu1 %v3619_v47  ;;  %v5970_v47 = vld [vmem:[#allocation41_spill] sm:$0xff] }
  0xe1   : > { %819 = vmatpush.msra.mxu3 %v3623_v48  ;;  %760 = vmatpush.msra.mxu0 %v3629_v50  ;;  %v5971_v48 = vld [vmem:[#allocation43_spill] sm:$0xff]  ;;  %v5972_v50 = vld [vmem:[#allocation44_spill] sm:$0xff] }
  0xe2   : > { %796 = vmatpush.msra.mxu2 %v3613_v45  ;;  %780 = vmatpush.msra.mxu1 %v3631_v51  ;;  %v5974_v51 = vld [vmem:[#allocation48_spill] sm:$0xff] }
  0xe3   : > { %820 = vmatpush.msra.mxu3 %v5964_v60  ;;  %761 = vmatpush.msra.mxu0 %v5965_v42  ;;  %v5975_v60 = vld [vmem:[#allocation46_spill] sm:$0xff]  ;;  %v5976_v42 = vld [vmem:[#allocation47_spill] sm:$0xff] }
  0xe4   : > { %797 = vmatpush.msra.mxu2 %v3625_v49  ;;  %781 = vmatpush.msra.mxu1 %v5967_v44  ;;  %v5973_v49 = vld [vmem:[#allocation45_spill] sm:$0xff]  ;;  %v5978_v44 = vld [vmem:[#allocation52_spill] sm:$0xff] }
  0xe5   : > { %821 = vmatpush.msra.mxu3 %v5968_v46  ;;  %762 = vmatpush.msra.mxu0 %v5969_v40  ;;  %v5979_v46 = vld [vmem:[#allocation50_spill] sm:$0xff]  ;;  %v5980_v40 = vld [vmem:[#allocation51_spill] sm:$0xff] }
  0xe6   : > { %798 = vmatpush.msra.mxu2 %v5966_v43  ;;  %782 = vmatpush.msra.mxu1 %v5971_v48  ;;  %v5977_v43 = vld [vmem:[#allocation49_spill] sm:$0xff]  ;;  %v5982_v48 = vld [vmem:[#allocation56_spill] sm:$0xff] }
  0xe7   : > { %822 = vmatpush.msra.mxu3 %v5972_v50  ;;  %827 = vmatpush.msrb.mxu0 %v5973_v49  ;;  %v5983_v50 = vld [vmem:[#allocation54_spill] sm:$0xff]  ;;  %v5984_v49 = vld [vmem:[#allocation60_spill] sm:$0xff] }
  0xe8   : > { %799 = vmatpush.msra.mxu2 %v5970_v47  ;;  %847 = vmatpush.msrb.mxu1 %v5975_v60  ;;  %v5981_v47 = vld [vmem:[#allocation53_spill] sm:$0xff] }
  0xe9   : > { %887 = vmatpush.msrb.mxu3 %v5976_v42  ;;  %828 = vmatpush.msrb.mxu0 %v5977_v43  ;;  %v5986_v60 = vld [vmem:[#allocation57_spill] sm:$0xff]  ;;  %v5987_v42 = vld [vmem:[#allocation58_spill] sm:$0xff]  ;;  %v5988_v43 = vld [vmem:[#allocation64_spill] sm:$0xff] }
  0xea   : > { %800 = vmatpush.msra.mxu2 %v5974_v51  ;;  %848 = vmatpush.msrb.mxu1 %v5979_v46  ;;  %v5985_v51 = vld [vmem:[#allocation55_spill] sm:$0xff]  ;;  %v5990_v46 = vld [vmem:[#allocation61_spill] sm:$0xff] }
  0xeb   : > { %888 = vmatpush.msrb.mxu3 %v5980_v40  ;;  %829 = vmatpush.msrb.mxu0 %v5981_v47  ;;  %v5991_v40 = vld [vmem:[#allocation62_spill] sm:$0xff]  ;;  %v5992_v47 = vld [vmem:[#allocation68_spill] sm:$0xff] }
  0xec   : > { %801 = vmatpush.msra.mxu2 %v5978_v44  ;;  %849 = vmatpush.msrb.mxu1 %v5983_v50  ;;  %v5989_v44 = vld [vmem:[#allocation59_spill] sm:$0xff]  ;;  %v5994_v50 = vld [vmem:[#allocation65_spill] sm:$0xff] }
  0xed   : > { %889 = vmatpush.msrb.mxu3 %v5985_v51  ;;  %830 = vmatpush.msrb.mxu0 %v5986_v60  ;;  %v5996_v51 = vld [vmem:[#allocation72_spill] sm:$0xff]  ;;  %v5997_v60 = vld [vmem:[#allocation67_spill] sm:$0xff] }
  0xee   : > { %802 = vmatpush.msra.mxu2 %v5982_v48  ;;  %850 = vmatpush.msrb.mxu1 %v5987_v42  ;;  %v5993_v48 = vld [vmem:[#allocation63_spill] sm:$0xff]  ;;  %v5998_v42 = vld [vmem:[#allocation69_spill] sm:$0xff] }
  0xef   : > { %890 = vmatpush.msrb.mxu3 %v5989_v44  ;;  %831 = vmatpush.msrb.mxu0 %v5990_v46  ;;  %v6000_v44 = vld [vmem:[#allocation76_spill] sm:$0xff]  ;;  %v6001_v46 = vld [vmem:[#allocation71_spill] sm:$0xff] }
  0xf0   : > { %867 = vmatpush.msrb.mxu2 %v5984_v49  ;;  %851 = vmatpush.msrb.mxu1 %v5991_v40  ;;  %v5995_v49 = vld [vmem:[#allocation66_spill] sm:$0xff]  ;;  %v6002_v40 = vld [vmem:[#allocation73_spill] sm:$0xff] }
  0xf1   : > { %891 = vmatpush.msrb.mxu3 %v5993_v48  ;;  %832 = vmatpush.msrb.mxu0 %v5994_v50  ;;  %v6004_v48 = vld [vmem:[#allocation80_spill] sm:$0xff]  ;;  %v6005_v50 = vld [vmem:[#allocation75_spill] sm:$0xff] }
  0xf2   : > { %868 = vmatpush.msrb.mxu2 %v5988_v43  ;;  %852 = vmatpush.msrb.mxu1 %v5995_v49  ;;  %v5999_v43 = vld [vmem:[#allocation70_spill] sm:$0xff]  ;;  %v6006_v49 = vld [vmem:[#allocation77_spill] sm:$0xff] }
  0xf3   : > { %892 = vmatpush.msrb.mxu3 %v5997_v60  ;;  %833 = vmatpush.msrb.mxu0 %v5998_v42  ;;  %v6008_v60 = vld [vmem:[#allocation84_spill] sm:$0xff]  ;;  %v6009_v42 = vld [vmem:[#allocation79_spill] sm:$0xff] }
  0xf4   : > { %869 = vmatpush.msrb.mxu2 %v5992_v47  ;;  %853 = vmatpush.msrb.mxu1 %v5999_v43  ;;  %v6003_v47 = vld [vmem:[#allocation74_spill] sm:$0xff]  ;;  %v6010_v43 = vld [vmem:[#allocation81_spill] sm:$0xff] }
  0xf5   : > { %893 = vmatpush.msrb.mxu3 %v6001_v46  ;;  %834 = vmatpush.msrb.mxu0 %v6002_v40  ;;  %v6012_v46 = vld [vmem:[#allocation88_spill] sm:$0xff]  ;;  %v6013_v40 = vld [vmem:[#allocation83_spill] sm:$0xff] }
  0xf6   : > { %870 = vmatpush.msrb.mxu2 %v5996_v51  ;;  %854 = vmatpush.msrb.mxu1 %v6003_v47  ;;  %v6007_v51 = vld [vmem:[#allocation78_spill] sm:$0xff]  ;;  %v6014_v47 = vld [vmem:[#allocation85_spill] sm:$0xff] }
  0xf7   : > { %894 = vmatpush.msrb.mxu3 %v6005_v50  ;;  %835 = vmatpush.msrb.mxu0 %v6006_v49  ;;  %v6016_v50 = vld [vmem:[#allocation92_spill] sm:$0xff]  ;;  %v6017_v49 = vld [vmem:[#allocation87_spill] sm:$0xff] }
  0xf8   : > { %871 = vmatpush.msrb.mxu2 %v6000_v44  ;;  %855 = vmatpush.msrb.mxu1 %v6007_v51  ;;  %v6011_v44 = vld [vmem:[#allocation82_spill] sm:$0xff]  ;;  %v6018_v51 = vld [vmem:[#allocation89_spill] sm:$0xff] }
  0xf9   : > { %895 = vmatpush.msrb.mxu3 %v6009_v42  ;;  %836 = vmatpush.msrb.mxu0 %v6010_v43  ;;  %v6020_v42 = vld [vmem:[#allocation96_spill] sm:$0xff]  ;;  %v6021_v43 = vld [vmem:[#allocation91_spill] sm:$0xff] }
  0xfa   : > { %872 = vmatpush.msrb.mxu2 %v6004_v48  ;;  %856 = vmatpush.msrb.mxu1 %v6011_v44  ;;  %v6015_v48 = vld [vmem:[#allocation86_spill] sm:$0xff]  ;;  %v6022_v44 = vld [vmem:[#allocation93_spill] sm:$0xff] }
  0xfb   : > { %896 = vmatpush.msrb.mxu3 %v6013_v40  ;;  %837 = vmatpush.msrb.mxu0 %v6014_v47  ;;  %v6024_v47 = vld [vmem:[#allocation95_spill] sm:$0xff] }
  0xfc   : > { %873 = vmatpush.msrb.mxu2 %v6008_v60  ;;  %857 = vmatpush.msrb.mxu1 %v6015_v48  ;;  %v6019_v60 = vld [vmem:[#allocation90_spill] sm:$0xff] }
  0xfd   : > { %897 = vmatpush.msrb.mxu3 %v6017_v49  ;;  %838 = vmatpush.msrb.mxu0 %v6018_v51  ;;  %v6025_v48 = vld [vmem:[#allocation98_spill] sm:$0xff]  ;;  %v6026_v51 = vld [vmem:[#allocation99_spill] sm:$0xff] }
  0xfe   : > { %874 = vmatpush.msrb.mxu2 %v6012_v46  ;;  %858 = vmatpush.msrb.mxu1 %v6019_v60  ;;  %v6023_v46 = vld [vmem:[#allocation94_spill] sm:$0xff] }
  0xff   : > { %898 = vmatpush.msrb.mxu3 %v6021_v43  ;;  %839 = vmatpush.msrb.mxu0 %v6022_v44  ;;  %v6027_v60 = vld [vmem:[#allocation102_spill] sm:$0xff]  ;;  %v6028_v44 = vld [vmem:[#allocation103_spill] sm:$0xff] }
 0x100   : > { %875 = vmatpush.msrb.mxu2 %v6016_v50  ;;  %859 = vmatpush.msrb.mxu1 %v6023_v46 }
 0x101   : > { %899 = vmatpush.msrb.mxu3 %v6024_v47  ;;  %840 = vmatpush.msrb.mxu0 %v3818_v61 }
 0x102   : > { %876 = vmatpush.msrb.mxu2 %v6020_v42  ;;  %860 = vmatpush.msrb.mxu1 %v6025_v48 }
 0x103   : > { %900 = vmatpush.msrb.mxu3 %v6026_v51  ;;  %841 = vmatpush.msrb.mxu0 %v3830_v56 }
 0x104   : > { %877 = vmatpush.msrb.mxu2 %v3826_v62  ;;  %861 = vmatpush.msrb.mxu1 %v6027_v60  ;;  %v507_v60 = vld [vmem:[%s5396_s5] sm:$0xf] }
 0x105   : > { %901 = vmatpush.msrb.mxu3 %v6028_v44  ;;  %842 = vmatpush.msrb.mxu0 %v3842_v58  ;;  %v3999_v44 = vperm.slane %v507_v60, 0  ;;  %v4001_v58 = vperm.slane %v507_v60, 1  ;;  %v4005_v43 = vperm.slane %v507_v60, 3 }
 0x106   : > { %878 = vmatpush.msrb.mxu2 %v3838_v57  ;;  %862 = vmatpush.msrb.mxu1 %v3846_v59 }
 0x107   : > { %902 = vmatpush.msrb.mxu3 %v3848_v52  ;;  %6029 = vst [vmem:[#allocation112_spill] sm:$0xff] %v3999_v44 }
 0x108   : > { %879 = vmatpush.msrb.mxu2 %v3854_v63  ;;  %6030 = vst [vmem:[#allocation113_spill] sm:$0xff] %v4001_v58 }
 0x109   : > { %6031 = vst [vmem:[#allocation114_spill] sm:$0xff] %v4005_v43 }
 0x10a   : > { %880 = vmatpush.msrb.mxu2 %v3858_v55 }
 0x10c   : > { %881 = vmatpush.msrb.mxu2 %v3861_v54 }
 0x10e   : > { %882 = vmatpush.msrb.mxu2 %v3867_v53 }
 0x132   : > { %v526_v51 = vpop.f32.mrf.mxu0  ;;  %v546_v56 = vpop.f32.mrf.mxu1 }
 0x139   : > { %v586_v48 = vpop.f32.mrf.mxu3 }
 0x13b   : > { %v566_v46 = vpop.f32.mrf.mxu2 }
 0x143   : > { %v606_v59 = vpop.f32.mrf.mxu0  ;;  %v626_v61 = vpop.f32.mrf.mxu1 }
 0x144   : > { %v607_v55 = vadd.f32 %v606_v59, %v526_v51  ;;  %v627_v47 = vadd.f32 %v626_v61, %v546_v56 }
 0x146   : > { %v678_v52 = vadd.f32 %v3999_v44, %v607_v55  ;;  %v679_v54 = vadd.f32 %v4001_v58, %v627_v47 }
 0x148   : > { %v2521_v53 = vmul.f32 -1.442695, %v678_v52  ;;  %v2522_v63 = vmul.f32 -1.442695, %v679_v54  ;;  %v4008_v52 = vperm.slane %v507_v60, 2 }
 0x14a   : > { %2639 = vpow2.f32 %v2521_v53  ;;  %v666_v57 = vpop.f32.mrf.mxu3  ;;  %6032 = vst [vmem:[#allocation115_spill] sm:$0xff] %v4008_v52 }
 0x14b   : > { %2641 = vpow2.f32 %v2522_v63  ;;  %v667_v49 = vadd.f32 %v666_v57, %v586_v48 }
 0x14d   : > { %v681_v62 = vadd.f32 %v4005_v43, %v667_v49 }
 0x14f   : > { %v2523_v40 = vmul.f32 -1.442695, %v681_v62 }
 0x150   : > { %v2640_v42 = vpop.eup %2639 }
 0x151   : > { %v2642_v50 = vpop.eup %2641  ;;  %v685_v51 = vadd.f32 1.0, %v2640_v42  ;;  %2643 = vpow2.f32 %v2523_v40 }
 0x152   : > { %v704_v56 = vadd.f32 1.0, %v2642_v50  ;;  %v646_v55 = vpop.f32.mrf.mxu2 }
 0x153   : > { %2645 = vrcp.f32 %v685_v51  ;;  %v647_v47 = vadd.f32 %v646_v55, %v566_v46  ;;  %v697_v42 = vand.u32 2147483648, %v685_v51  ;;  %v695_v43 = vand.u32 2147483647, %v685_v51 }
 0x154   : > { %2647 = vrcp.f32 %v704_v56  ;;  %v716_v40 = vand.u32 2147483648, %v704_v56  ;;  %v714_v60 = vand.u32 2147483647, %v704_v56  ;;  %vm691_vm2 = vweird.f32 %v685_v51 }
 0x155   : > { %v680_v63 = vadd.f32 %v4008_v52, %v647_v47  ;;  %vm710_vm3 = vweird.f32 %v704_v56  ;;  %v698_v52 = vor.u32 1.1754944e-38, %v697_v42  ;;  %vm696_vm5 = vcmp.eq.f32.partialorder %v695_v43, 8.507059e+37 }
 0x156   : > { %v717_v44 = vor.u32 1.1754944e-38, %v716_v40  ;;  %vm715_vm7 = vcmp.eq.f32.partialorder %v714_v60, 8.507059e+37  ;;  %v6076_v40 = vld [vmem:[#allocation62_spill] sm:$0xff]  ;;  %v6078_v60 = vld [vmem:[#allocation63_spill] sm:$0xff] }
 0x157   : > { %v2644_v54 = vpop.eup %2643 }
 0x158   : > { %v724_v59 = vadd.f32 1.0, %v2644_v54 }
 0x159   : > { %v2646_v61 = vpop.eup %2645 }
 0x15a   : > { %v2648_v48 = vpop.eup %2647  ;;  %v687_v57 = vmul.f32 %v2646_v61, %v685_v51  ;;  %2649 = vrcp.f32 %v724_v59  ;;  %vm692_vm0 = vweird.f32 %v2646_v61  ;;  %vm730_vm9 = vweird.f32 %v724_v59 }
 0x15b   : > { %v706_v49 = vmul.f32 %v2648_v48, %v704_v56  ;;  %2651 = vtanh.f32 %v680_v63  ;;  %vm711_vm1 = vweird.f32 %v2648_v48  ;;  %vm693_vm4 = vmor %vm691_vm2, %vm692_vm0  ;;  %v736_v56 = vand.u32 2147483648, %v724_v59 }
 0x15c   : > { %v688_v62 = vsub.f32 1.0, %v687_v57  ;;  %vm712_vm6 = vmor %vm710_vm3, %vm711_vm1 }
 0x15d   : > { %v707_v53 = vsub.f32 1.0, %v706_v49  ;;  %v737_v42 = vor.u32 1.1754944e-38, %v736_v56  ;;  %v6088_v56 = vld [vmem:[#allocation74_spill] sm:$0xff] }
 0x15e   : > { %v689_v50 = vmul.f32 %v2646_v61, %v688_v62 }
 0x15f   : > { %v708_v46 = vmul.f32 %v2648_v48, %v707_v53 }
 0x160   : > { %v2650_v55 = vpop.eup %2649  ;;  %v690_v54 = vadd.f32 %v2646_v61, %v689_v50 }
 0x161   : > { %v726_v47 = vmul.f32 %v2650_v55, %v724_v59  ;;  %v709_v58 = vadd.f32 %v2648_v48, %v708_v46  ;;  %v2652_v63 = vpop.eup %2651  ;;  %vm731_vm8 = vweird.f32 %v2650_v55  ;;  %v6077_v46 = vld [vmem:[#allocation76_spill] sm:$0xff] }
 0x162   : > { %v694_v57 = vsel %vm693_vm4, %v2646_v61, %v690_v54  ;;  %v734_v61 = vand.u32 2147483647, %v724_v59  ;;  %vm732_vm10 = vmor %vm730_vm9, %vm731_vm8  ;;  %v6074_v59 = vld [vmem:[#allocation59_spill] sm:$0xff]  ;;  %v6080_v54 = vld [vmem:[#allocation66_spill] sm:$0xff] }
 0x163   : > { %v727_v49 = vsub.f32 1.0, %v726_v47  ;;  %v699_v62 = vsel %vm696_vm5, %v698_v52, %v694_v57  ;;  %v713_v39 = vsel %vm712_vm6, %v2648_v48, %v709_v58  ;;  %v6075_v48 = vld [vmem:[#allocation61_spill] sm:$0xff]  ;;  %v6081_v47 = vld [vmem:[#allocation80_spill] sm:$0xff]  ;;  %v6082_v57 = vld [vmem:[#allocation67_spill] sm:$0xff] }
 0x164   : > { %v718_v53 = vsel %vm715_vm7, %v717_v44, %v713_v39  ;;  %v741_v38 = vmul.f32 %v2652_v63, %v699_v62  ;;  %vm735_vm11 = vcmp.eq.f32.partialorder %v734_v61, 8.507059e+37  ;;  %v6072_v44 = vld [vmem:[#allocation58_spill] sm:$0xff]  ;;  %v6083_v63 = vld [vmem:[#allocation69_spill] sm:$0xff]  ;;  %v6085_v62 = vld [vmem:[#allocation84_spill] sm:$0xff] }
 0x165   : > { %v740_v36 = vmul.f32 0.0, %v718_v53  ;;  %v728_v45 = vmul.f32 %v2650_v55, %v727_v49  ;;  %v6084_v49 = vld [vmem:[#allocation70_spill] sm:$0xff]  ;;  %v6086_v53 = vld [vmem:[#allocation71_spill] sm:$0xff]  ;;  %v6089_v61 = vld [vmem:[#allocation88_spill] sm:$0xff] }
 0x167   : > { %v4011_v50 = vadd.f32 %v741_v38, %v740_v36  ;;  %v729_v51 = vadd.f32 %v2650_v55, %v728_v45  ;;  %v2524_v36 = vld [vmem:[%s3477_s1 + $0x8] sm:$0xff]  ;;  %v6070_v38 = vld [vmem:[#allocation55_spill] sm:$0xff]  ;;  %v6073_v45 = vld [vmem:[#allocation72_spill] sm:$0xff] }
 0x169   : > { %2653 = vtanh.f32 %v4011_v50  ;;  %v733_v43 = vsel %vm732_vm10, %v2650_v55, %v729_v51  ;;  %v6079_v55 = vld [vmem:[#allocation65_spill] sm:$0xff] }
 0x16a   : > { %v738_v52 = vsel %vm735_vm11, %v737_v42, %v733_v43  ;;  %v6087_v51 = vld [vmem:[#allocation73_spill] sm:$0xff]  ;;  %v6090_v43 = vld [vmem:[#allocation75_spill] sm:$0xff] }
 0x16b   : > { %v6091_v42 = vld [vmem:[#allocation77_spill] sm:$0xff] }
 0x16f   : > { %v2654_v58 = vpop.eup %2653 }
 0x170   : > { %v744_v39 = vmul.f32 %v2654_v58, %v738_v52  ;;  %v6092_v58 = vld [vmem:[#allocation78_spill] sm:$0xff]  ;;  %v6093_v52 = vld [vmem:[#allocation92_spill] sm:$0xff] }
 0x172   : > { %763 = vmatmul.f32.vlgmr.msra.gmra.mxu0 %v744_v39  ;;  %783 = vmatmul.f32.vlgmr.msra.gmra.mxu1 %v744_v39 }
 0x173   : > { %803 = vmatmul.f32.vlgmr.msra.gmra.mxu2 %v744_v39  ;;  %823 = vmatmul.f32.vlgmr.msra.gmra.mxu3 %v744_v39  ;;  %v6094_v39 = vld [vmem:[#allocation79_spill] sm:$0xff] }
 0x174   : > { %976 = vmatpush.msra.mxu0 %v3483_v0  ;;  %996 = vmatpush.msra.mxu1 %v3485_v1  ;;  %v6033_v0 = vld [vmem:[#allocation29_spill] sm:$0xff]  ;;  %v6034_v1 = vld [vmem:[#allocation22_spill] sm:$0xff] }
 0x175   : > { %1016 = vmatpush.msra.mxu2 %v3511_v11  ;;  %1036 = vmatpush.msra.mxu3 %v3487_v2  ;;  %v6035_v2 = vld [vmem:[#allocation23_spill] sm:$0xff] }
 0x176   : > { %977 = vmatpush.msra.mxu0 %v3491_v3  ;;  %997 = vmatpush.msra.mxu1 %v3493_v4  ;;  %v6036_v3 = vld [vmem:[#allocation24_spill] sm:$0xff]  ;;  %v6037_v4 = vld [vmem:[#allocation33_spill] sm:$0xff]  ;;  %v6044_v11 = vld [vmem:[#allocation31_spill] sm:$0xff] }
 0x177   : > { %1017 = vmatpush.msra.mxu2 %v3517_v13  ;;  %1037 = vmatpush.msra.mxu3 %v3495_v5  ;;  %v6038_v5 = vld [vmem:[#allocation25_spill] sm:$0xff]  ;;  %v6046_v13 = vld [vmem:[#allocation32_spill] sm:$0xff] }
 0x178   : > { %978 = vmatpush.msra.mxu0 %v3498_v6  ;;  %998 = vmatpush.msra.mxu1 %v3500_v7  ;;  %v6039_v6 = vld [vmem:[#allocation26_spill] sm:$0xff]  ;;  %v6040_v7 = vld [vmem:[#allocation27_spill] sm:$0xff] }
 0x179   : > { %1018 = vmatpush.msra.mxu2 %v3529_v17  ;;  %1038 = vmatpush.msra.mxu3 %v3504_v8  ;;  %v6041_v8 = vld [vmem:[#allocation37_spill] sm:$0xff]  ;;  %v6050_v17 = vld [vmem:[#allocation36_spill] sm:$0xff] }
 0x17a   : > { %843 = vmatmul.f32.vlgmr.msrb.gmra.mxu0 %v2524_v36  ;;  %863 = vmatmul.f32.vlgmr.msrb.gmra.mxu1 %v2524_v36 }
 0x17b   : > { %883 = vmatmul.f32.vlgmr.msrb.gmra.mxu2 %v2524_v36  ;;  %903 = vmatmul.f32.vlgmr.msrb.gmra.mxu3 %v2524_v36  ;;  %v6095_v36 = vld [vmem:[#allocation81_spill] sm:$0xff] }
 0x17c   : > { %979 = vmatpush.msra.mxu0 %v3507_v9  ;;  %999 = vmatpush.msra.mxu1 %v3509_v10  ;;  %v6042_v9 = vld [vmem:[#allocation28_spill] sm:$0xff]  ;;  %v6043_v10 = vld [vmem:[#allocation30_spill] sm:$0xff] }
 0x17d   : > { %1019 = vmatpush.msra.mxu2 %v3541_v21  ;;  %1039 = vmatpush.msra.mxu3 %v3515_v12  ;;  %v6045_v12 = vld [vmem:[#allocation41_spill] sm:$0xff]  ;;  %v6054_v21 = vld [vmem:[#allocation40_spill] sm:$0xff] }
 0x17e   : > { %980 = vmatpush.msra.mxu0 %v3521_v14  ;;  %1000 = vmatpush.msra.mxu1 %v3523_v15  ;;  %v6047_v14 = vld [vmem:[#allocation34_spill] sm:$0xff]  ;;  %v6048_v15 = vld [vmem:[#allocation35_spill] sm:$0xff] }
 0x17f   : > { %1020 = vmatpush.msra.mxu2 %v3553_v25  ;;  %1040 = vmatpush.msra.mxu3 %v3527_v16  ;;  %v6049_v16 = vld [vmem:[#allocation48_spill] sm:$0xff] }
 0x180   : > { %981 = vmatpush.msra.mxu0 %v3533_v18  ;;  %1001 = vmatpush.msra.mxu1 %v3535_v19  ;;  %v6051_v18 = vld [vmem:[#allocation38_spill] sm:$0xff]  ;;  %v6052_v19 = vld [vmem:[#allocation39_spill] sm:$0xff]  ;;  %v6058_v25 = vld [vmem:[#allocation44_spill] sm:$0xff] }
 0x181   : > { %1021 = vmatpush.msra.mxu2 %v3565_v29  ;;  %1041 = vmatpush.msra.mxu3 %v3539_v20  ;;  %v6053_v20 = vld [vmem:[#allocation52_spill] sm:$0xff]  ;;  %v6062_v29 = vld [vmem:[#allocation47_spill] sm:$0xff] }
 0x182   : > { %982 = vmatpush.msra.mxu0 %v3545_v22  ;;  %1002 = vmatpush.msra.mxu1 %v3547_v23  ;;  %v6055_v22 = vld [vmem:[#allocation42_spill] sm:$0xff]  ;;  %v6056_v23 = vld [vmem:[#allocation43_spill] sm:$0xff] }
 0x183   : > { %1022 = vmatpush.msra.mxu2 %v3577_v33  ;;  %1042 = vmatpush.msra.mxu3 %v3551_v24  ;;  %v6057_v24 = vld [vmem:[#allocation56_spill] sm:$0xff]  ;;  %v6066_v33 = vld [vmem:[#allocation51_spill] sm:$0xff] }
 0x184   : > { %983 = vmatpush.msra.mxu0 %v3557_v26  ;;  %1003 = vmatpush.msra.mxu1 %v3559_v27  ;;  %v6059_v26 = vld [vmem:[#allocation45_spill] sm:$0xff]  ;;  %v6060_v27 = vld [vmem:[#allocation46_spill] sm:$0xff] }
 0x185   : > { %1023 = vmatpush.msra.mxu2 %v3589_v37  ;;  %1043 = vmatpush.msra.mxu3 %v3563_v28  ;;  %v6061_v28 = vld [vmem:[#allocation60_spill] sm:$0xff] }
 0x186   : > { %984 = vmatpush.msra.mxu0 %v3569_v30  ;;  %1004 = vmatpush.msra.mxu1 %v3571_v31  ;;  %v6063_v30 = vld [vmem:[#allocation49_spill] sm:$0xff]  ;;  %v6064_v31 = vld [vmem:[#allocation50_spill] sm:$0xff]  ;;  %v6069_v37 = vld [vmem:[#allocation68_spill] sm:$0xff] }
 0x187   : > { %1024 = vmatpush.msra.mxu2 %v3601_v41  ;;  %1044 = vmatpush.msra.mxu3 %v3575_v32  ;;  %v6065_v32 = vld [vmem:[#allocation64_spill] sm:$0xff]  ;;  %v6071_v41 = vld [vmem:[#allocation57_spill] sm:$0xff] }
 0x188   : > { %985 = vmatpush.msra.mxu0 %v3581_v34  ;;  %1005 = vmatpush.msra.mxu1 %v3583_v35  ;;  %v6067_v34 = vld [vmem:[#allocation53_spill] sm:$0xff]  ;;  %v6068_v35 = vld [vmem:[#allocation54_spill] sm:$0xff] }
 0x189   : > { %1025 = vmatpush.msra.mxu2 %v6033_v0  ;;  %1045 = vmatpush.msra.mxu3 %v6034_v1  ;;  %v6096_v0 = vld [vmem:[#allocation82_spill] sm:$0xff]  ;;  %v6097_v1 = vld [vmem:[#allocation96_spill] sm:$0xff] }
 0x18a   : > { %986 = vmatpush.msra.mxu0 %v6035_v2  ;;  %1006 = vmatpush.msra.mxu1 %v6036_v3  ;;  %v6098_v2 = vld [vmem:[#allocation83_spill] sm:$0xff]  ;;  %v6099_v3 = vld [vmem:[#allocation85_spill] sm:$0xff] }
 0x18b   : > { %1026 = vmatpush.msra.mxu2 %v6037_v4  ;;  %1046 = vmatpush.msra.mxu3 %v6038_v5  ;;  %v6100_v4 = vld [vmem:[#allocation86_spill] sm:$0xff]  ;;  %v6101_v5 = vld [vmem:[#allocation100_spill] sm:$0xff] }
 0x18c   : > { %987 = vmatpush.msra.mxu0 %v6039_v6  ;;  %1007 = vmatpush.msra.mxu1 %v6040_v7  ;;  %v6102_v6 = vld [vmem:[#allocation87_spill] sm:$0xff]  ;;  %v6103_v7 = vld [vmem:[#allocation89_spill] sm:$0xff] }
 0x18d   : > { %1027 = vmatpush.msra.mxu2 %v6041_v8  ;;  %1047 = vmatpush.msra.mxu3 %v6042_v9  ;;  %v6104_v8 = vld [vmem:[#allocation90_spill] sm:$0xff]  ;;  %v6105_v9 = vld [vmem:[#allocation104_spill] sm:$0xff] }
 0x18e   : > { %988 = vmatpush.msra.mxu0 %v6043_v10  ;;  %1008 = vmatpush.msra.mxu1 %v6044_v11  ;;  %v6106_v10 = vld [vmem:[#allocation91_spill] sm:$0xff]  ;;  %v6107_v11 = vld [vmem:[#allocation93_spill] sm:$0xff] }
 0x18f   : > { %1028 = vmatpush.msra.mxu2 %v6045_v12  ;;  %1048 = vmatpush.msra.mxu3 %v6046_v13  ;;  %v6108_v12 = vld [vmem:[#allocation94_spill] sm:$0xff]  ;;  %v6109_v13 = vld [vmem:[#allocation108_spill] sm:$0xff] }
 0x190   : > { %989 = vmatpush.msra.mxu0 %v6047_v14  ;;  %1009 = vmatpush.msra.mxu1 %v6048_v15  ;;  %v6110_v14 = vld [vmem:[#allocation95_spill] sm:$0xff]  ;;  %v6111_v15 = vld [vmem:[#allocation97_spill] sm:$0xff] }
 0x191   : > { %1029 = vmatpush.msra.mxu2 %v6049_v16  ;;  %1049 = vmatpush.msra.mxu3 %v6050_v17  ;;  %v6112_v16 = vld [vmem:[#allocation98_spill] sm:$0xff]  ;;  %v6113_v17 = vld [vmem:[#allocation109_spill] sm:$0xff] }
 0x192   : > { %990 = vmatpush.msra.mxu0 %v6051_v18  ;;  %1010 = vmatpush.msra.mxu1 %v6052_v19  ;;  %v6114_v18 = vld [vmem:[#allocation99_spill] sm:$0xff]  ;;  %v6115_v19 = vld [vmem:[#allocation101_spill] sm:$0xff] }
 0x193   : > { %1030 = vmatpush.msra.mxu2 %v6053_v20  ;;  %1050 = vmatpush.msra.mxu3 %v6054_v21  ;;  %v6116_v20 = vld [vmem:[#allocation102_spill] sm:$0xff] }
 0x194   : > { %991 = vmatpush.msra.mxu0 %v6055_v22  ;;  %1011 = vmatpush.msra.mxu1 %v6056_v23  ;;  %v6117_v21 = vld [vmem:[#allocation110_spill] sm:$0xff]  ;;  %v6118_v22 = vld [vmem:[#allocation103_spill] sm:$0xff]  ;;  %v6119_v23 = vld [vmem:[#allocation105_spill] sm:$0xff] }
 0x195   : > { %1031 = vmatpush.msra.mxu2 %v6057_v24  ;;  %1051 = vmatpush.msra.mxu3 %v6058_v25  ;;  %v6120_v24 = vld [vmem:[#allocation106_spill] sm:$0xff]  ;;  %v6121_v25 = vld [vmem:[#allocation111_spill] sm:$0xff] }
 0x196   : > { %1056 = vmatpush.msrb.mxu0 %v6059_v26  ;;  %1076 = vmatpush.msrb.mxu1 %v6060_v27  ;;  %v6122_v26 = vld [vmem:[#allocation107_spill] sm:$0xff] }
 0x197   : > { %1096 = vmatpush.msrb.mxu2 %v6061_v28  ;;  %1116 = vmatpush.msrb.mxu3 %v6062_v29 }
 0x198   : > { %1057 = vmatpush.msrb.mxu0 %v6063_v30  ;;  %1077 = vmatpush.msrb.mxu1 %v6064_v31 }
 0x199   : > { %1097 = vmatpush.msrb.mxu2 %v6065_v32  ;;  %1117 = vmatpush.msrb.mxu3 %v6066_v33 }
 0x19a   : > { %1058 = vmatpush.msrb.mxu0 %v6067_v34  ;;  %1078 = vmatpush.msrb.mxu1 %v6068_v35  ;;  %v6123_v34 = vld [vmem:[#allocation112_spill] sm:$0xff] }
 0x19b   : > { %1098 = vmatpush.msrb.mxu2 %v6069_v37  ;;  %1118 = vmatpush.msrb.mxu3 %v6070_v38  ;;  %v6124_v37 = vld [vmem:[#allocation113_spill] sm:$0xff] }
 0x19c   : > { %1059 = vmatpush.msrb.mxu0 %v6071_v41  ;;  %1079 = vmatpush.msrb.mxu1 %v6072_v44 }
 0x19d   : > { %1099 = vmatpush.msrb.mxu2 %v6073_v45  ;;  %1119 = vmatpush.msrb.mxu3 %v6074_v59 }
 0x19e   : > { %1060 = vmatpush.msrb.mxu0 %v6075_v48  ;;  %1080 = vmatpush.msrb.mxu1 %v6076_v40  ;;  %v6125_v40 = vld [vmem:[#allocation114_spill] sm:$0xff] }
 0x19f   : > { %1100 = vmatpush.msrb.mxu2 %v6077_v46  ;;  %1120 = vmatpush.msrb.mxu3 %v6078_v60 }
 0x1a0   : > { %1061 = vmatpush.msrb.mxu0 %v6079_v55  ;;  %1081 = vmatpush.msrb.mxu1 %v6080_v54 }
 0x1a1   : > { %1101 = vmatpush.msrb.mxu2 %v6081_v47  ;;  %1121 = vmatpush.msrb.mxu3 %v6082_v57 }
 0x1a2   : > { %1062 = vmatpush.msrb.mxu0 %v6083_v63  ;;  %1082 = vmatpush.msrb.mxu1 %v6084_v49 }
 0x1a3   : > { %1102 = vmatpush.msrb.mxu2 %v6085_v62  ;;  %1122 = vmatpush.msrb.mxu3 %v6086_v53 }
 0x1a4   : > { %1063 = vmatpush.msrb.mxu0 %v6087_v51  ;;  %1083 = vmatpush.msrb.mxu1 %v6088_v56  ;;  %v6126_v56 = vld [vmem:[#allocation115_spill] sm:$0xff] }
 0x1a5   : > { %1103 = vmatpush.msrb.mxu2 %v6089_v61  ;;  %1123 = vmatpush.msrb.mxu3 %v6090_v43 }
 0x1a6   : > { %1064 = vmatpush.msrb.mxu0 %v6091_v42  ;;  %1084 = vmatpush.msrb.mxu1 %v6092_v58 }
 0x1a7   : > { %1104 = vmatpush.msrb.mxu2 %v6093_v52  ;;  %1124 = vmatpush.msrb.mxu3 %v6094_v39 }
 0x1a8   : > { %1065 = vmatpush.msrb.mxu0 %v6095_v36  ;;  %1085 = vmatpush.msrb.mxu1 %v6096_v0 }
 0x1a9   : > { %1105 = vmatpush.msrb.mxu2 %v6097_v1  ;;  %1125 = vmatpush.msrb.mxu3 %v6098_v2 }
 0x1aa   : > { %1066 = vmatpush.msrb.mxu0 %v6099_v3  ;;  %1086 = vmatpush.msrb.mxu1 %v6100_v4 }
 0x1ab   : > { %1106 = vmatpush.msrb.mxu2 %v6101_v5  ;;  %1126 = vmatpush.msrb.mxu3 %v6102_v6 }
 0x1ac   : > { %1067 = vmatpush.msrb.mxu0 %v6103_v7  ;;  %1087 = vmatpush.msrb.mxu1 %v6104_v8 }
 0x1ad   : > { %1107 = vmatpush.msrb.mxu2 %v6105_v9  ;;  %1127 = vmatpush.msrb.mxu3 %v6106_v10 }
 0x1ae   : > { %1068 = vmatpush.msrb.mxu0 %v6107_v11  ;;  %1088 = vmatpush.msrb.mxu1 %v6108_v12 }
 0x1af   : > { %1108 = vmatpush.msrb.mxu2 %v6109_v13  ;;  %1128 = vmatpush.msrb.mxu3 %v6110_v14 }
 0x1b0   : > { %1069 = vmatpush.msrb.mxu0 %v6111_v15  ;;  %1089 = vmatpush.msrb.mxu1 %v6112_v16 }
 0x1b1   : > { %1109 = vmatpush.msrb.mxu2 %v6113_v17  ;;  %1129 = vmatpush.msrb.mxu3 %v6114_v18 }
 0x1b2   : > { %1070 = vmatpush.msrb.mxu0 %v6115_v19  ;;  %1090 = vmatpush.msrb.mxu1 %v6116_v20 }
 0x1b3   : > { %1110 = vmatpush.msrb.mxu2 %v6117_v21  ;;  %1130 = vmatpush.msrb.mxu3 %v6118_v22 }
 0x1b4   : > { %1071 = vmatpush.msrb.mxu0 %v6119_v23  ;;  %1091 = vmatpush.msrb.mxu1 %v6120_v24 }
 0x1b5   : > { %1111 = vmatpush.msrb.mxu2 %v6121_v25  ;;  %1131 = vmatpush.msrb.mxu3 %v6122_v26 }
 0x1ef   : > { %v764_v27 = vpop.f32.mrf.mxu0  ;;  %v784_v28 = vpop.f32.mrf.mxu1 }
 0x1f6   : > { %v824_v29 = vpop.f32.mrf.mxu3  ;;  %v804_v41 = vpop.f32.mrf.mxu2 }
 0x1f7   : > { %v844_v30 = vpop.f32.mrf.mxu0  ;;  %v864_v31 = vpop.f32.mrf.mxu1 }
 0x1f8   : > { %v845_v32 = vadd.f32 %v844_v30, %v764_v27  ;;  %v865_v33 = vadd.f32 %v864_v31, %v784_v28  ;;  %v4157_v30 = vld [vmem:[#allocation10 + $0x1f0] sm:$0xff]  ;;  %v4160_v31 = vld [vmem:[#allocation10 + $0x1f8] sm:$0xff] }
 0x1fa   : > { %v907_v35 = vadd.f32 %v845_v32, %v6123_v34  ;;  %v908_v38 = vadd.f32 %v865_v33, %v6124_v37  ;;  %v4163_v32 = vld [vmem:[#allocation10 + $0x1c0] sm:$0xff]  ;;  %v4166_v33 = vld [vmem:[#allocation10 + $0x1c8] sm:$0xff] }
 0x1fc   : > { %v2525_v44 = vmul.f32 -1.442695, %v907_v35  ;;  %v2526_v45 = vmul.f32 -1.442695, %v908_v38  ;;  %v2528_v35 = vld [vmem:[%s3477_s1 + $0x10] sm:$0xff] }
 0x1fd   : > { %v4170_v38 = vld [vmem:[#allocation10 + $0x1d0] sm:$0xff] }
 0x1fe   : > { %2655 = vpow2.f32 %v2525_v44  ;;  %v904_v59 = vpop.f32.mrf.mxu3  ;;  %v884_v63 = vpop.f32.mrf.mxu2  ;;  %v4176_v44 = vld [vmem:[#allocation10 + $0x1a0] sm:$0xff] }
 0x1ff   : > { %2657 = vpow2.f32 %v2526_v45  ;;  %v905_v48 = vadd.f32 %v904_v59, %v824_v29  ;;  %v885_v49 = vadd.f32 %v884_v63, %v804_v41  ;;  %v4154_v29 = vld [vmem:[#allocation10 + $0x1e8] sm:$0xff]  ;;  %v4173_v41 = vld [vmem:[#allocation10 + $0x1d8] sm:$0xff]  ;;  %v4182_v59 = vld [vmem:[#allocation10 + $0x1b0] sm:$0xff] }
 0x200   : > { %v4179_v45 = vld [vmem:[#allocation10 + $0x1a8] sm:$0xff]  ;;  %v4206_v63 = vld [vmem:[#allocation10 + $0x170] sm:$0xff] }
 0x201   : > { %v910_v46 = vadd.f32 %v905_v48, %v6125_v40  ;;  %v909_v61 = vadd.f32 %v885_v49, %v6126_v56  ;;  %v4185_v48 = vld [vmem:[#allocation10 + $0x1b8] sm:$0xff] }
 0x202   : > { %v4209_v49 = vld [vmem:[#allocation10 + $0x178] sm:$0xff] }
 0x203   : > { %v2527_v60 = vmul.f32 -1.442695, %v910_v46  ;;  %v4188_v46 = vld [vmem:[#allocation10 + $0x180] sm:$0xff] }
 0x204   : > { %v2656_v55 = vpop.eup %2655 }
 0x205   : > { %v2658_v54 = vpop.eup %2657  ;;  %v914_v47 = vadd.f32 1.0, %v2656_v55  ;;  %2659 = vpow2.f32 %v2527_v60  ;;  %v4191_v60 = vld [vmem:[#allocation10 + $0x188] sm:$0xff]  ;;  %v4194_v55 = vld [vmem:[#allocation10 + $0x190] sm:$0xff] }
 0x206   : > { %v933_v57 = vadd.f32 1.0, %v2658_v54  ;;  %v4197_v54 = vld [vmem:[#allocation10 + $0x198] sm:$0xff] }
 0x207   : > { %2661 = vrcp.f32 %v914_v47  ;;  %v926_v36 = vand.u32 2147483648, %v914_v47  ;;  %v924_v2 = vand.u32 2147483647, %v914_v47  ;;  %vm920_vm14 = vweird.f32 %v914_v47 }
 0x208   : > { %2663 = vrcp.f32 %v933_v57  ;;  %v945_v0 = vand.u32 2147483648, %v933_v57  ;;  %v943_v4 = vand.u32 2147483647, %v933_v57  ;;  %vm939_vm15 = vweird.f32 %v933_v57 }
 0x209   : > { %v927_v7 = vor.u32 1.1754944e-38, %v926_v36  ;;  %vm925_vm2 = vcmp.eq.f32.partialorder %v924_v2, 8.507059e+37  ;;  %v4239_v36 = vld [vmem:[#allocation10 + $0x108] sm:$0xff]  ;;  %v4248_v2 = vld [vmem:[#allocation10 + $0xe0] sm:$0xff] }
 0x20a   : > { %v946_v10 = vor.u32 1.1754944e-38, %v945_v0  ;;  %vm944_vm3 = vcmp.eq.f32.partialorder %v943_v4, 8.507059e+37  ;;  %v4242_v0 = vld [vmem:[#allocation10 + $0x110] sm:$0xff] }
 0x20b   : > { %v2660_v62 = vpop.eup %2659  ;;  %v4254_v4 = vld [vmem:[#allocation10 + $0xf0] sm:$0xff] }
 0x20c   : > { %v953_v53 = vadd.f32 1.0, %v2660_v62  ;;  %v4212_v62 = vld [vmem:[#allocation10 + $0x140] sm:$0xff] }
 0x20d   : > { %v2662_v51 = vpop.eup %2661 }
 0x20e   : > { %v2664_v43 = vpop.eup %2663  ;;  %v916_v42 = vmul.f32 %v2662_v51, %v914_v47  ;;  %2665 = vrcp.f32 %v953_v53  ;;  %vm921_vm12 = vweird.f32 %v2662_v51  ;;  %v965_v22 = vand.u32 2147483648, %v953_v53  ;;  %v4200_v47 = vld [vmem:[#allocation10 + $0x160] sm:$0xff] }
 0x20f   : > { %v935_v58 = vmul.f32 %v2664_v43, %v933_v57  ;;  %2667 = vtanh.f32 %v909_v61  ;;  %vm940_vm13 = vweird.f32 %v2664_v43  ;;  %vm922_vm0 = vmor %vm920_vm14, %vm921_vm12  ;;  %vm959_vm5 = vweird.f32 %v953_v53  ;;  %v4203_v57 = vld [vmem:[#allocation10 + $0x168] sm:$0xff]  ;;  %v4221_v61 = vld [vmem:[#allocation10 + $0x158] sm:$0xff] }
 0x210   : > { %v917_v52 = vsub.f32 1.0, %v916_v42  ;;  %vm941_vm1 = vmor %vm939_vm15, %vm940_vm13  ;;  %v963_v23 = vand.u32 2147483647, %v953_v53  ;;  %v966_v25 = vor.u32 1.1754944e-38, %v965_v22  ;;  %v4227_v42 = vld [vmem:[#allocation10 + $0x128] sm:$0xff]  ;;  %v4305_v22 = vld [vmem:[#allocation10 + $0x78] sm:$0xff] }
 0x211   : > { %v936_v39 = vsub.f32 1.0, %v935_v58  ;;  %v4230_v58 = vld [vmem:[#allocation10 + $0x130] sm:$0xff]  ;;  %6140 = vst [vmem:[#allocation32_spill] sm:$0xff] %v4305_v22 }
 0x212   : > { %v918_v1 = vmul.f32 %v2662_v51, %v917_v52  ;;  %vm964_vm7 = vcmp.eq.f32.partialorder %v963_v23, 8.507059e+37  ;;  %v4233_v52 = vld [vmem:[#allocation10 + $0x138] sm:$0xff]  ;;  %v4308_v23 = vld [vmem:[#allocation10 + $0x40] sm:$0xff] }
 0x213   : > { %v937_v3 = vmul.f32 %v2664_v43, %v936_v39  ;;  %v4236_v39 = vld [vmem:[#allocation10 + $0x100] sm:$0xff]  ;;  %6141 = vst [vmem:[#allocation34_spill] sm:$0xff] %v4308_v23 }
 0x214   : > { %v2666_v5 = vpop.eup %2665  ;;  %v919_v6 = vadd.f32 %v2662_v51, %v918_v1  ;;  %v4245_v1 = vld [vmem:[#allocation10 + $0x118] sm:$0xff] }
 0x215   : > { %v938_v8 = vadd.f32 %v2664_v43, %v937_v3  ;;  %v955_v9 = vmul.f32 %v2666_v5, %v953_v53  ;;  %v2668_v12 = vpop.eup %2667  ;;  %vm960_vm4 = vweird.f32 %v2666_v5  ;;  %v4215_v53 = vld [vmem:[#allocation10 + $0x148] sm:$0xff] }
 0x216   : > { %v923_v11 = vsel %vm922_vm0, %v2662_v51, %v919_v6  ;;  %vm961_vm6 = vmor %vm959_vm5, %vm960_vm4  ;;  %v4218_v51 = vld [vmem:[#allocation10 + $0x150] sm:$0xff]  ;;  %v4251_v3 = vld [vmem:[#allocation10 + $0xe8] sm:$0xff] }
 0x217   : > { %v928_v13 = vsel %vm925_vm2, %v927_v7, %v923_v11  ;;  %v942_v14 = vsel %vm941_vm1, %v2664_v43, %v938_v8  ;;  %v956_v15 = vsub.f32 1.0, %v955_v9  ;;  %v4224_v43 = vld [vmem:[#allocation10 + $0x120] sm:$0xff]  ;;  %v4263_v7 = vld [vmem:[#allocation10 + $0xc8] sm:$0xff]  ;;  %v4266_v8 = vld [vmem:[#allocation10 + $0xd0] sm:$0xff] }
 0x218   : > { %v947_v16 = vsel %vm944_vm3, %v946_v10, %v942_v14  ;;  %v970_v17 = vmul.f32 %v2668_v12, %v928_v13  ;;  %v4260_v6 = vld [vmem:[#allocation10 + $0xc0] sm:$0xff]  ;;  %6127 = vst [vmem:[#allocation29_spill] sm:$0xff] %v4266_v8  ;;  %v4269_v9 = vld [vmem:[#allocation10 + $0xd8] sm:$0xff]  ;;  %v4275_v11 = vld [vmem:[#allocation10 + $0xa8] sm:$0xff] }
 0x219   : > { %v969_v18 = vmul.f32 %v947_v16, %v4011_v50  ;;  %v957_v19 = vmul.f32 %v2666_v5, %v956_v15  ;;  %v4151_v50 = vld [vmem:[#allocation10 + $0x1e0] sm:$0xff]  ;;  %6128 = vst [vmem:[#allocation22_spill] sm:$0xff] %v4269_v9  ;;  %v4278_v12 = vld [vmem:[#allocation10 + $0xb0] sm:$0xff]  ;;  %v4281_v13 = vld [vmem:[#allocation10 + $0xb8] sm:$0xff] }
 0x21a   : > { %v4272_v10 = vld [vmem:[#allocation10 + $0xa0] sm:$0xff]  ;;  %6130 = vst [vmem:[#allocation24_spill] sm:$0xff] %v4275_v11  ;;  %v4287_v15 = vld [vmem:[#allocation10 + $0x88] sm:$0xff]  ;;  %v4290_v16 = vld [vmem:[#allocation10 + $0x90] sm:$0xff] }
 0x21b   : > { %v4148_v20 = vadd.f32 %v970_v17, %v969_v18  ;;  %v958_v21 = vadd.f32 %v2666_v5, %v957_v19  ;;  %6129 = vst [vmem:[#allocation23_spill] sm:$0xff] %v4272_v10  ;;  %v4284_v14 = vld [vmem:[#allocation10 + $0x80] sm:$0xff]  ;;  %v4293_v17 = vld [vmem:[#allocation10 + $0x98] sm:$0xff]  ;;  %v4299_v19 = vld [vmem:[#allocation10 + $0x68] sm:$0xff] }
 0x21c   : > { %6131 = vst [vmem:[#allocation33_spill] sm:$0xff] %v4278_v12  ;;  %v4296_v18 = vld [vmem:[#allocation10 + $0x60] sm:$0xff] }
 0x21d   : > { %2669 = vtanh.f32 %v4148_v20  ;;  %v962_v24 = vsel %vm961_vm6, %v2666_v5, %v958_v21  ;;  %v4257_v5 = vld [vmem:[#allocation10 + $0xf8] sm:$0xff]  ;;  %6132 = vst [vmem:[#allocation25_spill] sm:$0xff] %v4281_v13  ;;  %v4302_v21 = vld [vmem:[#allocation10 + $0x70] sm:$0xff] }
 0x21e   : > { %v967_v27 = vsel %vm964_vm7, %v966_v25, %v962_v24  ;;  %6133 = vst [vmem:[#allocation26_spill] sm:$0xff] %v4284_v14  ;;  %v4311_v24 = vld [vmem:[#allocation10 + $0x48] sm:$0xff]  ;;  %v4314_v25 = vld [vmem:[#allocation10 + $0x50] sm:$0xff] }
 0x21f   : > { %6134 = vst [vmem:[#allocation27_spill] sm:$0xff] %v4287_v15 }
 0x220   : > { %6135 = vst [vmem:[#allocation37_spill] sm:$0xff] %v4290_v16 }
 0x221   : > { %6136 = vst [vmem:[#allocation28_spill] sm:$0xff] %v4293_v17 }
 0x222   : > { %6137 = vst [vmem:[#allocation30_spill] sm:$0xff] %v4296_v18 }
 0x223   : > { %v2670_v26 = vpop.eup %2669  ;;  %6138 = vst [vmem:[#allocation31_spill] sm:$0xff] %v4299_v19 }
 0x224   : > { %v973_v28 = vmul.f32 %v2670_v26, %v967_v27  ;;  %6139 = vst [vmem:[#allocation41_spill] sm:$0xff] %v4302_v21  ;;  %v4317_v26 = vld [vmem:[#allocation10 + $0x58] sm:$0xff]  ;;  %v4320_v27 = vld [vmem:[#allocation10 + $0x20] sm:$0xff] }
 0x225   : > { %6142 = vst [vmem:[#allocation35_spill] sm:$0xff] %v4311_v24 }
 0x226   : > { %992 = vmatmul.f32.vlgmr.msra.gmra.mxu0 %v973_v28  ;;  %1012 = vmatmul.f32.vlgmr.msra.gmra.mxu1 %v973_v28  ;;  %6143 = vst [vmem:[#allocation48_spill] sm:$0xff] %v4314_v25 }
 0x227   : > { %1032 = vmatmul.f32.vlgmr.msra.gmra.mxu2 %v973_v28  ;;  %1052 = vmatmul.f32.vlgmr.msra.gmra.mxu3 %v973_v28  ;;  %6144 = vst [vmem:[#allocation36_spill] sm:$0xff] %v4317_v26  ;;  %v4323_v28 = vld [vmem:[#allocation10 + $0x28] sm:$0xff] }
 0x228   : > { %1205 = vmatpush.msra.mxu0 %v4151_v50  ;;  %1225 = vmatpush.msra.mxu1 %v4154_v29  ;;  %6145 = vst [vmem:[#allocation38_spill] sm:$0xff] %v4320_v27 }
 0x229   : > { %1245 = vmatpush.msra.mxu2 %v4157_v30  ;;  %1265 = vmatpush.msra.mxu3 %v4160_v31  ;;  %6146 = vst [vmem:[#allocation39_spill] sm:$0xff] %v4323_v28 }
 0x22a   : > { %1206 = vmatpush.msra.mxu0 %v4163_v32  ;;  %1226 = vmatpush.msra.mxu1 %v4166_v33 }
 0x22b   : > { %1246 = vmatpush.msra.mxu2 %v4170_v38  ;;  %1266 = vmatpush.msra.mxu3 %v4173_v41 }
 0x22c   : > { %1207 = vmatpush.msra.mxu0 %v4176_v44  ;;  %1227 = vmatpush.msra.mxu1 %v4179_v45 }
 0x22d   : > { %1247 = vmatpush.msra.mxu2 %v4182_v59  ;;  %1267 = vmatpush.msra.mxu3 %v4185_v48 }
 0x22e   : > { %1072 = vmatmul.f32.vlgmr.msrb.gmra.mxu0 %v2528_v35  ;;  %1092 = vmatmul.f32.vlgmr.msrb.gmra.mxu1 %v2528_v35 }
 0x22f   : > { %1112 = vmatmul.f32.vlgmr.msrb.gmra.mxu2 %v2528_v35  ;;  %1132 = vmatmul.f32.vlgmr.msrb.gmra.mxu3 %v2528_v35  ;;  %v4326_v35 = vld [vmem:[#allocation10 + $0x30] sm:$0xff] }
 0x230   : > { %1208 = vmatpush.msra.mxu0 %v4188_v46  ;;  %1228 = vmatpush.msra.mxu1 %v4191_v60  ;;  %6147 = vst [vmem:[#allocation52_spill] sm:$0xff] %v4326_v35 }
 0x231   : > { %1248 = vmatpush.msra.mxu2 %v4194_v55  ;;  %1268 = vmatpush.msra.mxu3 %v4197_v54 }
 0x232   : > { %1209 = vmatpush.msra.mxu0 %v4200_v47  ;;  %1229 = vmatpush.msra.mxu1 %v4203_v57 }
 0x233   : > { %1249 = vmatpush.msra.mxu2 %v4206_v63  ;;  %1269 = vmatpush.msra.mxu3 %v4209_v49 }
 0x234   : > { %1210 = vmatpush.msra.mxu0 %v4212_v62  ;;  %1230 = vmatpush.msra.mxu1 %v4215_v53 }
 0x235   : > { %1250 = vmatpush.msra.mxu2 %v4218_v51  ;;  %1270 = vmatpush.msra.mxu3 %v4221_v61 }
 0x236   : > { %1211 = vmatpush.msra.mxu0 %v4224_v43  ;;  %1231 = vmatpush.msra.mxu1 %v4227_v42 }
 0x237   : > { %1251 = vmatpush.msra.mxu2 %v4230_v58  ;;  %1271 = vmatpush.msra.mxu3 %v4233_v52 }
 0x238   : > { %1212 = vmatpush.msra.mxu0 %v4236_v39  ;;  %1232 = vmatpush.msra.mxu1 %v4239_v36 }
 0x239   : > { %1252 = vmatpush.msra.mxu2 %v4242_v0  ;;  %1272 = vmatpush.msra.mxu3 %v4245_v1 }
 0x23a   : > { %1213 = vmatpush.msra.mxu0 %v4248_v2  ;;  %1233 = vmatpush.msra.mxu1 %v4251_v3 }
 0x23b   : > { %1253 = vmatpush.msra.mxu2 %v4254_v4  ;;  %1273 = vmatpush.msra.mxu3 %v4257_v5 }
 0x23c   : > { %1214 = vmatpush.msra.mxu0 %v4260_v6  ;;  %1234 = vmatpush.msra.mxu1 %v4263_v7 }
 0x23d   : > { %1254 = vmatpush.msra.mxu2 %v4266_v8  ;;  %1274 = vmatpush.msra.mxu3 %v4269_v9 }
 0x23e   : > { %1215 = vmatpush.msra.mxu0 %v4272_v10  ;;  %1235 = vmatpush.msra.mxu1 %v4275_v11 }
 0x23f   : > { %1255 = vmatpush.msra.mxu2 %v4278_v12  ;;  %1275 = vmatpush.msra.mxu3 %v4281_v13 }
 0x240   : > { %1216 = vmatpush.msra.mxu0 %v4284_v14  ;;  %1236 = vmatpush.msra.mxu1 %v4287_v15 }
 0x241   : > { %1256 = vmatpush.msra.mxu2 %v4290_v16  ;;  %1276 = vmatpush.msra.mxu3 %v4293_v17 }
 0x242   : > { %1217 = vmatpush.msra.mxu0 %v4296_v18  ;;  %1237 = vmatpush.msra.mxu1 %v4299_v19 }
 0x243   : > { %1257 = vmatpush.msra.mxu2 %v4302_v21  ;;  %1277 = vmatpush.msra.mxu3 %v4305_v22 }
 0x244   : > { %1218 = vmatpush.msra.mxu0 %v4308_v23  ;;  %1238 = vmatpush.msra.mxu1 %v4311_v24  ;;  %v4329_v24 = vld [vmem:[#allocation10 + $0x38] sm:$0xff] }
 0x245   : > { %1258 = vmatpush.msra.mxu2 %v4314_v25  ;;  %1278 = vmatpush.msra.mxu3 %v4317_v26  ;;  %6148 = vst [vmem:[#allocation40_spill] sm:$0xff] %v4329_v24  ;;  %v4332_v25 = vld [vmem:[#allocation10] sm:$0xff]  ;;  %v4335_v26 = vld [vmem:[#allocation10 + $0x8] sm:$0xff] }
 0x246   : > { %1219 = vmatpush.msra.mxu0 %v4320_v27  ;;  %1239 = vmatpush.msra.mxu1 %v4323_v28  ;;  %6149 = vst [vmem:[#allocation42_spill] sm:$0xff] %v4332_v25  ;;  %v4338_v27 = vld [vmem:[#allocation10 + $0x10] sm:$0xff]  ;;  %v4341_v28 = vld [vmem:[#allocation10 + $0x18] sm:$0xff] }
 0x247   : > { %1259 = vmatpush.msra.mxu2 %v4326_v35  ;;  %1279 = vmatpush.msra.mxu3 %v4329_v24  ;;  %6150 = vst [vmem:[#allocation43_spill] sm:$0xff] %v4335_v26  ;;  %v4344_v35 = vld [vmem:[#allocation8 + $0x1e0] sm:$0xff]  ;;  %v4347_v24 = vld [vmem:[#allocation8 + $0x1e8] sm:$0xff] }
 0x248   : > { %1220 = vmatpush.msra.mxu0 %v4332_v25  ;;  %1240 = vmatpush.msra.mxu1 %v4335_v26  ;;  %6151 = vst [vmem:[#allocation56_spill] sm:$0xff] %v4338_v27  ;;  %v4350_v25 = vld [vmem:[#allocation8 + $0x1f0] sm:$0xff]  ;;  %v4353_v26 = vld [vmem:[#allocation8 + $0x1f8] sm:$0xff] }
 0x249   : > { %1260 = vmatpush.msra.mxu2 %v4338_v27  ;;  %6152 = vst [vmem:[#allocation44_spill] sm:$0xff] %v4341_v28  ;;  %1280 = vmatpush.msra.mxu3 %v4341_v28  ;;  %v4356_v27 = vld [vmem:[#allocation8 + $0x1c0] sm:$0xff]  ;;  %v4359_v28 = vld [vmem:[#allocation8 + $0x1c8] sm:$0xff] }
 0x24a   : > { %6153 = vst [vmem:[#allocation45_spill] sm:$0xff] %v4344_v35  ;;  %1285 = vmatpush.msrb.mxu0 %v4344_v35  ;;  %1305 = vmatpush.msrb.mxu1 %v4347_v24  ;;  %v4362_v35 = vld [vmem:[#allocation8 + $0x1d0] sm:$0xff] }
 0x24b   : > { %6154 = vst [vmem:[#allocation46_spill] sm:$0xff] %v4347_v24  ;;  %1325 = vmatpush.msrb.mxu2 %v4350_v25  ;;  %1345 = vmatpush.msrb.mxu3 %v4353_v26  ;;  %v4365_v24 = vld [vmem:[#allocation8 + $0x1d8] sm:$0xff] }
 0x24c   : > { %6155 = vst [vmem:[#allocation60_spill] sm:$0xff] %v4350_v25  ;;  %1286 = vmatpush.msrb.mxu0 %v4356_v27  ;;  %1306 = vmatpush.msrb.mxu1 %v4359_v28  ;;  %v4368_v25 = vld [vmem:[#allocation8 + $0x1a0] sm:$0xff] }
 0x24d   : > { %6156 = vst [vmem:[#allocation47_spill] sm:$0xff] %v4353_v26  ;;  %1326 = vmatpush.msrb.mxu2 %v4362_v35  ;;  %1346 = vmatpush.msrb.mxu3 %v4365_v24  ;;  %v4371_v26 = vld [vmem:[#allocation8 + $0x1a8] sm:$0xff] }
 0x24e   : > { %6157 = vst [vmem:[#allocation49_spill] sm:$0xff] %v4356_v27  ;;  %1287 = vmatpush.msrb.mxu0 %v4368_v25  ;;  %1307 = vmatpush.msrb.mxu1 %v4371_v26  ;;  %v4374_v27 = vld [vmem:[#allocation8 + $0x1b0] sm:$0xff] }
 0x24f   : > { %6158 = vst [vmem:[#allocation50_spill] sm:$0xff] %v4359_v28  ;;  %1327 = vmatpush.msrb.mxu2 %v4374_v27  ;;  %v4377_v28 = vld [vmem:[#allocation8 + $0x1b8] sm:$0xff] }
 0x250   : > { %6159 = vst [vmem:[#allocation64_spill] sm:$0xff] %v4362_v35  ;;  %1347 = vmatpush.msrb.mxu3 %v4377_v28  ;;  %v4380_v35 = vld [vmem:[#allocation8 + $0x180] sm:$0xff] }
 0x251   : > { %6160 = vst [vmem:[#allocation51_spill] sm:$0xff] %v4365_v24  ;;  %1288 = vmatpush.msrb.mxu0 %v4380_v35  ;;  %v4383_v24 = vld [vmem:[#allocation8 + $0x188] sm:$0xff] }
 0x252   : > { %6161 = vst [vmem:[#allocation53_spill] sm:$0xff] %v4368_v25  ;;  %1308 = vmatpush.msrb.mxu1 %v4383_v24  ;;  %v4386_v25 = vld [vmem:[#allocation8 + $0x190] sm:$0xff] }
 0x253   : > { %6162 = vst [vmem:[#allocation54_spill] sm:$0xff] %v4371_v26  ;;  %1328 = vmatpush.msrb.mxu2 %v4386_v25  ;;  %v4389_v26 = vld [vmem:[#allocation8 + $0x198] sm:$0xff] }
 0x254   : > { %6163 = vst [vmem:[#allocation68_spill] sm:$0xff] %v4374_v27  ;;  %1348 = vmatpush.msrb.mxu3 %v4389_v26  ;;  %v4392_v27 = vld [vmem:[#allocation8 + $0x160] sm:$0xff] }
 0x255   : > { %6164 = vst [vmem:[#allocation55_spill] sm:$0xff] %v4377_v28  ;;  %1289 = vmatpush.msrb.mxu0 %v4392_v27  ;;  %v4395_v28 = vld [vmem:[#allocation8 + $0x168] sm:$0xff] }
 0x256   : > { %6165 = vst [vmem:[#allocation57_spill] sm:$0xff] %v4380_v35  ;;  %1309 = vmatpush.msrb.mxu1 %v4395_v28  ;;  %v4398_v35 = vld [vmem:[#allocation8 + $0x170] sm:$0xff] }
 0x257   : > { %6166 = vst [vmem:[#allocation58_spill] sm:$0xff] %v4383_v24  ;;  %1329 = vmatpush.msrb.mxu2 %v4398_v35  ;;  %v4401_v24 = vld [vmem:[#allocation8 + $0x178] sm:$0xff] }
 0x258   : > { %6167 = vst [vmem:[#allocation72_spill] sm:$0xff] %v4386_v25  ;;  %1349 = vmatpush.msrb.mxu3 %v4401_v24  ;;  %v4404_v25 = vld [vmem:[#allocation8 + $0x140] sm:$0xff] }
 0x259   : > { %6168 = vst [vmem:[#allocation59_spill] sm:$0xff] %v4389_v26  ;;  %1290 = vmatpush.msrb.mxu0 %v4404_v25  ;;  %v4407_v26 = vld [vmem:[#allocation8 + $0x148] sm:$0xff] }
 0x25a   : > { %6169 = vst [vmem:[#allocation61_spill] sm:$0xff] %v4392_v27  ;;  %1310 = vmatpush.msrb.mxu1 %v4407_v26  ;;  %v4410_v27 = vld [vmem:[#allocation8 + $0x150] sm:$0xff] }
 0x25b   : > { %6170 = vst [vmem:[#allocation62_spill] sm:$0xff] %v4395_v28  ;;  %1330 = vmatpush.msrb.mxu2 %v4410_v27  ;;  %v4413_v28 = vld [vmem:[#allocation8 + $0x158] sm:$0xff] }
 0x25c   : > { %6171 = vst [vmem:[#allocation76_spill] sm:$0xff] %v4398_v35  ;;  %1350 = vmatpush.msrb.mxu3 %v4413_v28  ;;  %v4416_v35 = vld [vmem:[#allocation8 + $0x120] sm:$0xff] }
 0x25d   : > { %6172 = vst [vmem:[#allocation63_spill] sm:$0xff] %v4401_v24  ;;  %1291 = vmatpush.msrb.mxu0 %v4416_v35  ;;  %v4419_v24 = vld [vmem:[#allocation8 + $0x128] sm:$0xff] }
 0x25e   : > { %6173 = vst [vmem:[#allocation65_spill] sm:$0xff] %v4404_v25  ;;  %1311 = vmatpush.msrb.mxu1 %v4419_v24  ;;  %v4422_v25 = vld [vmem:[#allocation8 + $0x130] sm:$0xff] }
 0x25f   : > { %6174 = vst [vmem:[#allocation66_spill] sm:$0xff] %v4407_v26  ;;  %1331 = vmatpush.msrb.mxu2 %v4422_v25  ;;  %v4425_v26 = vld [vmem:[#allocation8 + $0x138] sm:$0xff] }
 0x260   : > { %6175 = vst [vmem:[#allocation80_spill] sm:$0xff] %v4410_v27  ;;  %1351 = vmatpush.msrb.mxu3 %v4425_v26  ;;  %v4428_v27 = vld [vmem:[#allocation8 + $0x100] sm:$0xff] }
 0x261   : > { %6176 = vst [vmem:[#allocation67_spill] sm:$0xff] %v4413_v28  ;;  %1292 = vmatpush.msrb.mxu0 %v4428_v27  ;;  %v4431_v28 = vld [vmem:[#allocation8 + $0x108] sm:$0xff] }
 0x262   : > { %6177 = vst [vmem:[#allocation69_spill] sm:$0xff] %v4416_v35  ;;  %1312 = vmatpush.msrb.mxu1 %v4431_v28  ;;  %v4434_v35 = vld [vmem:[#allocation8 + $0x110] sm:$0xff] }
 0x263   : > { %6178 = vst [vmem:[#allocation70_spill] sm:$0xff] %v4419_v24  ;;  %1332 = vmatpush.msrb.mxu2 %v4434_v35  ;;  %v4437_v24 = vld [vmem:[#allocation8 + $0x118] sm:$0xff] }
 0x264   : > { %6179 = vst [vmem:[#allocation84_spill] sm:$0xff] %v4422_v25  ;;  %1352 = vmatpush.msrb.mxu3 %v4437_v24  ;;  %v4440_v25 = vld [vmem:[#allocation8 + $0xe0] sm:$0xff] }
 0x265   : > { %6180 = vst [vmem:[#allocation71_spill] sm:$0xff] %v4425_v26  ;;  %1293 = vmatpush.msrb.mxu0 %v4440_v25  ;;  %v4443_v26 = vld [vmem:[#allocation8 + $0xe8] sm:$0xff] }
 0x266   : > { %6181 = vst [vmem:[#allocation73_spill] sm:$0xff] %v4428_v27  ;;  %1313 = vmatpush.msrb.mxu1 %v4443_v26  ;;  %v4446_v27 = vld [vmem:[#allocation8 + $0xf0] sm:$0xff] }
 0x267   : > { %6182 = vst [vmem:[#allocation74_spill] sm:$0xff] %v4431_v28  ;;  %1333 = vmatpush.msrb.mxu2 %v4446_v27  ;;  %v4449_v28 = vld [vmem:[#allocation8 + $0xf8] sm:$0xff] }
 0x268   : > { %6183 = vst [vmem:[#allocation88_spill] sm:$0xff] %v4434_v35  ;;  %1353 = vmatpush.msrb.mxu3 %v4449_v28  ;;  %v4452_v35 = vld [vmem:[#allocation8 + $0xc0] sm:$0xff] }
 0x269   : > { %6184 = vst [vmem:[#allocation75_spill] sm:$0xff] %v4437_v24  ;;  %1294 = vmatpush.msrb.mxu0 %v4452_v35  ;;  %v4455_v24 = vld [vmem:[#allocation8 + $0xc8] sm:$0xff] }
 0x26a   : > { %6185 = vst [vmem:[#allocation77_spill] sm:$0xff] %v4440_v25  ;;  %1314 = vmatpush.msrb.mxu1 %v4455_v24  ;;  %v4458_v25 = vld [vmem:[#allocation8 + $0xd0] sm:$0xff] }
 0x26b   : > { %6186 = vst [vmem:[#allocation78_spill] sm:$0xff] %v4443_v26  ;;  %1334 = vmatpush.msrb.mxu2 %v4458_v25  ;;  %v4461_v26 = vld [vmem:[#allocation8 + $0xd8] sm:$0xff] }
 0x26c   : > { %6187 = vst [vmem:[#allocation92_spill] sm:$0xff] %v4446_v27  ;;  %1354 = vmatpush.msrb.mxu3 %v4461_v26  ;;  %v4464_v27 = vld [vmem:[#allocation8 + $0xa0] sm:$0xff] }
 0x26d   : > { %6188 = vst [vmem:[#allocation79_spill] sm:$0xff] %v4449_v28  ;;  %1295 = vmatpush.msrb.mxu0 %v4464_v27  ;;  %v4467_v28 = vld [vmem:[#allocation8 + $0xa8] sm:$0xff] }
 0x26e   : > { %6189 = vst [vmem:[#allocation81_spill] sm:$0xff] %v4452_v35  ;;  %1315 = vmatpush.msrb.mxu1 %v4467_v28  ;;  %v4470_v35 = vld [vmem:[#allocation8 + $0xb0] sm:$0xff] }
 0x26f   : > { %6190 = vst [vmem:[#allocation82_spill] sm:$0xff] %v4455_v24  ;;  %1335 = vmatpush.msrb.mxu2 %v4470_v35  ;;  %v4473_v24 = vld [vmem:[#allocation8 + $0xb8] sm:$0xff] }
 0x270   : > { %6191 = vst [vmem:[#allocation96_spill] sm:$0xff] %v4458_v25  ;;  %1355 = vmatpush.msrb.mxu3 %v4473_v24  ;;  %v4476_v25 = vld [vmem:[#allocation8 + $0x80] sm:$0xff] }
 0x271   : > { %6192 = vst [vmem:[#allocation83_spill] sm:$0xff] %v4461_v26  ;;  %1296 = vmatpush.msrb.mxu0 %v4476_v25  ;;  %v4479_v26 = vld [vmem:[#allocation8 + $0x88] sm:$0xff] }
 0x272   : > { %6193 = vst [vmem:[#allocation85_spill] sm:$0xff] %v4464_v27  ;;  %1316 = vmatpush.msrb.mxu1 %v4479_v26  ;;  %v4482_v27 = vld [vmem:[#allocation8 + $0x90] sm:$0xff] }
 0x273   : > { %6194 = vst [vmem:[#allocation86_spill] sm:$0xff] %v4467_v28  ;;  %1336 = vmatpush.msrb.mxu2 %v4482_v27  ;;  %v4485_v28 = vld [vmem:[#allocation8 + $0x98] sm:$0xff] }
 0x274   : > { %6195 = vst [vmem:[#allocation100_spill] sm:$0xff] %v4470_v35  ;;  %1356 = vmatpush.msrb.mxu3 %v4485_v28  ;;  %v4488_v35 = vld [vmem:[#allocation8 + $0x60] sm:$0xff] }
 0x275   : > { %6196 = vst [vmem:[#allocation87_spill] sm:$0xff] %v4473_v24  ;;  %1297 = vmatpush.msrb.mxu0 %v4488_v35  ;;  %v4491_v24 = vld [vmem:[#allocation8 + $0x68] sm:$0xff] }
 0x276   : > { %6197 = vst [vmem:[#allocation89_spill] sm:$0xff] %v4476_v25  ;;  %1317 = vmatpush.msrb.mxu1 %v4491_v24  ;;  %v4494_v25 = vld [vmem:[#allocation8 + $0x70] sm:$0xff] }
 0x277   : > { %6198 = vst [vmem:[#allocation90_spill] sm:$0xff] %v4479_v26  ;;  %1337 = vmatpush.msrb.mxu2 %v4494_v25  ;;  %v4497_v26 = vld [vmem:[#allocation8 + $0x78] sm:$0xff] }
 0x278   : > { %6199 = vst [vmem:[#allocation104_spill] sm:$0xff] %v4482_v27  ;;  %1357 = vmatpush.msrb.mxu3 %v4497_v26  ;;  %v4500_v27 = vld [vmem:[#allocation8 + $0x40] sm:$0xff] }
 0x279   : > { %6200 = vst [vmem:[#allocation91_spill] sm:$0xff] %v4485_v28  ;;  %1298 = vmatpush.msrb.mxu0 %v4500_v27  ;;  %v4503_v28 = vld [vmem:[#allocation8 + $0x48] sm:$0xff] }
 0x27a   : > { %6201 = vst [vmem:[#allocation93_spill] sm:$0xff] %v4488_v35  ;;  %1318 = vmatpush.msrb.mxu1 %v4503_v28  ;;  %v4506_v35 = vld [vmem:[#allocation8 + $0x50] sm:$0xff] }
 0x27b   : > { %6202 = vst [vmem:[#allocation94_spill] sm:$0xff] %v4491_v24  ;;  %1338 = vmatpush.msrb.mxu2 %v4506_v35  ;;  %v4509_v24 = vld [vmem:[#allocation8 + $0x58] sm:$0xff] }
 0x27c   : > { %6203 = vst [vmem:[#allocation108_spill] sm:$0xff] %v4494_v25  ;;  %1358 = vmatpush.msrb.mxu3 %v4509_v24  ;;  %v4512_v25 = vld [vmem:[#allocation8 + $0x20] sm:$0xff] }
 0x27d   : > { %6204 = vst [vmem:[#allocation95_spill] sm:$0xff] %v4497_v26  ;;  %1299 = vmatpush.msrb.mxu0 %v4512_v25  ;;  %v4515_v26 = vld [vmem:[#allocation8 + $0x28] sm:$0xff] }
 0x27e   : > { %6205 = vst [vmem:[#allocation97_spill] sm:$0xff] %v4500_v27  ;;  %1319 = vmatpush.msrb.mxu1 %v4515_v26  ;;  %v4518_v27 = vld [vmem:[#allocation8 + $0x30] sm:$0xff] }
 0x27f   : > { %6206 = vst [vmem:[#allocation98_spill] sm:$0xff] %v4503_v28  ;;  %1339 = vmatpush.msrb.mxu2 %v4518_v27  ;;  %v4521_v28 = vld [vmem:[#allocation8 + $0x38] sm:$0xff] }
 0x280   : > { %6207 = vst [vmem:[#allocation109_spill] sm:$0xff] %v4506_v35  ;;  %1359 = vmatpush.msrb.mxu3 %v4521_v28  ;;  %v4524_v35 = vld [vmem:[#allocation8] sm:$0xff] }
 0x281   : > { %6208 = vst [vmem:[#allocation99_spill] sm:$0xff] %v4509_v24  ;;  %1300 = vmatpush.msrb.mxu0 %v4524_v35  ;;  %v4527_v24 = vld [vmem:[#allocation8 + $0x8] sm:$0xff] }
 0x282   : > { %6209 = vst [vmem:[#allocation101_spill] sm:$0xff] %v4512_v25  ;;  %1320 = vmatpush.msrb.mxu1 %v4527_v24  ;;  %v4530_v25 = vld [vmem:[#allocation8 + $0x10] sm:$0xff] }
 0x283   : > { %6210 = vst [vmem:[#allocation102_spill] sm:$0xff] %v4515_v26  ;;  %1340 = vmatpush.msrb.mxu2 %v4530_v25  ;;  %v4533_v26 = vld [vmem:[#allocation8 + $0x18] sm:$0xff] }
 0x284   : > { %6211 = vst [vmem:[#allocation110_spill] sm:$0xff] %v4518_v27  ;;  %1360 = vmatpush.msrb.mxu3 %v4533_v26 }
 0x285   : > { %6212 = vst [vmem:[#allocation103_spill] sm:$0xff] %v4521_v28 }
 0x286   : > { %6213 = vst [vmem:[#allocation105_spill] sm:$0xff] %v4524_v35 }
 0x287   : > { %6214 = vst [vmem:[#allocation106_spill] sm:$0xff] %v4527_v24 }
 0x288   : > { %6215 = vst [vmem:[#allocation111_spill] sm:$0xff] %v4530_v25 }
 0x289   : > { %6216 = vst [vmem:[#allocation107_spill] sm:$0xff] %v4533_v26 }
 0x2a3   : > { %v993_v27 = vpop.f32.mrf.mxu0  ;;  %v1013_v23 = vpop.f32.mrf.mxu1 }
 0x2aa   : > { %v1053_v22 = vpop.f32.mrf.mxu3  ;;  %v1033_v24 = vpop.f32.mrf.mxu2 }
 0x2ab   : > { %v1073_v28 = vpop.f32.mrf.mxu0  ;;  %v1093_v21 = vpop.f32.mrf.mxu1 }
 0x2ac   : > { %v1074_v19 = vadd.f32 %v1073_v28, %v993_v27  ;;  %v1094_v18 = vadd.f32 %v1093_v21, %v1013_v23 }
 0x2ae   : > { %v1136_v35 = vadd.f32 %v1074_v19, %v6123_v34  ;;  %v1137_v17 = vadd.f32 %v1094_v18, %v6124_v37 }
 0x2b0   : > { %v2529_v16 = vmul.f32 -1.442695, %v1136_v35  ;;  %v2530_v15 = vmul.f32 -1.442695, %v1137_v17 }
 0x2b2   : > { %2671 = vpow2.f32 %v2529_v16  ;;  %v1133_v25 = vpop.f32.mrf.mxu3  ;;  %v1113_v21 = vpop.f32.mrf.mxu2 }
 0x2b3   : > { %2673 = vpow2.f32 %v2530_v15  ;;  %v1134_v14 = vadd.f32 %v1133_v25, %v1053_v22  ;;  %v1114_v19 = vadd.f32 %v1113_v21, %v1033_v24 }
 0x2b5   : > { %v1139_v26 = vadd.f32 %v1134_v14, %v6125_v40  ;;  %v1138_v16 = vadd.f32 %v1114_v19, %v6126_v56 }
 0x2b7   : > { %v2531_v13 = vmul.f32 -1.442695, %v1139_v26 }
 0x2b8   : > { %v2672_v12 = vpop.eup %2671 }
 0x2b9   : > { %v2674_v11 = vpop.eup %2673  ;;  %v1143_v10 = vadd.f32 1.0, %v2672_v12  ;;  %2675 = vpow2.f32 %v2531_v13 }
 0x2ba   : > { %v1162_v27 = vadd.f32 1.0, %v2674_v11 }
 0x2bb   : > { %2677 = vrcp.f32 %v1143_v10  ;;  %v1155_v26 = vand.u32 2147483648, %v1143_v10  ;;  %v1153_v11 = vand.u32 2147483647, %v1143_v10  ;;  %vm1149_vm10 = vweird.f32 %v1143_v10 }
 0x2bc   : > { %2679 = vrcp.f32 %v1162_v27  ;;  %v1174_v12 = vand.u32 2147483648, %v1162_v27  ;;  %v1172_v24 = vand.u32 2147483647, %v1162_v27  ;;  %vm1168_vm11 = vweird.f32 %v1162_v27 }
 0x2bd   : > { %v1156_v19 = vor.u32 1.1754944e-38, %v1155_v26  ;;  %vm1154_vm14 = vcmp.eq.f32.partialorder %v1153_v11, 8.507059e+37  ;;  %v6221_v11 = vld [vmem:[#allocation33_spill] sm:$0xff] }
 0x2be   : > { %vm1173_vm15 = vcmp.eq.f32.partialorder %v1172_v24, 8.507059e+37  ;;  %v6223_v24 = vld [vmem:[#allocation26_spill] sm:$0xff] }
 0x2bf   : > { %v2676_v18 = vpop.eup %2675 }
 0x2c0   : > { %v1182_v23 = vadd.f32 1.0, %v2676_v18 }
 0x2c1   : > { %v2678_v28 = vpop.eup %2677 }
 0x2c2   : > { %v2680_v17 = vpop.eup %2679  ;;  %v1145_v15 = vmul.f32 %v2678_v28, %v1143_v10  ;;  %2681 = vrcp.f32 %v1182_v23  ;;  %vm1150_vm8 = vweird.f32 %v2678_v28  ;;  %v1194_v26 = vand.u32 2147483648, %v1182_v23 }
 0x2c3   : > { %v1164_v22 = vmul.f32 %v2680_v17, %v1162_v27  ;;  %2683 = vtanh.f32 %v1138_v16  ;;  %vm1169_vm9 = vweird.f32 %v2680_v17  ;;  %vm1151_vm12 = vmor %vm1149_vm10, %vm1150_vm8  ;;  %vm1188_vm1 = vweird.f32 %v1182_v23 }
 0x2c4   : > { %v1146_v14 = vsub.f32 1.0, %v1145_v15  ;;  %vm1170_vm13 = vmor %vm1168_vm11, %vm1169_vm9  ;;  %v1175_v15 = vor.u32 1.1754944e-38, %v1174_v12 }
 0x2c5   : > { %v1165_v25 = vsub.f32 1.0, %v1164_v22 }
 0x2c6   : > { %v1147_v13 = vmul.f32 %v2678_v28, %v1146_v14 }
 0x2c7   : > { %v1166_v35 = vmul.f32 %v2680_v17, %v1165_v25 }
 0x2c8   : > { %v2682_v21 = vpop.eup %2681  ;;  %v1148_v18 = vadd.f32 %v2678_v28, %v1147_v13 }
 0x2c9   : > { %v1167_v56 = vadd.f32 %v2680_v17, %v1166_v35  ;;  %v1184_v40 = vmul.f32 %v2682_v21, %v1182_v23  ;;  %v2684_v16 = vpop.eup %2683  ;;  %vm1189_vm0 = vweird.f32 %v2682_v21  ;;  %v6222_v35 = vld [vmem:[#allocation25_spill] sm:$0xff] }
 0x2ca   : > { %v1152_v22 = vsel %vm1151_vm12, %v2678_v28, %v1148_v18  ;;  %v1192_v28 = vand.u32 2147483647, %v1182_v23  ;;  %vm1190_vm2 = vmor %vm1188_vm1, %vm1189_vm0  ;;  %v6220_v23 = vld [vmem:[#allocation24_spill] sm:$0xff]  ;;  %v6225_v18 = vld [vmem:[#allocation37_spill] sm:$0xff] }
 0x2cb   : > { %v1157_v37 = vsel %vm1154_vm14, %v1156_v19, %v1152_v22  ;;  %v1171_v14 = vsel %vm1170_vm13, %v2680_v17, %v1167_v56  ;;  %v1185_v34 = vsub.f32 1.0, %v1184_v40  ;;  %v1195_v56 = vor.u32 1.1754944e-38, %v1194_v26  ;;  %v6226_v19 = vld [vmem:[#allocation28_spill] sm:$0xff]  ;;  %v6228_v22 = vld [vmem:[#allocation31_spill] sm:$0xff] }
 0x2cc   : > { %v1176_v25 = vsel %vm1173_vm15, %v1175_v15, %v1171_v14  ;;  %v1199_v9 = vmul.f32 %v2684_v16, %v1157_v37  ;;  %vm1193_vm3 = vcmp.eq.f32.partialorder %v1192_v28, 8.507059e+37  ;;  %v6227_v15 = vld [vmem:[#allocation30_spill] sm:$0xff]  ;;  %v6229_v16 = vld [vmem:[#allocation41_spill] sm:$0xff]  ;;  %v6230_v14 = vld [vmem:[#allocation32_spill] sm:$0xff] }
 0x2cd   : > { %v1198_v8 = vmul.f32 %v1176_v25, %v4148_v20  ;;  %v1186_v13 = vmul.f32 %v2682_v21, %v1185_v34  ;;  %v2532_v34 = vld [vmem:[%s3477_s1 + $0x18] sm:$0xff]  ;;  %v6217_v20 = vld [vmem:[#allocation29_spill] sm:$0xff]  ;;  %v6231_v25 = vld [vmem:[#allocation34_spill] sm:$0xff] }
 0x2ce   : > { %v6234_v26 = vld [vmem:[#allocation36_spill] sm:$0xff]  ;;  %v6235_v28 = vld [vmem:[#allocation38_spill] sm:$0xff] }
 0x2cf   : > { %v4541_v10 = vadd.f32 %v1199_v9, %v1198_v8  ;;  %v1187_v27 = vadd.f32 %v2682_v21, %v1186_v13  ;;  %v6218_v8 = vld [vmem:[#allocation22_spill] sm:$0xff]  ;;  %v6219_v9 = vld [vmem:[#allocation23_spill] sm:$0xff] }
 0x2d0   : > { %v6232_v13 = vld [vmem:[#allocation35_spill] sm:$0xff] }
 0x2d1   : > { %2685 = vtanh.f32 %v4541_v10  ;;  %v1191_v12 = vsel %vm1190_vm2, %v2682_v21, %v1187_v27  ;;  %v6224_v21 = vld [vmem:[#allocation27_spill] sm:$0xff]  ;;  %v6233_v27 = vld [vmem:[#allocation48_spill] sm:$0xff] }
 0x2d2   : > { %v1196_v17 = vsel %vm1193_vm3, %v1195_v56, %v1191_v12  ;;  %v6236_v12 = vld [vmem:[#allocation39_spill] sm:$0xff]  ;;  %v6237_v56 = vld [vmem:[#allocation52_spill] sm:$0xff] }
 0x2d7   : > { %v2686_v40 = vpop.eup %2685 }
 0x2d8   : > { %v1202_v37 = vmul.f32 %v2686_v40, %v1196_v17  ;;  %v6238_v40 = vld [vmem:[#allocation40_spill] sm:$0xff]  ;;  %v6239_v17 = vld [vmem:[#allocation42_spill] sm:$0xff] }
 0x2da   : > { %1221 = vmatmul.f32.vlgmr.msra.gmra.mxu0 %v1202_v37  ;;  %1241 = vmatmul.f32.vlgmr.msra.gmra.mxu1 %v1202_v37 }
 0x2db   : > { %1261 = vmatmul.f32.vlgmr.msra.gmra.mxu2 %v1202_v37  ;;  %1281 = vmatmul.f32.vlgmr.msra.gmra.mxu3 %v1202_v37  ;;  %v6240_v37 = vld [vmem:[#allocation43_spill] sm:$0xff] }
 0x2dc   : > { %1434 = vmatpush.msra.mxu0 %v4151_v50  ;;  %1454 = vmatpush.msra.mxu1 %v4154_v29 }
 0x2dd   : > { %1474 = vmatpush.msra.mxu2 %v4157_v30  ;;  %1494 = vmatpush.msra.mxu3 %v4160_v31 }
 0x2de   : > { %1435 = vmatpush.msra.mxu0 %v4163_v32  ;;  %1455 = vmatpush.msra.mxu1 %v4166_v33 }
 0x2df   : > { %1475 = vmatpush.msra.mxu2 %v4170_v38  ;;  %1495 = vmatpush.msra.mxu3 %v4173_v41 }
 0x2e0   : > { %1436 = vmatpush.msra.mxu0 %v4176_v44  ;;  %1456 = vmatpush.msra.mxu1 %v4179_v45 }
 0x2e1   : > { %1476 = vmatpush.msra.mxu2 %v4182_v59  ;;  %1496 = vmatpush.msra.mxu3 %v4185_v48 }
 0x2e2   : > { %1301 = vmatmul.f32.vlgmr.msrb.gmra.mxu0 %v2532_v34  ;;  %1321 = vmatmul.f32.vlgmr.msrb.gmra.mxu1 %v2532_v34 }
 0x2e3   : > { %1341 = vmatmul.f32.vlgmr.msrb.gmra.mxu2 %v2532_v34  ;;  %1361 = vmatmul.f32.vlgmr.msrb.gmra.mxu3 %v2532_v34  ;;  %v6241_v34 = vld [vmem:[#allocation56_spill] sm:$0xff] }
 0x2e4   : > { %1437 = vmatpush.msra.mxu0 %v4188_v46  ;;  %1457 = vmatpush.msra.mxu1 %v4191_v60 }
 0x2e5   : > { %1477 = vmatpush.msra.mxu2 %v4194_v55  ;;  %1497 = vmatpush.msra.mxu3 %v4197_v54 }
 0x2e6   : > { %1438 = vmatpush.msra.mxu0 %v4200_v47  ;;  %1458 = vmatpush.msra.mxu1 %v4203_v57 }
 0x2e7   : > { %1478 = vmatpush.msra.mxu2 %v4206_v63  ;;  %1498 = vmatpush.msra.mxu3 %v4209_v49 }
 0x2e8   : > { %1439 = vmatpush.msra.mxu0 %v4212_v62  ;;  %1459 = vmatpush.msra.mxu1 %v4215_v53 }
 0x2e9   : > { %1479 = vmatpush.msra.mxu2 %v4218_v51  ;;  %1499 = vmatpush.msra.mxu3 %v4221_v61 }
 0x2ea   : > { %1440 = vmatpush.msra.mxu0 %v4224_v43  ;;  %1460 = vmatpush.msra.mxu1 %v4227_v42 }
 0x2eb   : > { %1480 = vmatpush.msra.mxu2 %v4230_v58  ;;  %1500 = vmatpush.msra.mxu3 %v4233_v52 }
 0x2ec   : > { %1441 = vmatpush.msra.mxu0 %v4236_v39  ;;  %1461 = vmatpush.msra.mxu1 %v4239_v36 }
 0x2ed   : > { %1481 = vmatpush.msra.mxu2 %v4242_v0  ;;  %1501 = vmatpush.msra.mxu3 %v4245_v1 }
 0x2ee   : > { %1442 = vmatpush.msra.mxu0 %v4248_v2  ;;  %1462 = vmatpush.msra.mxu1 %v4251_v3 }
 0x2ef   : > { %1482 = vmatpush.msra.mxu2 %v4254_v4  ;;  %1502 = vmatpush.msra.mxu3 %v4257_v5 }
 0x2f0   : > { %1443 = vmatpush.msra.mxu0 %v4260_v6  ;;  %1463 = vmatpush.msra.mxu1 %v4263_v7 }
 0x2f1   : > { %1483 = vmatpush.msra.mxu2 %v6217_v20  ;;  %1503 = vmatpush.msra.mxu3 %v6218_v8 }
 0x2f2   : > { %1444 = vmatpush.msra.mxu0 %v6219_v9  ;;  %1464 = vmatpush.msra.mxu1 %v6220_v23 }
 0x2f3   : > { %1484 = vmatpush.msra.mxu2 %v6221_v11  ;;  %1504 = vmatpush.msra.mxu3 %v6222_v35 }
 0x2f4   : > { %1445 = vmatpush.msra.mxu0 %v6223_v24  ;;  %1465 = vmatpush.msra.mxu1 %v6224_v21  ;;  %v6309_v21 = vld [vmem:[#allocation114_spill] sm:$0xff] }
 0x2f5   : > { %1485 = vmatpush.msra.mxu2 %v6225_v18  ;;  %1505 = vmatpush.msra.mxu3 %v6226_v19 }
 0x2f6   : > { %1446 = vmatpush.msra.mxu0 %v6227_v15  ;;  %1466 = vmatpush.msra.mxu1 %v6228_v22 }
 0x2f7   : > { %1486 = vmatpush.msra.mxu2 %v6229_v16  ;;  %1506 = vmatpush.msra.mxu3 %v6230_v14 }
 0x2f8   : > { %1447 = vmatpush.msra.mxu0 %v6231_v25  ;;  %1467 = vmatpush.msra.mxu1 %v6232_v13  ;;  %v6242_v25 = vld [vmem:[#allocation44_spill] sm:$0xff]  ;;  %v6243_v13 = vld [vmem:[#allocation45_spill] sm:$0xff] }
 0x2f9   : > { %1487 = vmatpush.msra.mxu2 %v6233_v27  ;;  %1507 = vmatpush.msra.mxu3 %v6234_v26  ;;  %v6244_v27 = vld [vmem:[#allocation46_spill] sm:$0xff]  ;;  %v6245_v26 = vld [vmem:[#allocation60_spill] sm:$0xff] }
 0x2fa   : > { %1448 = vmatpush.msra.mxu0 %v6235_v28  ;;  %1468 = vmatpush.msra.mxu1 %v6236_v12  ;;  %v6246_v28 = vld [vmem:[#allocation47_spill] sm:$0xff]  ;;  %v6247_v12 = vld [vmem:[#allocation49_spill] sm:$0xff] }
 0x2fb   : > { %1488 = vmatpush.msra.mxu2 %v6237_v56  ;;  %1508 = vmatpush.msra.mxu3 %v6238_v40  ;;  %v6248_v56 = vld [vmem:[#allocation50_spill] sm:$0xff]  ;;  %v6249_v40 = vld [vmem:[#allocation64_spill] sm:$0xff] }
 0x2fc   : > { %1449 = vmatpush.msra.mxu0 %v6239_v17  ;;  %1469 = vmatpush.msra.mxu1 %v6240_v37  ;;  %v6250_v17 = vld [vmem:[#allocation51_spill] sm:$0xff]  ;;  %v6251_v37 = vld [vmem:[#allocation53_spill] sm:$0xff] }
 0x2fd   : > { %1489 = vmatpush.msra.mxu2 %v6241_v34  ;;  %1509 = vmatpush.msra.mxu3 %v6242_v25  ;;  %v6252_v34 = vld [vmem:[#allocation54_spill] sm:$0xff]  ;;  %v6253_v25 = vld [vmem:[#allocation68_spill] sm:$0xff] }
 0x2fe   : > { %1514 = vmatpush.msrb.mxu0 %v6243_v13  ;;  %1534 = vmatpush.msrb.mxu1 %v6244_v27  ;;  %v6254_v13 = vld [vmem:[#allocation55_spill] sm:$0xff]  ;;  %v6255_v27 = vld [vmem:[#allocation57_spill] sm:$0xff] }
 0x2ff   : > { %1554 = vmatpush.msrb.mxu2 %v6245_v26  ;;  %1574 = vmatpush.msrb.mxu3 %v6246_v28  ;;  %v6256_v26 = vld [vmem:[#allocation58_spill] sm:$0xff]  ;;  %v6257_v28 = vld [vmem:[#allocation72_spill] sm:$0xff] }
 0x300   : > { %1515 = vmatpush.msrb.mxu0 %v6247_v12  ;;  %1535 = vmatpush.msrb.mxu1 %v6248_v56  ;;  %v6258_v12 = vld [vmem:[#allocation59_spill] sm:$0xff]  ;;  %v6259_v56 = vld [vmem:[#allocation61_spill] sm:$0xff] }
 0x301   : > { %1555 = vmatpush.msrb.mxu2 %v6249_v40  ;;  %1575 = vmatpush.msrb.mxu3 %v6250_v17  ;;  %v6260_v40 = vld [vmem:[#allocation62_spill] sm:$0xff]  ;;  %v6261_v17 = vld [vmem:[#allocation76_spill] sm:$0xff] }
 0x302   : > { %1516 = vmatpush.msrb.mxu0 %v6251_v37  ;;  %1536 = vmatpush.msrb.mxu1 %v6252_v34  ;;  %v6262_v37 = vld [vmem:[#allocation63_spill] sm:$0xff]  ;;  %v6263_v34 = vld [vmem:[#allocation65_spill] sm:$0xff] }
 0x303   : > { %1556 = vmatpush.msrb.mxu2 %v6253_v25  ;;  %1576 = vmatpush.msrb.mxu3 %v6254_v13  ;;  %v6264_v25 = vld [vmem:[#allocation66_spill] sm:$0xff]  ;;  %v6265_v13 = vld [vmem:[#allocation80_spill] sm:$0xff] }
 0x304   : > { %1517 = vmatpush.msrb.mxu0 %v6255_v27  ;;  %1537 = vmatpush.msrb.mxu1 %v6256_v26  ;;  %v6266_v27 = vld [vmem:[#allocation67_spill] sm:$0xff]  ;;  %v6267_v26 = vld [vmem:[#allocation69_spill] sm:$0xff] }
 0x305   : > { %1557 = vmatpush.msrb.mxu2 %v6257_v28  ;;  %1577 = vmatpush.msrb.mxu3 %v6258_v12  ;;  %v6268_v28 = vld [vmem:[#allocation70_spill] sm:$0xff]  ;;  %v6269_v12 = vld [vmem:[#allocation84_spill] sm:$0xff] }
 0x306   : > { %1518 = vmatpush.msrb.mxu0 %v6259_v56  ;;  %1538 = vmatpush.msrb.mxu1 %v6260_v40  ;;  %v6270_v56 = vld [vmem:[#allocation71_spill] sm:$0xff]  ;;  %v6271_v40 = vld [vmem:[#allocation73_spill] sm:$0xff] }
 0x307   : > { %1558 = vmatpush.msrb.mxu2 %v6261_v17  ;;  %1578 = vmatpush.msrb.mxu3 %v6262_v37  ;;  %v6272_v17 = vld [vmem:[#allocation74_spill] sm:$0xff]  ;;  %v6273_v37 = vld [vmem:[#allocation88_spill] sm:$0xff] }
 0x308   : > { %1519 = vmatpush.msrb.mxu0 %v6263_v34  ;;  %1539 = vmatpush.msrb.mxu1 %v6264_v25  ;;  %v6274_v34 = vld [vmem:[#allocation75_spill] sm:$0xff]  ;;  %v6275_v25 = vld [vmem:[#allocation77_spill] sm:$0xff] }
 0x309   : > { %1559 = vmatpush.msrb.mxu2 %v6265_v13  ;;  %1579 = vmatpush.msrb.mxu3 %v6266_v27  ;;  %v6276_v13 = vld [vmem:[#allocation78_spill] sm:$0xff]  ;;  %v6277_v27 = vld [vmem:[#allocation92_spill] sm:$0xff] }
 0x30a   : > { %1520 = vmatpush.msrb.mxu0 %v6267_v26  ;;  %1540 = vmatpush.msrb.mxu1 %v6268_v28  ;;  %v6278_v26 = vld [vmem:[#allocation79_spill] sm:$0xff]  ;;  %v6279_v28 = vld [vmem:[#allocation81_spill] sm:$0xff] }
 0x30b   : > { %1560 = vmatpush.msrb.mxu2 %v6269_v12  ;;  %1580 = vmatpush.msrb.mxu3 %v6270_v56  ;;  %v6280_v12 = vld [vmem:[#allocation82_spill] sm:$0xff]  ;;  %v6281_v56 = vld [vmem:[#allocation96_spill] sm:$0xff] }
 0x30c   : > { %1521 = vmatpush.msrb.mxu0 %v6271_v40  ;;  %1541 = vmatpush.msrb.mxu1 %v6272_v17  ;;  %v6282_v40 = vld [vmem:[#allocation83_spill] sm:$0xff]  ;;  %v6283_v17 = vld [vmem:[#allocation85_spill] sm:$0xff] }
 0x30d   : > { %1561 = vmatpush.msrb.mxu2 %v6273_v37  ;;  %1581 = vmatpush.msrb.mxu3 %v6274_v34  ;;  %v6284_v37 = vld [vmem:[#allocation86_spill] sm:$0xff]  ;;  %v6285_v34 = vld [vmem:[#allocation100_spill] sm:$0xff] }
 0x30e   : > { %1522 = vmatpush.msrb.mxu0 %v6275_v25  ;;  %1542 = vmatpush.msrb.mxu1 %v6276_v13  ;;  %v6286_v25 = vld [vmem:[#allocation87_spill] sm:$0xff]  ;;  %v6287_v13 = vld [vmem:[#allocation89_spill] sm:$0xff] }
 0x30f   : > { %1562 = vmatpush.msrb.mxu2 %v6277_v27  ;;  %1582 = vmatpush.msrb.mxu3 %v6278_v26  ;;  %v6288_v27 = vld [vmem:[#allocation90_spill] sm:$0xff]  ;;  %v6289_v26 = vld [vmem:[#allocation104_spill] sm:$0xff] }
 0x310   : > { %1523 = vmatpush.msrb.mxu0 %v6279_v28  ;;  %1543 = vmatpush.msrb.mxu1 %v6280_v12  ;;  %v6290_v28 = vld [vmem:[#allocation91_spill] sm:$0xff]  ;;  %v6291_v12 = vld [vmem:[#allocation93_spill] sm:$0xff] }
 0x311   : > { %1563 = vmatpush.msrb.mxu2 %v6281_v56  ;;  %1583 = vmatpush.msrb.mxu3 %v6282_v40  ;;  %v6292_v56 = vld [vmem:[#allocation94_spill] sm:$0xff]  ;;  %v6293_v40 = vld [vmem:[#allocation108_spill] sm:$0xff] }
 0x312   : > { %1524 = vmatpush.msrb.mxu0 %v6283_v17  ;;  %1544 = vmatpush.msrb.mxu1 %v6284_v37  ;;  %v6294_v17 = vld [vmem:[#allocation95_spill] sm:$0xff]  ;;  %v6295_v37 = vld [vmem:[#allocation97_spill] sm:$0xff] }
 0x313   : > { %1564 = vmatpush.msrb.mxu2 %v6285_v34  ;;  %1584 = vmatpush.msrb.mxu3 %v6286_v25  ;;  %v6296_v34 = vld [vmem:[#allocation98_spill] sm:$0xff]  ;;  %v6297_v25 = vld [vmem:[#allocation109_spill] sm:$0xff] }
 0x314   : > { %1525 = vmatpush.msrb.mxu0 %v6287_v13  ;;  %1545 = vmatpush.msrb.mxu1 %v6288_v27  ;;  %v6298_v13 = vld [vmem:[#allocation99_spill] sm:$0xff]  ;;  %v6299_v27 = vld [vmem:[#allocation101_spill] sm:$0xff] }
 0x315   : > { %1565 = vmatpush.msrb.mxu2 %v6289_v26  ;;  %1585 = vmatpush.msrb.mxu3 %v6290_v28  ;;  %v6300_v26 = vld [vmem:[#allocation102_spill] sm:$0xff] }
 0x316   : > { %1526 = vmatpush.msrb.mxu0 %v6291_v12  ;;  %1546 = vmatpush.msrb.mxu1 %v6292_v56  ;;  %v6301_v28 = vld [vmem:[#allocation110_spill] sm:$0xff]  ;;  %v6302_v12 = vld [vmem:[#allocation103_spill] sm:$0xff]  ;;  %v6303_v56 = vld [vmem:[#allocation105_spill] sm:$0xff] }
 0x317   : > { %1566 = vmatpush.msrb.mxu2 %v6293_v40  ;;  %1586 = vmatpush.msrb.mxu3 %v6294_v17  ;;  %v6304_v40 = vld [vmem:[#allocation106_spill] sm:$0xff]  ;;  %v6305_v17 = vld [vmem:[#allocation111_spill] sm:$0xff] }
 0x318   : > { %1527 = vmatpush.msrb.mxu0 %v6295_v37  ;;  %1547 = vmatpush.msrb.mxu1 %v6296_v34  ;;  %v6306_v37 = vld [vmem:[#allocation107_spill] sm:$0xff] }
 0x319   : > { %1567 = vmatpush.msrb.mxu2 %v6297_v25  ;;  %1587 = vmatpush.msrb.mxu3 %v6298_v13 }
 0x31a   : > { %1528 = vmatpush.msrb.mxu0 %v6299_v27  ;;  %1548 = vmatpush.msrb.mxu1 %v6300_v26  ;;  %v6307_v26 = vld [vmem:[#allocation112_spill] sm:$0xff] }
 0x31b   : > { %1568 = vmatpush.msrb.mxu2 %v6301_v28  ;;  %1588 = vmatpush.msrb.mxu3 %v6302_v12  ;;  %v6308_v28 = vld [vmem:[#allocation113_spill] sm:$0xff] }
 0x31c   : > { %1529 = vmatpush.msrb.mxu0 %v6303_v56  ;;  %1549 = vmatpush.msrb.mxu1 %v6304_v40 }
 0x31d   : > { %1569 = vmatpush.msrb.mxu2 %v6305_v17  ;;  %1589 = vmatpush.msrb.mxu3 %v6306_v37 }
 0x357   : > { %v1222_v34 = vpop.f32.mrf.mxu0  ;;  %v1242_v25 = vpop.f32.mrf.mxu1 }
 0x35e   : > { %v1282_v14 = vpop.f32.mrf.mxu3  ;;  %v1262_v12 = vpop.f32.mrf.mxu2 }
 0x35f   : > { %v1302_v13 = vpop.f32.mrf.mxu0  ;;  %v1322_v16 = vpop.f32.mrf.mxu1 }
 0x360   : > { %v1303_v27 = vadd.f32 %v1302_v13, %v1222_v34  ;;  %v1323_v22 = vadd.f32 %v1322_v16, %v1242_v25 }
 0x362   : > { %v1365_v15 = vadd.f32 %v1303_v27, %v6307_v26  ;;  %v1366_v19 = vadd.f32 %v1323_v22, %v6308_v28 }
 0x364   : > { %v2533_v18 = vmul.f32 -1.442695, %v1365_v15  ;;  %v2534_v56 = vmul.f32 -1.442695, %v1366_v19  ;;  %v6310_v19 = vld [vmem:[#allocation115_spill] sm:$0xff] }
 0x366   : > { %2687 = vpow2.f32 %v2533_v18  ;;  %v1362_v40 = vpop.f32.mrf.mxu3  ;;  %v1342_v16 = vpop.f32.mrf.mxu2 }
 0x367   : > { %2689 = vpow2.f32 %v2534_v56  ;;  %v1363_v17 = vadd.f32 %v1362_v40, %v1282_v14  ;;  %v1343_v25 = vadd.f32 %v1342_v16, %v1262_v12 }
 0x369   : > { %v1368_v37 = vadd.f32 %v1363_v17, %v6309_v21  ;;  %v1367_v18 = vadd.f32 %v1343_v25, %v6310_v19 }
 0x36b   : > { %v2535_v24 = vmul.f32 -1.442695, %v1368_v37 }
 0x36c   : > { %v2688_v35 = vpop.eup %2687 }
 0x36d   : > { %v2690_v11 = vpop.eup %2689  ;;  %v1372_v23 = vadd.f32 1.0, %v2688_v35  ;;  %2691 = vpow2.f32 %v2535_v24 }
 0x36e   : > { %v1391_v13 = vadd.f32 1.0, %v2690_v11 }
 0x36f   : > { %2693 = vrcp.f32 %v1372_v23  ;;  %v1384_v37 = vand.u32 2147483648, %v1372_v23  ;;  %v1382_v11 = vand.u32 2147483647, %v1372_v23  ;;  %vm1378_vm6 = vweird.f32 %v1372_v23 }
 0x370   : > { %2695 = vrcp.f32 %v1391_v13  ;;  %v1403_v35 = vand.u32 2147483648, %v1391_v13  ;;  %v1401_v12 = vand.u32 2147483647, %v1391_v13  ;;  %vm1397_vm7 = vweird.f32 %v1391_v13 }
 0x371   : > { %v1385_v25 = vor.u32 1.1754944e-38, %v1384_v37  ;;  %vm1383_vm10 = vcmp.eq.f32.partialorder %v1382_v11, 8.507059e+37  ;;  %v6354_v11 = vld [vmem:[#allocation62_spill] sm:$0xff] }
 0x372   : > { %vm1402_vm11 = vcmp.eq.f32.partialorder %v1401_v12, 8.507059e+37  ;;  %v6355_v12 = vld [vmem:[#allocation76_spill] sm:$0xff] }
 0x373   : > { %v2692_v22 = vpop.eup %2691 }
 0x374   : > { %v1411_v27 = vadd.f32 1.0, %v2692_v22 }
 0x375   : > { %v2694_v15 = vpop.eup %2693 }
 0x376   : > { %v2696_v34 = vpop.eup %2695  ;;  %v1374_v56 = vmul.f32 %v2694_v15, %v1372_v23  ;;  %2697 = vrcp.f32 %v1411_v27  ;;  %vm1379_vm4 = vweird.f32 %v2694_v15  ;;  %vm1417_vm13 = vweird.f32 %v1411_v27 }
 0x377   : > { %v1393_v14 = vmul.f32 %v2696_v34, %v1391_v13  ;;  %2699 = vtanh.f32 %v1367_v18  ;;  %vm1398_vm5 = vweird.f32 %v2696_v34  ;;  %vm1380_vm8 = vmor %vm1378_vm6, %vm1379_vm4 }
 0x378   : > { %v1375_v40 = vsub.f32 1.0, %v1374_v56  ;;  %vm1399_vm9 = vmor %vm1397_vm7, %vm1398_vm5  ;;  %v1404_v56 = vor.u32 1.1754944e-38, %v1403_v35  ;;  %v6353_v35 = vld [vmem:[#allocation61_spill] sm:$0xff] }
 0x379   : > { %v1394_v17 = vsub.f32 1.0, %v1393_v14 }
 0x37a   : > { %v1376_v24 = vmul.f32 %v2694_v15, %v1375_v40 }
 0x37b   : > { %v1395_v21 = vmul.f32 %v2696_v34, %v1394_v17 }
 0x37c   : > { %v2698_v16 = vpop.eup %2697  ;;  %v1377_v22 = vadd.f32 %v2694_v15, %v1376_v24 }
 0x37d   : > { %v1396_v19 = vadd.f32 %v2696_v34, %v1395_v21  ;;  %v1413_v28 = vmul.f32 %v2698_v16, %v1411_v27  ;;  %v2700_v18 = vpop.eup %2699  ;;  %vm1418_vm12 = vweird.f32 %v2698_v16  ;;  %v1423_v21 = vand.u32 2147483648, %v1411_v27 }
 0x37e   : > { %v1381_v14 = vsel %vm1380_vm8, %v2694_v15, %v1377_v22  ;;  %v1421_v15 = vand.u32 2147483647, %v1411_v27  ;;  %vm1419_vm14 = vmor %vm1417_vm13, %vm1418_vm12  ;;  %v6352_v27 = vld [vmem:[#allocation59_spill] sm:$0xff]  ;;  %v6357_v22 = vld [vmem:[#allocation65_spill] sm:$0xff] }
 0x37f   : > { %v1386_v26 = vsel %vm1383_vm10, %v1385_v25, %v1381_v14  ;;  %v1400_v40 = vsel %vm1399_vm9, %v2696_v34, %v1396_v19  ;;  %v1414_v9 = vsub.f32 1.0, %v1413_v28  ;;  %v1424_v19 = vor.u32 1.1754944e-38, %v1423_v21  ;;  %v6358_v25 = vld [vmem:[#allocation66_spill] sm:$0xff]  ;;  %v6360_v14 = vld [vmem:[#allocation67_spill] sm:$0xff] }
 0x380   : > { %v1405_v17 = vsel %vm1402_vm11, %v1404_v56, %v1400_v40  ;;  %v1428_v8 = vmul.f32 %v2700_v18, %v1386_v26  ;;  %vm1422_vm15 = vcmp.eq.f32.partialorder %v1421_v15, 8.507059e+37  ;;  %v6359_v56 = vld [vmem:[#allocation80_spill] sm:$0xff]  ;;  %v6361_v18 = vld [vmem:[#allocation69_spill] sm:$0xff]  ;;  %v6362_v40 = vld [vmem:[#allocation70_spill] sm:$0xff] }
 0x381   : > { %v1427_v20 = vmul.f32 %v1405_v17, %v4541_v10  ;;  %v1415_v24 = vmul.f32 %v2698_v16, %v1414_v9  ;;  %v2536_v10 = vld [vmem:[%s3477_s1 + $0x20] sm:$0xff]  ;;  %v6366_v21 = vld [vmem:[#allocation74_spill] sm:$0xff] }
 0x382   : > { %v6351_v9 = vld [vmem:[#allocation72_spill] sm:$0xff] }
 0x383   : > { %v4678_v23 = vadd.f32 %v1428_v8, %v1427_v20  ;;  %v1416_v13 = vadd.f32 %v2698_v16, %v1415_v24  ;;  %v6349_v20 = vld [vmem:[#allocation57_spill] sm:$0xff]  ;;  %v6350_v8 = vld [vmem:[#allocation58_spill] sm:$0xff]  ;;  %v6363_v17 = vld [vmem:[#allocation84_spill] sm:$0xff] }
 0x384   : > { %v6364_v24 = vld [vmem:[#allocation71_spill] sm:$0xff]  ;;  %v6367_v15 = vld [vmem:[#allocation88_spill] sm:$0xff] }
 0x385   : > { %2701 = vtanh.f32 %v4678_v23  ;;  %v1420_v37 = vsel %vm1419_vm14, %v2698_v16, %v1416_v13  ;;  %v6356_v16 = vld [vmem:[#allocation63_spill] sm:$0xff]  ;;  %v6365_v13 = vld [vmem:[#allocation73_spill] sm:$0xff] }
 0x386   : > { %v1425_v34 = vsel %vm1422_vm15, %v1424_v19, %v1420_v37  ;;  %v6368_v37 = vld [vmem:[#allocation75_spill] sm:$0xff]  ;;  %v6369_v19 = vld [vmem:[#allocation77_spill] sm:$0xff] }
 0x38b   : > { %v2702_v28 = vpop.eup %2701 }
 0x38c   : > { %v1431_v26 = vmul.f32 %v2702_v28, %v1425_v34  ;;  %v6370_v28 = vld [vmem:[#allocation78_spill] sm:$0xff]  ;;  %v6371_v34 = vld [vmem:[#allocation92_spill] sm:$0xff] }
 0x38e   : > { %1450 = vmatmul.f32.vlgmr.msra.gmra.mxu0 %v1431_v26  ;;  %1470 = vmatmul.f32.vlgmr.msra.gmra.mxu1 %v1431_v26 }
 0x38f   : > { %1490 = vmatmul.f32.vlgmr.msra.gmra.mxu2 %v1431_v26  ;;  %1510 = vmatmul.f32.vlgmr.msra.gmra.mxu3 %v1431_v26  ;;  %v6372_v26 = vld [vmem:[#allocation79_spill] sm:$0xff] }
 0x390   : > { %1663 = vmatpush.msra.mxu0 %v4151_v50  ;;  %1683 = vmatpush.msra.mxu1 %v4154_v29  ;;  %v6311_v50 = vld [vmem:[#allocation29_spill] sm:$0xff]  ;;  %v6312_v29 = vld [vmem:[#allocation22_spill] sm:$0xff] }
 0x391   : > { %1703 = vmatpush.msra.mxu2 %v4157_v30  ;;  %1723 = vmatpush.msra.mxu3 %v4160_v31  ;;  %v6313_v30 = vld [vmem:[#allocation23_spill] sm:$0xff]  ;;  %v6314_v31 = vld [vmem:[#allocation24_spill] sm:$0xff] }
 0x392   : > { %1664 = vmatpush.msra.mxu0 %v4163_v32  ;;  %1684 = vmatpush.msra.mxu1 %v4166_v33  ;;  %v6315_v32 = vld [vmem:[#allocation33_spill] sm:$0xff] }
 0x393   : > { %1704 = vmatpush.msra.mxu2 %v4170_v38  ;;  %1724 = vmatpush.msra.mxu3 %v4173_v41  ;;  %v6316_v33 = vld [vmem:[#allocation25_spill] sm:$0xff]  ;;  %v6317_v38 = vld [vmem:[#allocation26_spill] sm:$0xff]  ;;  %v6318_v41 = vld [vmem:[#allocation27_spill] sm:$0xff] }
 0x394   : > { %1665 = vmatpush.msra.mxu0 %v4176_v44  ;;  %1685 = vmatpush.msra.mxu1 %v4179_v45  ;;  %v6319_v44 = vld [vmem:[#allocation37_spill] sm:$0xff]  ;;  %v6320_v45 = vld [vmem:[#allocation28_spill] sm:$0xff] }
 0x395   : > { %1705 = vmatpush.msra.mxu2 %v4182_v59  ;;  %1725 = vmatpush.msra.mxu3 %v4185_v48  ;;  %v6321_v59 = vld [vmem:[#allocation30_spill] sm:$0xff]  ;;  %v6322_v48 = vld [vmem:[#allocation31_spill] sm:$0xff] }
 0x396   : > { %1530 = vmatmul.f32.vlgmr.msrb.gmra.mxu0 %v2536_v10  ;;  %1550 = vmatmul.f32.vlgmr.msrb.gmra.mxu1 %v2536_v10 }
 0x397   : > { %1570 = vmatmul.f32.vlgmr.msrb.gmra.mxu2 %v2536_v10  ;;  %1590 = vmatmul.f32.vlgmr.msrb.gmra.mxu3 %v2536_v10  ;;  %v6373_v10 = vld [vmem:[#allocation81_spill] sm:$0xff] }
 0x398   : > { %1666 = vmatpush.msra.mxu0 %v4188_v46  ;;  %1686 = vmatpush.msra.mxu1 %v4191_v60  ;;  %v6323_v46 = vld [vmem:[#allocation41_spill] sm:$0xff]  ;;  %v6324_v60 = vld [vmem:[#allocation32_spill] sm:$0xff] }
 0x399   : > { %1706 = vmatpush.msra.mxu2 %v4194_v55  ;;  %1726 = vmatpush.msra.mxu3 %v4197_v54  ;;  %v6325_v55 = vld [vmem:[#allocation34_spill] sm:$0xff]  ;;  %v6326_v54 = vld [vmem:[#allocation35_spill] sm:$0xff] }
 0x39a   : > { %1667 = vmatpush.msra.mxu0 %v4200_v47  ;;  %1687 = vmatpush.msra.mxu1 %v4203_v57  ;;  %v6327_v47 = vld [vmem:[#allocation48_spill] sm:$0xff] }
 0x39b   : > { %1707 = vmatpush.msra.mxu2 %v4206_v63  ;;  %1727 = vmatpush.msra.mxu3 %v4209_v49  ;;  %v6328_v57 = vld [vmem:[#allocation36_spill] sm:$0xff]  ;;  %v6329_v63 = vld [vmem:[#allocation38_spill] sm:$0xff]  ;;  %v6330_v49 = vld [vmem:[#allocation39_spill] sm:$0xff] }
 0x39c   : > { %1668 = vmatpush.msra.mxu0 %v4212_v62  ;;  %1688 = vmatpush.msra.mxu1 %v4215_v53  ;;  %v6331_v62 = vld [vmem:[#allocation52_spill] sm:$0xff] }
 0x39d   : > { %1708 = vmatpush.msra.mxu2 %v4218_v51  ;;  %1728 = vmatpush.msra.mxu3 %v4221_v61  ;;  %v6332_v53 = vld [vmem:[#allocation40_spill] sm:$0xff]  ;;  %v6333_v51 = vld [vmem:[#allocation42_spill] sm:$0xff]  ;;  %v6334_v61 = vld [vmem:[#allocation43_spill] sm:$0xff] }
 0x39e   : > { %1669 = vmatpush.msra.mxu0 %v4224_v43  ;;  %1689 = vmatpush.msra.mxu1 %v4227_v42  ;;  %v6335_v43 = vld [vmem:[#allocation56_spill] sm:$0xff] }
 0x39f   : > { %1709 = vmatpush.msra.mxu2 %v4230_v58  ;;  %1729 = vmatpush.msra.mxu3 %v4233_v52  ;;  %v6336_v42 = vld [vmem:[#allocation44_spill] sm:$0xff]  ;;  %v6337_v58 = vld [vmem:[#allocation45_spill] sm:$0xff]  ;;  %v6338_v52 = vld [vmem:[#allocation46_spill] sm:$0xff] }
 0x3a0   : > { %1670 = vmatpush.msra.mxu0 %v4236_v39  ;;  %1690 = vmatpush.msra.mxu1 %v4239_v36  ;;  %v6339_v39 = vld [vmem:[#allocation60_spill] sm:$0xff]  ;;  %v6340_v36 = vld [vmem:[#allocation47_spill] sm:$0xff] }
 0x3a1   : > { %1710 = vmatpush.msra.mxu2 %v4242_v0  ;;  %1730 = vmatpush.msra.mxu3 %v4245_v1  ;;  %v6341_v0 = vld [vmem:[#allocation49_spill] sm:$0xff]  ;;  %v6342_v1 = vld [vmem:[#allocation50_spill] sm:$0xff] }
 0x3a2   : > { %1671 = vmatpush.msra.mxu0 %v4248_v2  ;;  %1691 = vmatpush.msra.mxu1 %v4251_v3  ;;  %v6343_v2 = vld [vmem:[#allocation64_spill] sm:$0xff]  ;;  %v6344_v3 = vld [vmem:[#allocation51_spill] sm:$0xff] }
 0x3a3   : > { %1711 = vmatpush.msra.mxu2 %v4254_v4  ;;  %1731 = vmatpush.msra.mxu3 %v4257_v5  ;;  %v6345_v4 = vld [vmem:[#allocation53_spill] sm:$0xff]  ;;  %v6346_v5 = vld [vmem:[#allocation54_spill] sm:$0xff] }
 0x3a4   : > { %1672 = vmatpush.msra.mxu0 %v4260_v6  ;;  %1692 = vmatpush.msra.mxu1 %v4263_v7  ;;  %v6347_v6 = vld [vmem:[#allocation68_spill] sm:$0xff]  ;;  %v6348_v7 = vld [vmem:[#allocation55_spill] sm:$0xff] }
 0x3a5   : > { %1712 = vmatpush.msra.mxu2 %v6311_v50  ;;  %1732 = vmatpush.msra.mxu3 %v6312_v29  ;;  %v6374_v50 = vld [vmem:[#allocation82_spill] sm:$0xff]  ;;  %v6375_v29 = vld [vmem:[#allocation96_spill] sm:$0xff] }
 0x3a6   : > { %1673 = vmatpush.msra.mxu0 %v6313_v30  ;;  %1693 = vmatpush.msra.mxu1 %v6314_v31  ;;  %v6376_v30 = vld [vmem:[#allocation83_spill] sm:$0xff]  ;;  %v6377_v31 = vld [vmem:[#allocation85_spill] sm:$0xff] }
 0x3a7   : > { %1713 = vmatpush.msra.mxu2 %v6315_v32  ;;  %1733 = vmatpush.msra.mxu3 %v6316_v33  ;;  %v6378_v32 = vld [vmem:[#allocation86_spill] sm:$0xff]  ;;  %v6379_v33 = vld [vmem:[#allocation100_spill] sm:$0xff] }
 0x3a8   : > { %1674 = vmatpush.msra.mxu0 %v6317_v38  ;;  %1694 = vmatpush.msra.mxu1 %v6318_v41  ;;  %v6380_v38 = vld [vmem:[#allocation87_spill] sm:$0xff]  ;;  %v6381_v41 = vld [vmem:[#allocation89_spill] sm:$0xff] }
 0x3a9   : > { %1714 = vmatpush.msra.mxu2 %v6319_v44  ;;  %1734 = vmatpush.msra.mxu3 %v6320_v45  ;;  %v6382_v44 = vld [vmem:[#allocation90_spill] sm:$0xff]  ;;  %v6383_v45 = vld [vmem:[#allocation104_spill] sm:$0xff] }
 0x3aa   : > { %1675 = vmatpush.msra.mxu0 %v6321_v59  ;;  %1695 = vmatpush.msra.mxu1 %v6322_v48  ;;  %v6384_v59 = vld [vmem:[#allocation91_spill] sm:$0xff]  ;;  %v6385_v48 = vld [vmem:[#allocation93_spill] sm:$0xff] }
 0x3ab   : > { %1715 = vmatpush.msra.mxu2 %v6323_v46  ;;  %1735 = vmatpush.msra.mxu3 %v6324_v60  ;;  %v6386_v46 = vld [vmem:[#allocation94_spill] sm:$0xff]  ;;  %v6387_v60 = vld [vmem:[#allocation108_spill] sm:$0xff] }
 0x3ac   : > { %1676 = vmatpush.msra.mxu0 %v6325_v55  ;;  %1696 = vmatpush.msra.mxu1 %v6326_v54  ;;  %v6388_v55 = vld [vmem:[#allocation95_spill] sm:$0xff]  ;;  %v6389_v54 = vld [vmem:[#allocation97_spill] sm:$0xff] }
 0x3ad   : > { %1716 = vmatpush.msra.mxu2 %v6327_v47  ;;  %1736 = vmatpush.msra.mxu3 %v6328_v57  ;;  %v6390_v47 = vld [vmem:[#allocation98_spill] sm:$0xff]  ;;  %v6391_v57 = vld [vmem:[#allocation109_spill] sm:$0xff] }
 0x3ae   : > { %1677 = vmatpush.msra.mxu0 %v6329_v63  ;;  %1697 = vmatpush.msra.mxu1 %v6330_v49  ;;  %v6392_v63 = vld [vmem:[#allocation99_spill] sm:$0xff]  ;;  %v6393_v49 = vld [vmem:[#allocation101_spill] sm:$0xff] }
 0x3af   : > { %1717 = vmatpush.msra.mxu2 %v6331_v62  ;;  %1737 = vmatpush.msra.mxu3 %v6332_v53  ;;  %v6394_v62 = vld [vmem:[#allocation102_spill] sm:$0xff] }
 0x3b0   : > { %1678 = vmatpush.msra.mxu0 %v6333_v51  ;;  %1698 = vmatpush.msra.mxu1 %v6334_v61  ;;  %v6395_v53 = vld [vmem:[#allocation110_spill] sm:$0xff]  ;;  %v6396_v51 = vld [vmem:[#allocation103_spill] sm:$0xff]  ;;  %v6397_v61 = vld [vmem:[#allocation105_spill] sm:$0xff] }
 0x3b1   : > { %1718 = vmatpush.msra.mxu2 %v6335_v43  ;;  %1738 = vmatpush.msra.mxu3 %v6336_v42  ;;  %v6398_v43 = vld [vmem:[#allocation106_spill] sm:$0xff]  ;;  %v6399_v42 = vld [vmem:[#allocation111_spill] sm:$0xff] }
 0x3b2   : > { %1743 = vmatpush.msrb.mxu0 %v6337_v58  ;;  %1763 = vmatpush.msrb.mxu1 %v6338_v52  ;;  %v6400_v58 = vld [vmem:[#allocation107_spill] sm:$0xff] }
 0x3b3   : > { %1783 = vmatpush.msrb.mxu2 %v6339_v39  ;;  %1803 = vmatpush.msrb.mxu3 %v6340_v36 }
 0x3b4   : > { %1744 = vmatpush.msrb.mxu0 %v6341_v0  ;;  %1764 = vmatpush.msrb.mxu1 %v6342_v1 }
 0x3b5   : > { %1784 = vmatpush.msrb.mxu2 %v6343_v2  ;;  %1804 = vmatpush.msrb.mxu3 %v6344_v3 }
 0x3b6   : > { %1745 = vmatpush.msrb.mxu0 %v6345_v4  ;;  %1765 = vmatpush.msrb.mxu1 %v6346_v5  ;;  %v6401_v4 = vld [vmem:[#allocation112_spill] sm:$0xff] }
 0x3b7   : > { %1785 = vmatpush.msrb.mxu2 %v6347_v6  ;;  %1805 = vmatpush.msrb.mxu3 %v6348_v7  ;;  %v6402_v6 = vld [vmem:[#allocation113_spill] sm:$0xff] }
 0x3b8   : > { %1746 = vmatpush.msrb.mxu0 %v6349_v20  ;;  %1766 = vmatpush.msrb.mxu1 %v6350_v8 }
 0x3b9   : > { %1786 = vmatpush.msrb.mxu2 %v6351_v9  ;;  %1806 = vmatpush.msrb.mxu3 %v6352_v27 }
 0x3ba   : > { %1747 = vmatpush.msrb.mxu0 %v6353_v35  ;;  %1767 = vmatpush.msrb.mxu1 %v6354_v11  ;;  %v6403_v11 = vld [vmem:[#allocation114_spill] sm:$0xff] }
 0x3bb   : > { %1787 = vmatpush.msrb.mxu2 %v6355_v12  ;;  %1807 = vmatpush.msrb.mxu3 %v6356_v16 }
 0x3bc   : > { %1748 = vmatpush.msrb.mxu0 %v6357_v22  ;;  %1768 = vmatpush.msrb.mxu1 %v6358_v25 }
 0x3bd   : > { %1788 = vmatpush.msrb.mxu2 %v6359_v56  ;;  %1808 = vmatpush.msrb.mxu3 %v6360_v14 }
 0x3be   : > { %1749 = vmatpush.msrb.mxu0 %v6361_v18  ;;  %1769 = vmatpush.msrb.mxu1 %v6362_v40 }
 0x3bf   : > { %1789 = vmatpush.msrb.mxu2 %v6363_v17  ;;  %1809 = vmatpush.msrb.mxu3 %v6364_v24 }
 0x3c0   : > { %1750 = vmatpush.msrb.mxu0 %v6365_v13  ;;  %1770 = vmatpush.msrb.mxu1 %v6366_v21  ;;  %v6404_v21 = vld [vmem:[#allocation115_spill] sm:$0xff] }
 0x3c1   : > { %1790 = vmatpush.msrb.mxu2 %v6367_v15  ;;  %1810 = vmatpush.msrb.mxu3 %v6368_v37 }
 0x3c2   : > { %1751 = vmatpush.msrb.mxu0 %v6369_v19  ;;  %1771 = vmatpush.msrb.mxu1 %v6370_v28 }
 0x3c3   : > { %1791 = vmatpush.msrb.mxu2 %v6371_v34  ;;  %1811 = vmatpush.msrb.mxu3 %v6372_v26 }
 0x3c4   : > { %1752 = vmatpush.msrb.mxu0 %v6373_v10  ;;  %1772 = vmatpush.msrb.mxu1 %v6374_v50 }
 0x3c5   : > { %1792 = vmatpush.msrb.mxu2 %v6375_v29  ;;  %1812 = vmatpush.msrb.mxu3 %v6376_v30 }
 0x3c6   : > { %1753 = vmatpush.msrb.mxu0 %v6377_v31  ;;  %1773 = vmatpush.msrb.mxu1 %v6378_v32 }
 0x3c7   : > { %1793 = vmatpush.msrb.mxu2 %v6379_v33  ;;  %1813 = vmatpush.msrb.mxu3 %v6380_v38 }
 0x3c8   : > { %1754 = vmatpush.msrb.mxu0 %v6381_v41  ;;  %1774 = vmatpush.msrb.mxu1 %v6382_v44 }
 0x3c9   : > { %1794 = vmatpush.msrb.mxu2 %v6383_v45  ;;  %1814 = vmatpush.msrb.mxu3 %v6384_v59 }
 0x3ca   : > { %1755 = vmatpush.msrb.mxu0 %v6385_v48  ;;  %1775 = vmatpush.msrb.mxu1 %v6386_v46 }
 0x3cb   : > { %1795 = vmatpush.msrb.mxu2 %v6387_v60  ;;  %1815 = vmatpush.msrb.mxu3 %v6388_v55 }
 0x3cc   : > { %1756 = vmatpush.msrb.mxu0 %v6389_v54  ;;  %1776 = vmatpush.msrb.mxu1 %v6390_v47 }
 0x3cd   : > { %1796 = vmatpush.msrb.mxu2 %v6391_v57  ;;  %1816 = vmatpush.msrb.mxu3 %v6392_v63 }
 0x3ce   : > { %1757 = vmatpush.msrb.mxu0 %v6393_v49  ;;  %1777 = vmatpush.msrb.mxu1 %v6394_v62 }
 0x3cf   : > { %1797 = vmatpush.msrb.mxu2 %v6395_v53  ;;  %1817 = vmatpush.msrb.mxu3 %v6396_v51 }
 0x3d0   : > { %1758 = vmatpush.msrb.mxu0 %v6397_v61  ;;  %1778 = vmatpush.msrb.mxu1 %v6398_v43 }
 0x3d1   : > { %1798 = vmatpush.msrb.mxu2 %v6399_v42  ;;  %1818 = vmatpush.msrb.mxu3 %v6400_v58 }
 0x40b   : > { %v1451_v52 = vpop.f32.mrf.mxu0  ;;  %v1471_v39 = vpop.f32.mrf.mxu1 }
 0x412   : > { %v1511_v36 = vpop.f32.mrf.mxu3  ;;  %v1491_v20 = vpop.f32.mrf.mxu2 }
 0x413   : > { %v1531_v0 = vpop.f32.mrf.mxu0  ;;  %v1551_v1 = vpop.f32.mrf.mxu1 }
 0x414   : > { %v1532_v2 = vadd.f32 %v1531_v0, %v1451_v52  ;;  %v1552_v3 = vadd.f32 %v1551_v1, %v1471_v39  ;;  %v4824_v0 = vld [vmem:[#allocation10 + $0x1f0] sm:$0xff]  ;;  %v4827_v1 = vld [vmem:[#allocation10 + $0x1f8] sm:$0xff] }
 0x416   : > { %v1594_v5 = vadd.f32 %v1532_v2, %v6401_v4  ;;  %v1595_v7 = vadd.f32 %v1552_v3, %v6402_v6  ;;  %v4830_v2 = vld [vmem:[#allocation10 + $0x1c0] sm:$0xff]  ;;  %v4833_v3 = vld [vmem:[#allocation10 + $0x1c8] sm:$0xff] }
 0x418   : > { %v2537_v8 = vmul.f32 -1.442695, %v1594_v5  ;;  %v2538_v9 = vmul.f32 -1.442695, %v1595_v7  ;;  %v2540_v5 = vld [vmem:[%s3477_s1 + $0x28] sm:$0xff]  ;;  %v4837_v7 = vld [vmem:[#allocation10 + $0x1d0] sm:$0xff] }
 0x41a   : > { %2703 = vpow2.f32 %v2537_v8  ;;  %v1591_v27 = vpop.f32.mrf.mxu3  ;;  %v1571_v18 = vpop.f32.mrf.mxu2  ;;  %v4843_v8 = vld [vmem:[#allocation10 + $0x1a0] sm:$0xff] }
 0x41b   : > { %2705 = vpow2.f32 %v2538_v9  ;;  %v1592_v35 = vadd.f32 %v1591_v27, %v1511_v36  ;;  %v1572_v40 = vadd.f32 %v1571_v18, %v1491_v20  ;;  %v4821_v36 = vld [vmem:[#allocation10 + $0x1e8] sm:$0xff]  ;;  %v4840_v20 = vld [vmem:[#allocation10 + $0x1d8] sm:$0xff]  ;;  %v4849_v27 = vld [vmem:[#allocation10 + $0x1b0] sm:$0xff] }
 0x41c   : > { %v4846_v9 = vld [vmem:[#allocation10 + $0x1a8] sm:$0xff]  ;;  %v4873_v18 = vld [vmem:[#allocation10 + $0x170] sm:$0xff] }
 0x41d   : > { %v1597_v12 = vadd.f32 %v1592_v35, %v6403_v11  ;;  %v1596_v15 = vadd.f32 %v1572_v40, %v6404_v21  ;;  %v4852_v35 = vld [vmem:[#allocation10 + $0x1b8] sm:$0xff] }
 0x41e   : > { %v4876_v40 = vld [vmem:[#allocation10 + $0x178] sm:$0xff] }
 0x41f   : > { %v2539_v16 = vmul.f32 -1.442695, %v1597_v12  ;;  %v4855_v12 = vld [vmem:[#allocation10 + $0x180] sm:$0xff] }
 0x420   : > { %v2704_v22 = vpop.eup %2703 }
 0x421   : > { %v2706_v25 = vpop.eup %2705  ;;  %v1601_v56 = vadd.f32 1.0, %v2704_v22  ;;  %2707 = vpow2.f32 %v2539_v16  ;;  %v4858_v16 = vld [vmem:[#allocation10 + $0x188] sm:$0xff]  ;;  %v4861_v22 = vld [vmem:[#allocation10 + $0x190] sm:$0xff] }
 0x422   : > { %v1620_v14 = vadd.f32 1.0, %v2706_v25  ;;  %v4864_v25 = vld [vmem:[#allocation10 + $0x198] sm:$0xff] }
 0x423   : > { %2709 = vrcp.f32 %v1601_v56  ;;  %v1613_v10 = vand.u32 2147483648, %v1601_v56  ;;  %v1611_v30 = vand.u32 2147483647, %v1601_v56  ;;  %vm1607_vm2 = vweird.f32 %v1601_v56 }
 0x424   : > { %2711 = vrcp.f32 %v1620_v14  ;;  %v1632_v50 = vand.u32 2147483648, %v1620_v14  ;;  %v1630_v32 = vand.u32 2147483647, %v1620_v14  ;;  %vm1626_vm3 = vweird.f32 %v1620_v14 }
 0x425   : > { %v1614_v41 = vor.u32 1.1754944e-38, %v1613_v10  ;;  %vm1612_vm6 = vcmp.eq.f32.partialorder %v1611_v30, 8.507059e+37  ;;  %v4906_v10 = vld [vmem:[#allocation10 + $0x108] sm:$0xff]  ;;  %v4915_v30 = vld [vmem:[#allocation10 + $0xe0] sm:$0xff] }
 0x426   : > { %v1633_v59 = vor.u32 1.1754944e-38, %v1632_v50  ;;  %vm1631_vm7 = vcmp.eq.f32.partialorder %v1630_v32, 8.507059e+37  ;;  %v4909_v50 = vld [vmem:[#allocation10 + $0x110] sm:$0xff] }
 0x427   : > { %v2708_v17 = vpop.eup %2707  ;;  %v4921_v32 = vld [vmem:[#allocation10 + $0xf0] sm:$0xff] }
 0x428   : > { %v1640_v24 = vadd.f32 1.0, %v2708_v17  ;;  %v4879_v17 = vld [vmem:[#allocation10 + $0x140] sm:$0xff] }
 0x429   : > { %v2710_v13 = vpop.eup %2709 }
 0x42a   : > { %v2712_v37 = vpop.eup %2711  ;;  %v1603_v19 = vmul.f32 %v2710_v13, %v1601_v56  ;;  %2713 = vrcp.f32 %v1640_v24  ;;  %vm1608_vm0 = vweird.f32 %v2710_v13  ;;  %v1652_v51 = vand.u32 2147483648, %v1640_v24  ;;  %v4867_v56 = vld [vmem:[#allocation10 + $0x160] sm:$0xff] }
 0x42b   : > { %v1622_v28 = vmul.f32 %v2712_v37, %v1620_v14  ;;  %2715 = vtanh.f32 %v1596_v15  ;;  %vm1627_vm1 = vweird.f32 %v2712_v37  ;;  %vm1609_vm4 = vmor %vm1607_vm2, %vm1608_vm0  ;;  %vm1646_vm9 = vweird.f32 %v1640_v24  ;;  %v4870_v14 = vld [vmem:[#allocation10 + $0x168] sm:$0xff]  ;;  %v4888_v15 = vld [vmem:[#allocation10 + $0x158] sm:$0xff] }
 0x42c   : > { %v1604_v34 = vsub.f32 1.0, %v1603_v19  ;;  %vm1628_vm5 = vmor %vm1626_vm3, %vm1627_vm1  ;;  %v1650_v61 = vand.u32 2147483647, %v1640_v24  ;;  %v1653_v42 = vor.u32 1.1754944e-38, %v1652_v51  ;;  %v4894_v19 = vld [vmem:[#allocation10 + $0x128] sm:$0xff]  ;;  %v4972_v51 = vld [vmem:[#allocation10 + $0x78] sm:$0xff] }
 0x42d   : > { %v1623_v26 = vsub.f32 1.0, %v1622_v28  ;;  %v4897_v28 = vld [vmem:[#allocation10 + $0x130] sm:$0xff]  ;;  %6418 = vst [vmem:[#allocation32_spill] sm:$0xff] %v4972_v51 }
 0x42e   : > { %v1605_v29 = vmul.f32 %v2710_v13, %v1604_v34  ;;  %vm1651_vm11 = vcmp.eq.f32.partialorder %v1650_v61, 8.507059e+37  ;;  %v4900_v34 = vld [vmem:[#allocation10 + $0x138] sm:$0xff]  ;;  %v4975_v61 = vld [vmem:[#allocation10 + $0x40] sm:$0xff] }
 0x42f   : > { %v1624_v31 = vmul.f32 %v2712_v37, %v1623_v26  ;;  %v4903_v26 = vld [vmem:[#allocation10 + $0x100] sm:$0xff]  ;;  %6419 = vst [vmem:[#allocation34_spill] sm:$0xff] %v4975_v61 }
 0x430   : > { %v2714_v33 = vpop.eup %2713  ;;  %v1606_v38 = vadd.f32 %v2710_v13, %v1605_v29  ;;  %v4912_v29 = vld [vmem:[#allocation10 + $0x118] sm:$0xff] }
 0x431   : > { %v1625_v44 = vadd.f32 %v2712_v37, %v1624_v31  ;;  %v1642_v45 = vmul.f32 %v2714_v33, %v1640_v24  ;;  %v2716_v46 = vpop.eup %2715  ;;  %vm1647_vm8 = vweird.f32 %v2714_v33  ;;  %v4882_v24 = vld [vmem:[#allocation10 + $0x148] sm:$0xff] }
 0x432   : > { %v1610_v48 = vsel %vm1609_vm4, %v2710_v13, %v1606_v38  ;;  %vm1648_vm10 = vmor %vm1646_vm9, %vm1647_vm8  ;;  %v4885_v13 = vld [vmem:[#allocation10 + $0x150] sm:$0xff]  ;;  %v4918_v31 = vld [vmem:[#allocation10 + $0xe8] sm:$0xff] }
 0x433   : > { %v1615_v60 = vsel %vm1612_vm6, %v1614_v41, %v1610_v48  ;;  %v1629_v55 = vsel %vm1628_vm5, %v2712_v37, %v1625_v44  ;;  %v1643_v54 = vsub.f32 1.0, %v1642_v45  ;;  %v4891_v37 = vld [vmem:[#allocation10 + $0x120] sm:$0xff]  ;;  %v4930_v41 = vld [vmem:[#allocation10 + $0xc8] sm:$0xff]  ;;  %v4933_v44 = vld [vmem:[#allocation10 + $0xd0] sm:$0xff] }
 0x434   : > { %v1634_v47 = vsel %vm1631_vm7, %v1633_v59, %v1629_v55  ;;  %v1657_v57 = vmul.f32 %v2716_v46, %v1615_v60  ;;  %v4927_v38 = vld [vmem:[#allocation10 + $0xc0] sm:$0xff]  ;;  %6405 = vst [vmem:[#allocation29_spill] sm:$0xff] %v4933_v44  ;;  %v4936_v45 = vld [vmem:[#allocation10 + $0xd8] sm:$0xff]  ;;  %v4942_v48 = vld [vmem:[#allocation10 + $0xa8] sm:$0xff] }
 0x435   : > { %v1656_v63 = vmul.f32 %v1634_v47, %v4678_v23  ;;  %v1644_v49 = vmul.f32 %v2714_v33, %v1643_v54  ;;  %v4818_v23 = vld [vmem:[#allocation10 + $0x1e0] sm:$0xff]  ;;  %6406 = vst [vmem:[#allocation22_spill] sm:$0xff] %v4936_v45  ;;  %v4945_v46 = vld [vmem:[#allocation10 + $0xb0] sm:$0xff]  ;;  %v4948_v60 = vld [vmem:[#allocation10 + $0xb8] sm:$0xff] }
 0x436   : > { %v4939_v59 = vld [vmem:[#allocation10 + $0xa0] sm:$0xff]  ;;  %6408 = vst [vmem:[#allocation24_spill] sm:$0xff] %v4942_v48  ;;  %v4954_v54 = vld [vmem:[#allocation10 + $0x88] sm:$0xff]  ;;  %v4957_v47 = vld [vmem:[#allocation10 + $0x90] sm:$0xff] }
 0x437   : > { %v4815_v62 = vadd.f32 %v1657_v57, %v1656_v63  ;;  %v1645_v53 = vadd.f32 %v2714_v33, %v1644_v49  ;;  %6407 = vst [vmem:[#allocation23_spill] sm:$0xff] %v4939_v59  ;;  %v4951_v55 = vld [vmem:[#allocation10 + $0x80] sm:$0xff]  ;;  %v4960_v57 = vld [vmem:[#allocation10 + $0x98] sm:$0xff]  ;;  %v4966_v49 = vld [vmem:[#allocation10 + $0x68] sm:$0xff] }
 0x438   : > { %6409 = vst [vmem:[#allocation33_spill] sm:$0xff] %v4945_v46  ;;  %v4963_v63 = vld [vmem:[#allocation10 + $0x60] sm:$0xff] }
 0x439   : > { %2717 = vtanh.f32 %v4815_v62  ;;  %v1649_v43 = vsel %vm1648_vm10, %v2714_v33, %v1645_v53  ;;  %v4924_v33 = vld [vmem:[#allocation10 + $0xf8] sm:$0xff]  ;;  %6410 = vst [vmem:[#allocation25_spill] sm:$0xff] %v4948_v60  ;;  %v4969_v53 = vld [vmem:[#allocation10 + $0x70] sm:$0xff] }
 0x43a   : > { %v1654_v52 = vsel %vm1651_vm11, %v1653_v42, %v1649_v43  ;;  %6411 = vst [vmem:[#allocation26_spill] sm:$0xff] %v4951_v55  ;;  %v4978_v43 = vld [vmem:[#allocation10 + $0x48] sm:$0xff]  ;;  %v4981_v42 = vld [vmem:[#allocation10 + $0x50] sm:$0xff] }
 0x43b   : > { %6412 = vst [vmem:[#allocation27_spill] sm:$0xff] %v4954_v54 }
 0x43c   : > { %6413 = vst [vmem:[#allocation37_spill] sm:$0xff] %v4957_v47 }
 0x43d   : > { %6414 = vst [vmem:[#allocation28_spill] sm:$0xff] %v4960_v57 }
 0x43e   : > { %6415 = vst [vmem:[#allocation30_spill] sm:$0xff] %v4963_v63 }
 0x43f   : > { %v2718_v58 = vpop.eup %2717  ;;  %6416 = vst [vmem:[#allocation31_spill] sm:$0xff] %v4966_v49 }
 0x440   : > { %v1660_v39 = vmul.f32 %v2718_v58, %v1654_v52  ;;  %6417 = vst [vmem:[#allocation41_spill] sm:$0xff] %v4969_v53  ;;  %v4984_v58 = vld [vmem:[#allocation10 + $0x58] sm:$0xff]  ;;  %v4987_v52 = vld [vmem:[#allocation10 + $0x20] sm:$0xff] }
 0x441   : > { %6420 = vst [vmem:[#allocation35_spill] sm:$0xff] %v4978_v43 }
 0x442   : > { %1679 = vmatmul.f32.vlgmr.msra.gmra.mxu0 %v1660_v39  ;;  %1699 = vmatmul.f32.vlgmr.msra.gmra.mxu1 %v1660_v39  ;;  %6421 = vst [vmem:[#allocation48_spill] sm:$0xff] %v4981_v42 }
 0x443   : > { %1719 = vmatmul.f32.vlgmr.msra.gmra.mxu2 %v1660_v39  ;;  %1739 = vmatmul.f32.vlgmr.msra.gmra.mxu3 %v1660_v39  ;;  %6422 = vst [vmem:[#allocation36_spill] sm:$0xff] %v4984_v58  ;;  %v4990_v39 = vld [vmem:[#allocation10 + $0x28] sm:$0xff] }
 0x444   : > { %1892 = vmatpush.msra.mxu0 %v4818_v23  ;;  %1912 = vmatpush.msra.mxu1 %v4821_v36  ;;  %6423 = vst [vmem:[#allocation38_spill] sm:$0xff] %v4987_v52 }
 0x445   : > { %1932 = vmatpush.msra.mxu2 %v4824_v0  ;;  %1952 = vmatpush.msra.mxu3 %v4827_v1  ;;  %6424 = vst [vmem:[#allocation39_spill] sm:$0xff] %v4990_v39 }
 0x446   : > { %1893 = vmatpush.msra.mxu0 %v4830_v2  ;;  %1913 = vmatpush.msra.mxu1 %v4833_v3 }
 0x447   : > { %1933 = vmatpush.msra.mxu2 %v4837_v7  ;;  %1953 = vmatpush.msra.mxu3 %v4840_v20 }
 0x448   : > { %1894 = vmatpush.msra.mxu0 %v4843_v8  ;;  %1914 = vmatpush.msra.mxu1 %v4846_v9 }
 0x449   : > { %1934 = vmatpush.msra.mxu2 %v4849_v27  ;;  %1954 = vmatpush.msra.mxu3 %v4852_v35 }
 0x44a   : > { %1759 = vmatmul.f32.vlgmr.msrb.gmra.mxu0 %v2540_v5  ;;  %1779 = vmatmul.f32.vlgmr.msrb.gmra.mxu1 %v2540_v5 }
 0x44b   : > { %1799 = vmatmul.f32.vlgmr.msrb.gmra.mxu2 %v2540_v5  ;;  %1819 = vmatmul.f32.vlgmr.msrb.gmra.mxu3 %v2540_v5  ;;  %v4993_v5 = vld [vmem:[#allocation10 + $0x30] sm:$0xff] }
 0x44c   : > { %1895 = vmatpush.msra.mxu0 %v4855_v12  ;;  %1915 = vmatpush.msra.mxu1 %v4858_v16  ;;  %6425 = vst [vmem:[#allocation52_spill] sm:$0xff] %v4993_v5 }
 0x44d   : > { %1935 = vmatpush.msra.mxu2 %v4861_v22  ;;  %1955 = vmatpush.msra.mxu3 %v4864_v25 }
 0x44e   : > { %1896 = vmatpush.msra.mxu0 %v4867_v56  ;;  %1916 = vmatpush.msra.mxu1 %v4870_v14 }
 0x44f   : > { %1936 = vmatpush.msra.mxu2 %v4873_v18  ;;  %1956 = vmatpush.msra.mxu3 %v4876_v40 }
 0x450   : > { %1897 = vmatpush.msra.mxu0 %v4879_v17  ;;  %1917 = vmatpush.msra.mxu1 %v4882_v24 }
 0x451   : > { %1937 = vmatpush.msra.mxu2 %v4885_v13  ;;  %1957 = vmatpush.msra.mxu3 %v4888_v15 }
 0x452   : > { %1898 = vmatpush.msra.mxu0 %v4891_v37  ;;  %1918 = vmatpush.msra.mxu1 %v4894_v19 }
 0x453   : > { %1938 = vmatpush.msra.mxu2 %v4897_v28  ;;  %1958 = vmatpush.msra.mxu3 %v4900_v34 }
 0x454   : > { %1899 = vmatpush.msra.mxu0 %v4903_v26  ;;  %1919 = vmatpush.msra.mxu1 %v4906_v10 }
 0x455   : > { %1939 = vmatpush.msra.mxu2 %v4909_v50  ;;  %1959 = vmatpush.msra.mxu3 %v4912_v29 }
 0x456   : > { %1900 = vmatpush.msra.mxu0 %v4915_v30  ;;  %1920 = vmatpush.msra.mxu1 %v4918_v31 }
 0x457   : > { %1940 = vmatpush.msra.mxu2 %v4921_v32  ;;  %1960 = vmatpush.msra.mxu3 %v4924_v33 }
 0x458   : > { %1901 = vmatpush.msra.mxu0 %v4927_v38  ;;  %1921 = vmatpush.msra.mxu1 %v4930_v41 }
 0x459   : > { %1941 = vmatpush.msra.mxu2 %v4933_v44  ;;  %1961 = vmatpush.msra.mxu3 %v4936_v45 }
 0x45a   : > { %1902 = vmatpush.msra.mxu0 %v4939_v59  ;;  %1922 = vmatpush.msra.mxu1 %v4942_v48 }
 0x45b   : > { %1942 = vmatpush.msra.mxu2 %v4945_v46  ;;  %1962 = vmatpush.msra.mxu3 %v4948_v60 }
 0x45c   : > { %1903 = vmatpush.msra.mxu0 %v4951_v55  ;;  %1923 = vmatpush.msra.mxu1 %v4954_v54 }
 0x45d   : > { %1943 = vmatpush.msra.mxu2 %v4957_v47  ;;  %1963 = vmatpush.msra.mxu3 %v4960_v57 }
 0x45e   : > { %1904 = vmatpush.msra.mxu0 %v4963_v63  ;;  %1924 = vmatpush.msra.mxu1 %v4966_v49 }
 0x45f   : > { %1944 = vmatpush.msra.mxu2 %v4969_v53  ;;  %1964 = vmatpush.msra.mxu3 %v4972_v51 }
 0x460   : > { %1905 = vmatpush.msra.mxu0 %v4975_v61  ;;  %1925 = vmatpush.msra.mxu1 %v4978_v43  ;;  %v4996_v43 = vld [vmem:[#allocation10 + $0x38] sm:$0xff] }
 0x461   : > { %1945 = vmatpush.msra.mxu2 %v4981_v42  ;;  %1965 = vmatpush.msra.mxu3 %v4984_v58  ;;  %6426 = vst [vmem:[#allocation40_spill] sm:$0xff] %v4996_v43  ;;  %v4999_v42 = vld [vmem:[#allocation10] sm:$0xff]  ;;  %v5002_v58 = vld [vmem:[#allocation10 + $0x8] sm:$0xff] }
 0x462   : > { %1906 = vmatpush.msra.mxu0 %v4987_v52  ;;  %1926 = vmatpush.msra.mxu1 %v4990_v39  ;;  %6427 = vst [vmem:[#allocation42_spill] sm:$0xff] %v4999_v42  ;;  %v5005_v52 = vld [vmem:[#allocation10 + $0x10] sm:$0xff]  ;;  %v5008_v39 = vld [vmem:[#allocation10 + $0x18] sm:$0xff] }
 0x463   : > { %1946 = vmatpush.msra.mxu2 %v4993_v5  ;;  %1966 = vmatpush.msra.mxu3 %v4996_v43  ;;  %6428 = vst [vmem:[#allocation43_spill] sm:$0xff] %v5002_v58  ;;  %v5011_v5 = vld [vmem:[#allocation8 + $0x1e0] sm:$0xff]  ;;  %v5014_v43 = vld [vmem:[#allocation8 + $0x1e8] sm:$0xff] }
 0x464   : > { %1907 = vmatpush.msra.mxu0 %v4999_v42  ;;  %1927 = vmatpush.msra.mxu1 %v5002_v58  ;;  %6429 = vst [vmem:[#allocation56_spill] sm:$0xff] %v5005_v52  ;;  %v5017_v42 = vld [vmem:[#allocation8 + $0x1f0] sm:$0xff]  ;;  %v5020_v58 = vld [vmem:[#allocation8 + $0x1f8] sm:$0xff] }
 0x465   : > { %1947 = vmatpush.msra.mxu2 %v5005_v52  ;;  %6430 = vst [vmem:[#allocation44_spill] sm:$0xff] %v5008_v39  ;;  %1967 = vmatpush.msra.mxu3 %v5008_v39  ;;  %v5023_v52 = vld [vmem:[#allocation8 + $0x1c0] sm:$0xff]  ;;  %v5026_v39 = vld [vmem:[#allocation8 + $0x1c8] sm:$0xff] }
 0x466   : > { %6431 = vst [vmem:[#allocation45_spill] sm:$0xff] %v5011_v5  ;;  %1972 = vmatpush.msrb.mxu0 %v5011_v5  ;;  %1992 = vmatpush.msrb.mxu1 %v5014_v43  ;;  %v5029_v5 = vld [vmem:[#allocation8 + $0x1d0] sm:$0xff] }
 0x467   : > { %6432 = vst [vmem:[#allocation46_spill] sm:$0xff] %v5014_v43  ;;  %2012 = vmatpush.msrb.mxu2 %v5017_v42  ;;  %2032 = vmatpush.msrb.mxu3 %v5020_v58  ;;  %v5032_v43 = vld [vmem:[#allocation8 + $0x1d8] sm:$0xff] }
 0x468   : > { %6433 = vst [vmem:[#allocation60_spill] sm:$0xff] %v5017_v42  ;;  %1973 = vmatpush.msrb.mxu0 %v5023_v52  ;;  %1993 = vmatpush.msrb.mxu1 %v5026_v39  ;;  %v5035_v42 = vld [vmem:[#allocation8 + $0x1a0] sm:$0xff] }
 0x469   : > { %6434 = vst [vmem:[#allocation47_spill] sm:$0xff] %v5020_v58  ;;  %2013 = vmatpush.msrb.mxu2 %v5029_v5  ;;  %2033 = vmatpush.msrb.mxu3 %v5032_v43  ;;  %v5038_v58 = vld [vmem:[#allocation8 + $0x1a8] sm:$0xff] }
 0x46a   : > { %6435 = vst [vmem:[#allocation49_spill] sm:$0xff] %v5023_v52  ;;  %1974 = vmatpush.msrb.mxu0 %v5035_v42  ;;  %1994 = vmatpush.msrb.mxu1 %v5038_v58  ;;  %v5041_v52 = vld [vmem:[#allocation8 + $0x1b0] sm:$0xff] }
 0x46b   : > { %6436 = vst [vmem:[#allocation50_spill] sm:$0xff] %v5026_v39  ;;  %2014 = vmatpush.msrb.mxu2 %v5041_v52  ;;  %v5044_v39 = vld [vmem:[#allocation8 + $0x1b8] sm:$0xff] }
 0x46c   : > { %6437 = vst [vmem:[#allocation64_spill] sm:$0xff] %v5029_v5  ;;  %2034 = vmatpush.msrb.mxu3 %v5044_v39  ;;  %v5047_v5 = vld [vmem:[#allocation8 + $0x180] sm:$0xff] }
 0x46d   : > { %6438 = vst [vmem:[#allocation51_spill] sm:$0xff] %v5032_v43  ;;  %1975 = vmatpush.msrb.mxu0 %v5047_v5  ;;  %v5050_v43 = vld [vmem:[#allocation8 + $0x188] sm:$0xff] }
 0x46e   : > { %6439 = vst [vmem:[#allocation53_spill] sm:$0xff] %v5035_v42  ;;  %1995 = vmatpush.msrb.mxu1 %v5050_v43  ;;  %v5053_v42 = vld [vmem:[#allocation8 + $0x190] sm:$0xff] }
 0x46f   : > { %6440 = vst [vmem:[#allocation54_spill] sm:$0xff] %v5038_v58  ;;  %2015 = vmatpush.msrb.mxu2 %v5053_v42  ;;  %v5056_v58 = vld [vmem:[#allocation8 + $0x198] sm:$0xff] }
 0x470   : > { %6441 = vst [vmem:[#allocation68_spill] sm:$0xff] %v5041_v52  ;;  %2035 = vmatpush.msrb.mxu3 %v5056_v58  ;;  %v5059_v52 = vld [vmem:[#allocation8 + $0x160] sm:$0xff] }
 0x471   : > { %6442 = vst [vmem:[#allocation55_spill] sm:$0xff] %v5044_v39  ;;  %1976 = vmatpush.msrb.mxu0 %v5059_v52  ;;  %v5062_v39 = vld [vmem:[#allocation8 + $0x168] sm:$0xff] }
 0x472   : > { %6443 = vst [vmem:[#allocation57_spill] sm:$0xff] %v5047_v5  ;;  %1996 = vmatpush.msrb.mxu1 %v5062_v39  ;;  %v5065_v5 = vld [vmem:[#allocation8 + $0x170] sm:$0xff] }
 0x473   : > { %6444 = vst [vmem:[#allocation58_spill] sm:$0xff] %v5050_v43  ;;  %2016 = vmatpush.msrb.mxu2 %v5065_v5  ;;  %v5068_v43 = vld [vmem:[#allocation8 + $0x178] sm:$0xff] }
 0x474   : > { %6445 = vst [vmem:[#allocation72_spill] sm:$0xff] %v5053_v42  ;;  %2036 = vmatpush.msrb.mxu3 %v5068_v43  ;;  %v5071_v42 = vld [vmem:[#allocation8 + $0x140] sm:$0xff] }
 0x475   : > { %6446 = vst [vmem:[#allocation59_spill] sm:$0xff] %v5056_v58  ;;  %1977 = vmatpush.msrb.mxu0 %v5071_v42  ;;  %v5074_v58 = vld [vmem:[#allocation8 + $0x148] sm:$0xff] }
 0x476   : > { %6447 = vst [vmem:[#allocation61_spill] sm:$0xff] %v5059_v52  ;;  %1997 = vmatpush.msrb.mxu1 %v5074_v58  ;;  %v5077_v52 = vld [vmem:[#allocation8 + $0x150] sm:$0xff] }
 0x477   : > { %6448 = vst [vmem:[#allocation62_spill] sm:$0xff] %v5062_v39  ;;  %2017 = vmatpush.msrb.mxu2 %v5077_v52  ;;  %v5080_v39 = vld [vmem:[#allocation8 + $0x158] sm:$0xff] }
 0x478   : > { %6449 = vst [vmem:[#allocation76_spill] sm:$0xff] %v5065_v5  ;;  %2037 = vmatpush.msrb.mxu3 %v5080_v39  ;;  %v5083_v5 = vld [vmem:[#allocation8 + $0x120] sm:$0xff] }
 0x479   : > { %6450 = vst [vmem:[#allocation63_spill] sm:$0xff] %v5068_v43  ;;  %1978 = vmatpush.msrb.mxu0 %v5083_v5  ;;  %v5086_v43 = vld [vmem:[#allocation8 + $0x128] sm:$0xff] }
 0x47a   : > { %6451 = vst [vmem:[#allocation65_spill] sm:$0xff] %v5071_v42  ;;  %1998 = vmatpush.msrb.mxu1 %v5086_v43  ;;  %v5089_v42 = vld [vmem:[#allocation8 + $0x130] sm:$0xff] }
 0x47b   : > { %6452 = vst [vmem:[#allocation66_spill] sm:$0xff] %v5074_v58  ;;  %2018 = vmatpush.msrb.mxu2 %v5089_v42  ;;  %v5092_v58 = vld [vmem:[#allocation8 + $0x138] sm:$0xff] }
 0x47c   : > { %6453 = vst [vmem:[#allocation80_spill] sm:$0xff] %v5077_v52  ;;  %2038 = vmatpush.msrb.mxu3 %v5092_v58  ;;  %v5095_v52 = vld [vmem:[#allocation8 + $0x100] sm:$0xff] }
 0x47d   : > { %6454 = vst [vmem:[#allocation67_spill] sm:$0xff] %v5080_v39  ;;  %1979 = vmatpush.msrb.mxu0 %v5095_v52  ;;  %v5098_v39 = vld [vmem:[#allocation8 + $0x108] sm:$0xff] }
 0x47e   : > { %6455 = vst [vmem:[#allocation69_spill] sm:$0xff] %v5083_v5  ;;  %1999 = vmatpush.msrb.mxu1 %v5098_v39  ;;  %v5101_v5 = vld [vmem:[#allocation8 + $0x110] sm:$0xff] }
 0x47f   : > { %6456 = vst [vmem:[#allocation70_spill] sm:$0xff] %v5086_v43  ;;  %2019 = vmatpush.msrb.mxu2 %v5101_v5  ;;  %v5104_v43 = vld [vmem:[#allocation8 + $0x118] sm:$0xff] }
 0x480   : > { %6457 = vst [vmem:[#allocation84_spill] sm:$0xff] %v5089_v42  ;;  %2039 = vmatpush.msrb.mxu3 %v5104_v43  ;;  %v5107_v42 = vld [vmem:[#allocation8 + $0xe0] sm:$0xff] }
 0x481   : > { %6458 = vst [vmem:[#allocation71_spill] sm:$0xff] %v5092_v58  ;;  %1980 = vmatpush.msrb.mxu0 %v5107_v42  ;;  %v5110_v58 = vld [vmem:[#allocation8 + $0xe8] sm:$0xff] }
 0x482   : > { %6459 = vst [vmem:[#allocation73_spill] sm:$0xff] %v5095_v52  ;;  %2000 = vmatpush.msrb.mxu1 %v5110_v58  ;;  %v5113_v52 = vld [vmem:[#allocation8 + $0xf0] sm:$0xff] }
 0x483   : > { %6460 = vst [vmem:[#allocation74_spill] sm:$0xff] %v5098_v39  ;;  %2020 = vmatpush.msrb.mxu2 %v5113_v52  ;;  %v5116_v39 = vld [vmem:[#allocation8 + $0xf8] sm:$0xff] }
 0x484   : > { %6461 = vst [vmem:[#allocation88_spill] sm:$0xff] %v5101_v5  ;;  %2040 = vmatpush.msrb.mxu3 %v5116_v39  ;;  %v5119_v5 = vld [vmem:[#allocation8 + $0xc0] sm:$0xff] }
 0x485   : > { %6462 = vst [vmem:[#allocation75_spill] sm:$0xff] %v5104_v43  ;;  %1981 = vmatpush.msrb.mxu0 %v5119_v5  ;;  %v5122_v43 = vld [vmem:[#allocation8 + $0xc8] sm:$0xff] }
 0x486   : > { %6463 = vst [vmem:[#allocation77_spill] sm:$0xff] %v5107_v42  ;;  %2001 = vmatpush.msrb.mxu1 %v5122_v43  ;;  %v5125_v42 = vld [vmem:[#allocation8 + $0xd0] sm:$0xff] }
 0x487   : > { %6464 = vst [vmem:[#allocation78_spill] sm:$0xff] %v5110_v58  ;;  %2021 = vmatpush.msrb.mxu2 %v5125_v42  ;;  %v5128_v58 = vld [vmem:[#allocation8 + $0xd8] sm:$0xff] }
 0x488   : > { %6465 = vst [vmem:[#allocation92_spill] sm:$0xff] %v5113_v52  ;;  %2041 = vmatpush.msrb.mxu3 %v5128_v58  ;;  %v5131_v52 = vld [vmem:[#allocation8 + $0xa0] sm:$0xff] }
 0x489   : > { %6466 = vst [vmem:[#allocation79_spill] sm:$0xff] %v5116_v39  ;;  %1982 = vmatpush.msrb.mxu0 %v5131_v52  ;;  %v5134_v39 = vld [vmem:[#allocation8 + $0xa8] sm:$0xff] }
 0x48a   : > { %6467 = vst [vmem:[#allocation81_spill] sm:$0xff] %v5119_v5  ;;  %2002 = vmatpush.msrb.mxu1 %v5134_v39  ;;  %v5137_v5 = vld [vmem:[#allocation8 + $0xb0] sm:$0xff] }
 0x48b   : > { %6468 = vst [vmem:[#allocation82_spill] sm:$0xff] %v5122_v43  ;;  %2022 = vmatpush.msrb.mxu2 %v5137_v5  ;;  %v5140_v43 = vld [vmem:[#allocation8 + $0xb8] sm:$0xff] }
 0x48c   : > { %6469 = vst [vmem:[#allocation96_spill] sm:$0xff] %v5125_v42  ;;  %2042 = vmatpush.msrb.mxu3 %v5140_v43  ;;  %v5143_v42 = vld [vmem:[#allocation8 + $0x80] sm:$0xff] }
 0x48d   : > { %6470 = vst [vmem:[#allocation83_spill] sm:$0xff] %v5128_v58  ;;  %1983 = vmatpush.msrb.mxu0 %v5143_v42  ;;  %v5146_v58 = vld [vmem:[#allocation8 + $0x88] sm:$0xff] }
 0x48e   : > { %6471 = vst [vmem:[#allocation85_spill] sm:$0xff] %v5131_v52  ;;  %2003 = vmatpush.msrb.mxu1 %v5146_v58  ;;  %v5149_v52 = vld [vmem:[#allocation8 + $0x90] sm:$0xff] }
 0x48f   : > { %6472 = vst [vmem:[#allocation86_spill] sm:$0xff] %v5134_v39  ;;  %2023 = vmatpush.msrb.mxu2 %v5149_v52  ;;  %v5152_v39 = vld [vmem:[#allocation8 + $0x98] sm:$0xff] }
 0x490   : > { %6473 = vst [vmem:[#allocation100_spill] sm:$0xff] %v5137_v5  ;;  %2043 = vmatpush.msrb.mxu3 %v5152_v39  ;;  %v5155_v5 = vld [vmem:[#allocation8 + $0x60] sm:$0xff] }
 0x491   : > { %6474 = vst [vmem:[#allocation87_spill] sm:$0xff] %v5140_v43  ;;  %1984 = vmatpush.msrb.mxu0 %v5155_v5  ;;  %v5158_v43 = vld [vmem:[#allocation8 + $0x68] sm:$0xff] }
 0x492   : > { %6475 = vst [vmem:[#allocation89_spill] sm:$0xff] %v5143_v42  ;;  %2004 = vmatpush.msrb.mxu1 %v5158_v43  ;;  %v5161_v42 = vld [vmem:[#allocation8 + $0x70] sm:$0xff] }
 0x493   : > { %6476 = vst [vmem:[#allocation90_spill] sm:$0xff] %v5146_v58  ;;  %2024 = vmatpush.msrb.mxu2 %v5161_v42  ;;  %v5164_v58 = vld [vmem:[#allocation8 + $0x78] sm:$0xff] }
 0x494   : > { %6477 = vst [vmem:[#allocation104_spill] sm:$0xff] %v5149_v52  ;;  %2044 = vmatpush.msrb.mxu3 %v5164_v58  ;;  %v5167_v52 = vld [vmem:[#allocation8 + $0x40] sm:$0xff] }
 0x495   : > { %6478 = vst [vmem:[#allocation91_spill] sm:$0xff] %v5152_v39  ;;  %1985 = vmatpush.msrb.mxu0 %v5167_v52  ;;  %v5170_v39 = vld [vmem:[#allocation8 + $0x48] sm:$0xff] }
 0x496   : > { %6479 = vst [vmem:[#allocation93_spill] sm:$0xff] %v5155_v5  ;;  %2005 = vmatpush.msrb.mxu1 %v5170_v39  ;;  %v5173_v5 = vld [vmem:[#allocation8 + $0x50] sm:$0xff] }
 0x497   : > { %6480 = vst [vmem:[#allocation94_spill] sm:$0xff] %v5158_v43  ;;  %2025 = vmatpush.msrb.mxu2 %v5173_v5  ;;  %v5176_v43 = vld [vmem:[#allocation8 + $0x58] sm:$0xff] }
 0x498   : > { %6481 = vst [vmem:[#allocation108_spill] sm:$0xff] %v5161_v42  ;;  %2045 = vmatpush.msrb.mxu3 %v5176_v43  ;;  %v5179_v42 = vld [vmem:[#allocation8 + $0x20] sm:$0xff] }
 0x499   : > { %6482 = vst [vmem:[#allocation95_spill] sm:$0xff] %v5164_v58  ;;  %1986 = vmatpush.msrb.mxu0 %v5179_v42  ;;  %v5182_v58 = vld [vmem:[#allocation8 + $0x28] sm:$0xff] }
 0x49a   : > { %6483 = vst [vmem:[#allocation97_spill] sm:$0xff] %v5167_v52  ;;  %2006 = vmatpush.msrb.mxu1 %v5182_v58  ;;  %v5185_v52 = vld [vmem:[#allocation8 + $0x30] sm:$0xff] }
 0x49b   : > { %6484 = vst [vmem:[#allocation98_spill] sm:$0xff] %v5170_v39  ;;  %2026 = vmatpush.msrb.mxu2 %v5185_v52  ;;  %v5188_v39 = vld [vmem:[#allocation8 + $0x38] sm:$0xff] }
 0x49c   : > { %6485 = vst [vmem:[#allocation109_spill] sm:$0xff] %v5173_v5  ;;  %2046 = vmatpush.msrb.mxu3 %v5188_v39  ;;  %v5191_v5 = vld [vmem:[#allocation8] sm:$0xff] }
 0x49d   : > { %6486 = vst [vmem:[#allocation99_spill] sm:$0xff] %v5176_v43  ;;  %1987 = vmatpush.msrb.mxu0 %v5191_v5  ;;  %v5194_v43 = vld [vmem:[#allocation8 + $0x8] sm:$0xff] }
 0x49e   : > { %6487 = vst [vmem:[#allocation101_spill] sm:$0xff] %v5179_v42  ;;  %2007 = vmatpush.msrb.mxu1 %v5194_v43  ;;  %v5197_v42 = vld [vmem:[#allocation8 + $0x10] sm:$0xff] }
 0x49f   : > { %6488 = vst [vmem:[#allocation102_spill] sm:$0xff] %v5182_v58  ;;  %2027 = vmatpush.msrb.mxu2 %v5197_v42  ;;  %v5200_v58 = vld [vmem:[#allocation8 + $0x18] sm:$0xff] }
 0x4a0   : > { %6489 = vst [vmem:[#allocation110_spill] sm:$0xff] %v5185_v52  ;;  %2047 = vmatpush.msrb.mxu3 %v5200_v58 }
 0x4a1   : > { %6490 = vst [vmem:[#allocation103_spill] sm:$0xff] %v5188_v39 }
 0x4a2   : > { %6491 = vst [vmem:[#allocation105_spill] sm:$0xff] %v5191_v5 }
 0x4a3   : > { %6492 = vst [vmem:[#allocation106_spill] sm:$0xff] %v5194_v43 }
 0x4a4   : > { %6493 = vst [vmem:[#allocation111_spill] sm:$0xff] %v5197_v42 }
 0x4a5   : > { %6494 = vst [vmem:[#allocation107_spill] sm:$0xff] %v5200_v58 }
 0x4bf   : > { %v1680_v52 = vpop.f32.mrf.mxu0  ;;  %v1700_v61 = vpop.f32.mrf.mxu1 }
 0x4c6   : > { %v1740_v51 = vpop.f32.mrf.mxu3  ;;  %v1720_v43 = vpop.f32.mrf.mxu2 }
 0x4c7   : > { %v1760_v39 = vpop.f32.mrf.mxu0  ;;  %v1780_v53 = vpop.f32.mrf.mxu1 }
 0x4c8   : > { %v1761_v49 = vadd.f32 %v1760_v39, %v1680_v52  ;;  %v1781_v63 = vadd.f32 %v1780_v53, %v1700_v61 }
 0x4ca   : > { %v1823_v5 = vadd.f32 %v1761_v49, %v6401_v4  ;;  %v1824_v57 = vadd.f32 %v1781_v63, %v6402_v6 }
 0x4cc   : > { %v2541_v47 = vmul.f32 -1.442695, %v1823_v5  ;;  %v2542_v54 = vmul.f32 -1.442695, %v1824_v57 }
 0x4ce   : > { %2719 = vpow2.f32 %v2541_v47  ;;  %v1820_v42 = vpop.f32.mrf.mxu3  ;;  %v1800_v53 = vpop.f32.mrf.mxu2 }
 0x4cf   : > { %2721 = vpow2.f32 %v2542_v54  ;;  %v1821_v55 = vadd.f32 %v1820_v42, %v1740_v51  ;;  %v1801_v49 = vadd.f32 %v1800_v53, %v1720_v43 }
 0x4d1   : > { %v1826_v58 = vadd.f32 %v1821_v55, %v6403_v11  ;;  %v1825_v47 = vadd.f32 %v1801_v49, %v6404_v21 }
 0x4d3   : > { %v2543_v60 = vmul.f32 -1.442695, %v1826_v58 }
 0x4d4   : > { %v2720_v46 = vpop.eup %2719 }
 0x4d5   : > { %v2722_v48 = vpop.eup %2721  ;;  %v1830_v59 = vadd.f32 1.0, %v2720_v46  ;;  %2723 = vpow2.f32 %v2543_v60 }
 0x4d6   : > { %v1849_v52 = vadd.f32 1.0, %v2722_v48 }
 0x4d7   : > { %2725 = vrcp.f32 %v1830_v59  ;;  %v1842_v58 = vand.u32 2147483648, %v1830_v59  ;;  %v1840_v48 = vand.u32 2147483647, %v1830_v59  ;;  %vm1836_vm14 = vweird.f32 %v1830_v59 }
 0x4d8   : > { %2727 = vrcp.f32 %v1849_v52  ;;  %v1861_v46 = vand.u32 2147483648, %v1849_v52  ;;  %v1859_v43 = vand.u32 2147483647, %v1849_v52  ;;  %vm1855_vm15 = vweird.f32 %v1849_v52 }
 0x4d9   : > { %v1843_v49 = vor.u32 1.1754944e-38, %v1842_v58  ;;  %vm1841_vm2 = vcmp.eq.f32.partialorder %v1840_v48, 8.507059e+37  ;;  %v6537_v48 = vld [vmem:[#allocation61_spill] sm:$0xff] }
 0x4da   : > { %vm1860_vm3 = vcmp.eq.f32.partialorder %v1859_v43, 8.507059e+37  ;;  %v6539_v43 = vld [vmem:[#allocation76_spill] sm:$0xff] }
 0x4db   : > { %v2724_v63 = vpop.eup %2723 }
 0x4dc   : > { %v1869_v61 = vadd.f32 1.0, %v2724_v63 }
 0x4dd   : > { %v2726_v39 = vpop.eup %2725 }
 0x4de   : > { %v2728_v57 = vpop.eup %2727  ;;  %v1832_v54 = vmul.f32 %v2726_v39, %v1830_v59  ;;  %2729 = vrcp.f32 %v1869_v61  ;;  %vm1837_vm12 = vweird.f32 %v2726_v39  ;;  %v1881_v58 = vand.u32 2147483648, %v1869_v61 }
 0x4df   : > { %v1851_v51 = vmul.f32 %v2728_v57, %v1849_v52  ;;  %2731 = vtanh.f32 %v1825_v47  ;;  %vm1856_vm13 = vweird.f32 %v2728_v57  ;;  %vm1838_vm0 = vmor %vm1836_vm14, %vm1837_vm12  ;;  %vm1875_vm5 = vweird.f32 %v1869_v61 }
 0x4e0   : > { %v1833_v55 = vsub.f32 1.0, %v1832_v54  ;;  %vm1857_vm1 = vmor %vm1855_vm15, %vm1856_vm13  ;;  %v1862_v54 = vor.u32 1.1754944e-38, %v1861_v46 }
 0x4e1   : > { %v1852_v42 = vsub.f32 1.0, %v1851_v51 }
 0x4e2   : > { %v1834_v60 = vmul.f32 %v2726_v39, %v1833_v55 }
 0x4e3   : > { %v1853_v5 = vmul.f32 %v2728_v57, %v1852_v42 }
 0x4e4   : > { %v2730_v53 = vpop.eup %2729  ;;  %v1835_v63 = vadd.f32 %v2726_v39, %v1834_v60 }
 0x4e5   : > { %v1854_v21 = vadd.f32 %v2728_v57, %v1853_v5  ;;  %v1871_v11 = vmul.f32 %v2730_v53, %v1869_v61  ;;  %v2732_v47 = vpop.eup %2731  ;;  %vm1876_vm4 = vweird.f32 %v2730_v53  ;;  %v6538_v5 = vld [vmem:[#allocation62_spill] sm:$0xff] }
 0x4e6   : > { %v1839_v51 = vsel %vm1838_vm0, %v2726_v39, %v1835_v63  ;;  %v1879_v39 = vand.u32 2147483647, %v1869_v61  ;;  %vm1877_vm6 = vmor %vm1875_vm5, %vm1876_vm4  ;;  %v6536_v61 = vld [vmem:[#allocation59_spill] sm:$0xff]  ;;  %v6541_v63 = vld [vmem:[#allocation65_spill] sm:$0xff] }
 0x4e7   : > { %v1844_v6 = vsel %vm1841_vm2, %v1843_v49, %v1839_v51  ;;  %v1858_v55 = vsel %vm1857_vm1, %v2728_v57, %v1854_v21  ;;  %v1872_v4 = vsub.f32 1.0, %v1871_v11  ;;  %v1882_v21 = vor.u32 1.1754944e-38, %v1881_v58  ;;  %v6542_v49 = vld [vmem:[#allocation66_spill] sm:$0xff]  ;;  %v6544_v51 = vld [vmem:[#allocation67_spill] sm:$0xff] }
 0x4e8   : > { %v1863_v42 = vsel %vm1860_vm3, %v1862_v54, %v1858_v55  ;;  %v1886_v45 = vmul.f32 %v2732_v47, %v1844_v6  ;;  %vm1880_vm7 = vcmp.eq.f32.partialorder %v1879_v39, 8.507059e+37  ;;  %v6543_v54 = vld [vmem:[#allocation80_spill] sm:$0xff]  ;;  %v6545_v47 = vld [vmem:[#allocation69_spill] sm:$0xff]  ;;  %v6546_v55 = vld [vmem:[#allocation70_spill] sm:$0xff] }
 0x4e9   : > { %v1885_v44 = vmul.f32 %v1863_v42, %v4815_v62  ;;  %v1873_v60 = vmul.f32 %v2730_v53, %v1872_v4  ;;  %v2544_v4 = vld [vmem:[%s3477_s1 + $0x30] sm:$0xff]  ;;  %v6495_v62 = vld [vmem:[#allocation29_spill] sm:$0xff]  ;;  %v6547_v42 = vld [vmem:[#allocation84_spill] sm:$0xff] }
 0x4ea   : > { %v6550_v58 = vld [vmem:[#allocation74_spill] sm:$0xff]  ;;  %v6551_v39 = vld [vmem:[#allocation88_spill] sm:$0xff] }
 0x4eb   : > { %v5208_v59 = vadd.f32 %v1886_v45, %v1885_v44  ;;  %v1874_v52 = vadd.f32 %v2730_v53, %v1873_v60  ;;  %v6534_v44 = vld [vmem:[#allocation58_spill] sm:$0xff]  ;;  %v6535_v45 = vld [vmem:[#allocation72_spill] sm:$0xff]  ;;  %v6548_v60 = vld [vmem:[#allocation71_spill] sm:$0xff] }
 0x4ed   : > { %2733 = vtanh.f32 %v5208_v59  ;;  %v1878_v46 = vsel %vm1877_vm6, %v2730_v53, %v1874_v52  ;;  %v6540_v53 = vld [vmem:[#allocation63_spill] sm:$0xff]  ;;  %v6549_v52 = vld [vmem:[#allocation73_spill] sm:$0xff] }
 0x4ee   : > { %v1883_v57 = vsel %vm1880_vm7, %v1882_v21, %v1878_v46  ;;  %v6552_v46 = vld [vmem:[#allocation75_spill] sm:$0xff]  ;;  %v6553_v21 = vld [vmem:[#allocation77_spill] sm:$0xff] }
 0x4f3   : > { %v2734_v11 = vpop.eup %2733 }
 0x4f4   : > { %v1889_v6 = vmul.f32 %v2734_v11, %v1883_v57  ;;  %v6554_v11 = vld [vmem:[#allocation78_spill] sm:$0xff]  ;;  %v6555_v57 = vld [vmem:[#allocation92_spill] sm:$0xff] }
 0x4f6   : > { %1908 = vmatmul.f32.vlgmr.msra.gmra.mxu0 %v1889_v6  ;;  %1928 = vmatmul.f32.vlgmr.msra.gmra.mxu1 %v1889_v6 }
 0x4f7   : > { %1948 = vmatmul.f32.vlgmr.msra.gmra.mxu2 %v1889_v6  ;;  %1968 = vmatmul.f32.vlgmr.msra.gmra.mxu3 %v1889_v6  ;;  %v6556_v6 = vld [vmem:[#allocation79_spill] sm:$0xff] }
 0x4f8   : > { %2121 = vmatpush.msra.mxu0 %v4818_v23  ;;  %2141 = vmatpush.msra.mxu1 %v4821_v36  ;;  %v6496_v23 = vld [vmem:[#allocation22_spill] sm:$0xff]  ;;  %v6497_v36 = vld [vmem:[#allocation23_spill] sm:$0xff] }
 0x4f9   : > { %2161 = vmatpush.msra.mxu2 %v4824_v0  ;;  %2181 = vmatpush.msra.mxu3 %v4827_v1  ;;  %v6498_v0 = vld [vmem:[#allocation24_spill] sm:$0xff]  ;;  %v6499_v1 = vld [vmem:[#allocation33_spill] sm:$0xff] }
 0x4fa   : > { %2122 = vmatpush.msra.mxu0 %v4830_v2  ;;  %2142 = vmatpush.msra.mxu1 %v4833_v3  ;;  %v6500_v2 = vld [vmem:[#allocation25_spill] sm:$0xff]  ;;  %v6501_v3 = vld [vmem:[#allocation26_spill] sm:$0xff] }
 0x4fb   : > { %2162 = vmatpush.msra.mxu2 %v4837_v7  ;;  %2182 = vmatpush.msra.mxu3 %v4840_v20  ;;  %v6502_v7 = vld [vmem:[#allocation27_spill] sm:$0xff]  ;;  %v6503_v20 = vld [vmem:[#allocation37_spill] sm:$0xff] }
 0x4fc   : > { %2123 = vmatpush.msra.mxu0 %v4843_v8  ;;  %2143 = vmatpush.msra.mxu1 %v4846_v9  ;;  %v6504_v8 = vld [vmem:[#allocation28_spill] sm:$0xff]  ;;  %v6505_v9 = vld [vmem:[#allocation30_spill] sm:$0xff] }
 0x4fd   : > { %2163 = vmatpush.msra.mxu2 %v4849_v27  ;;  %2183 = vmatpush.msra.mxu3 %v4852_v35  ;;  %v6506_v27 = vld [vmem:[#allocation31_spill] sm:$0xff]  ;;  %v6507_v35 = vld [vmem:[#allocation41_spill] sm:$0xff] }
 0x4fe   : > { %1988 = vmatmul.f32.vlgmr.msrb.gmra.mxu0 %v2544_v4  ;;  %2008 = vmatmul.f32.vlgmr.msrb.gmra.mxu1 %v2544_v4 }
 0x4ff   : > { %2028 = vmatmul.f32.vlgmr.msrb.gmra.mxu2 %v2544_v4  ;;  %2048 = vmatmul.f32.vlgmr.msrb.gmra.mxu3 %v2544_v4  ;;  %v6557_v4 = vld [vmem:[#allocation81_spill] sm:$0xff] }
 0x500   : > { %2124 = vmatpush.msra.mxu0 %v4855_v12  ;;  %2144 = vmatpush.msra.mxu1 %v4858_v16  ;;  %v6508_v12 = vld [vmem:[#allocation32_spill] sm:$0xff]  ;;  %v6509_v16 = vld [vmem:[#allocation34_spill] sm:$0xff] }
 0x501   : > { %2164 = vmatpush.msra.mxu2 %v4861_v22  ;;  %2184 = vmatpush.msra.mxu3 %v4864_v25  ;;  %v6510_v22 = vld [vmem:[#allocation35_spill] sm:$0xff]  ;;  %v6511_v25 = vld [vmem:[#allocation48_spill] sm:$0xff] }
 0x502   : > { %2125 = vmatpush.msra.mxu0 %v4867_v56  ;;  %2145 = vmatpush.msra.mxu1 %v4870_v14  ;;  %v6512_v56 = vld [vmem:[#allocation36_spill] sm:$0xff]  ;;  %v6513_v14 = vld [vmem:[#allocation38_spill] sm:$0xff] }
 0x503   : > { %2165 = vmatpush.msra.mxu2 %v4873_v18  ;;  %2185 = vmatpush.msra.mxu3 %v4876_v40  ;;  %v6514_v18 = vld [vmem:[#allocation39_spill] sm:$0xff]  ;;  %v6515_v40 = vld [vmem:[#allocation52_spill] sm:$0xff] }
 0x504   : > { %2126 = vmatpush.msra.mxu0 %v4879_v17  ;;  %2146 = vmatpush.msra.mxu1 %v4882_v24  ;;  %v6516_v17 = vld [vmem:[#allocation40_spill] sm:$0xff]  ;;  %v6517_v24 = vld [vmem:[#allocation42_spill] sm:$0xff] }
 0x505   : > { %2166 = vmatpush.msra.mxu2 %v4885_v13  ;;  %2186 = vmatpush.msra.mxu3 %v4888_v15  ;;  %v6518_v13 = vld [vmem:[#allocation43_spill] sm:$0xff]  ;;  %v6519_v15 = vld [vmem:[#allocation56_spill] sm:$0xff] }
 0x506   : > { %2127 = vmatpush.msra.mxu0 %v4891_v37  ;;  %2147 = vmatpush.msra.mxu1 %v4894_v19  ;;  %v6520_v37 = vld [vmem:[#allocation44_spill] sm:$0xff]  ;;  %v6521_v19 = vld [vmem:[#allocation45_spill] sm:$0xff] }
 0x507   : > { %2167 = vmatpush.msra.mxu2 %v4897_v28  ;;  %2187 = vmatpush.msra.mxu3 %v4900_v34  ;;  %v6522_v28 = vld [vmem:[#allocation46_spill] sm:$0xff]  ;;  %v6523_v34 = vld [vmem:[#allocation60_spill] sm:$0xff] }
 0x508   : > { %2128 = vmatpush.msra.mxu0 %v4903_v26  ;;  %2148 = vmatpush.msra.mxu1 %v4906_v10  ;;  %v6524_v26 = vld [vmem:[#allocation47_spill] sm:$0xff]  ;;  %v6525_v10 = vld [vmem:[#allocation49_spill] sm:$0xff] }
 0x509   : > { %2168 = vmatpush.msra.mxu2 %v4909_v50  ;;  %2188 = vmatpush.msra.mxu3 %v4912_v29  ;;  %v6526_v50 = vld [vmem:[#allocation50_spill] sm:$0xff]  ;;  %v6527_v29 = vld [vmem:[#allocation64_spill] sm:$0xff] }
 0x50a   : > { %2129 = vmatpush.msra.mxu0 %v4915_v30  ;;  %2149 = vmatpush.msra.mxu1 %v4918_v31  ;;  %v6528_v30 = vld [vmem:[#allocation51_spill] sm:$0xff]  ;;  %v6529_v31 = vld [vmem:[#allocation53_spill] sm:$0xff] }
 0x50b   : > { %2169 = vmatpush.msra.mxu2 %v4921_v32  ;;  %2189 = vmatpush.msra.mxu3 %v4924_v33  ;;  %v6530_v32 = vld [vmem:[#allocation54_spill] sm:$0xff]  ;;  %v6531_v33 = vld [vmem:[#allocation68_spill] sm:$0xff] }
 0x50c   : > { %2130 = vmatpush.msra.mxu0 %v4927_v38  ;;  %2150 = vmatpush.msra.mxu1 %v4930_v41  ;;  %v6532_v38 = vld [vmem:[#allocation55_spill] sm:$0xff]  ;;  %v6533_v41 = vld [vmem:[#allocation57_spill] sm:$0xff] }
 0x50d   : > { %2170 = vmatpush.msra.mxu2 %v6495_v62  ;;  %2190 = vmatpush.msra.mxu3 %v6496_v23  ;;  %v6558_v62 = vld [vmem:[#allocation82_spill] sm:$0xff]  ;;  %v6559_v23 = vld [vmem:[#allocation96_spill] sm:$0xff] }
 0x50e   : > { %2131 = vmatpush.msra.mxu0 %v6497_v36  ;;  %2151 = vmatpush.msra.mxu1 %v6498_v0  ;;  %v6560_v36 = vld [vmem:[#allocation83_spill] sm:$0xff]  ;;  %v6561_v0 = vld [vmem:[#allocation85_spill] sm:$0xff] }
 0x50f   : > { %2171 = vmatpush.msra.mxu2 %v6499_v1  ;;  %2191 = vmatpush.msra.mxu3 %v6500_v2  ;;  %v6562_v1 = vld [vmem:[#allocation86_spill] sm:$0xff]  ;;  %v6563_v2 = vld [vmem:[#allocation100_spill] sm:$0xff] }
 0x510   : > { %2132 = vmatpush.msra.mxu0 %v6501_v3  ;;  %2152 = vmatpush.msra.mxu1 %v6502_v7  ;;  %v6564_v3 = vld [vmem:[#allocation87_spill] sm:$0xff]  ;;  %v6565_v7 = vld [vmem:[#allocation89_spill] sm:$0xff] }
 0x511   : > { %2172 = vmatpush.msra.mxu2 %v6503_v20  ;;  %2192 = vmatpush.msra.mxu3 %v6504_v8  ;;  %v6566_v20 = vld [vmem:[#allocation90_spill] sm:$0xff]  ;;  %v6567_v8 = vld [vmem:[#allocation104_spill] sm:$0xff] }
 0x512   : > { %2133 = vmatpush.msra.mxu0 %v6505_v9  ;;  %2153 = vmatpush.msra.mxu1 %v6506_v27  ;;  %v6568_v9 = vld [vmem:[#allocation91_spill] sm:$0xff]  ;;  %v6569_v27 = vld [vmem:[#allocation93_spill] sm:$0xff] }
 0x513   : > { %2173 = vmatpush.msra.mxu2 %v6507_v35  ;;  %2193 = vmatpush.msra.mxu3 %v6508_v12  ;;  %v6570_v35 = vld [vmem:[#allocation94_spill] sm:$0xff]  ;;  %v6571_v12 = vld [vmem:[#allocation108_spill] sm:$0xff] }
 0x514   : > { %2134 = vmatpush.msra.mxu0 %v6509_v16  ;;  %2154 = vmatpush.msra.mxu1 %v6510_v22  ;;  %v6572_v16 = vld [vmem:[#allocation95_spill] sm:$0xff]  ;;  %v6573_v22 = vld [vmem:[#allocation97_spill] sm:$0xff] }
 0x515   : > { %2174 = vmatpush.msra.mxu2 %v6511_v25  ;;  %2194 = vmatpush.msra.mxu3 %v6512_v56  ;;  %v6574_v25 = vld [vmem:[#allocation98_spill] sm:$0xff]  ;;  %v6575_v56 = vld [vmem:[#allocation109_spill] sm:$0xff] }
 0x516   : > { %2135 = vmatpush.msra.mxu0 %v6513_v14  ;;  %2155 = vmatpush.msra.mxu1 %v6514_v18  ;;  %v6576_v14 = vld [vmem:[#allocation99_spill] sm:$0xff]  ;;  %v6577_v18 = vld [vmem:[#allocation101_spill] sm:$0xff] }
 0x517   : > { %2175 = vmatpush.msra.mxu2 %v6515_v40  ;;  %2195 = vmatpush.msra.mxu3 %v6516_v17  ;;  %v6578_v40 = vld [vmem:[#allocation102_spill] sm:$0xff] }
 0x518   : > { %2136 = vmatpush.msra.mxu0 %v6517_v24  ;;  %2156 = vmatpush.msra.mxu1 %v6518_v13  ;;  %v6579_v17 = vld [vmem:[#allocation110_spill] sm:$0xff]  ;;  %v6580_v24 = vld [vmem:[#allocation103_spill] sm:$0xff]  ;;  %v6581_v13 = vld [vmem:[#allocation105_spill] sm:$0xff] }
 0x519   : > { %2176 = vmatpush.msra.mxu2 %v6519_v15  ;;  %2196 = vmatpush.msra.mxu3 %v6520_v37  ;;  %v6582_v15 = vld [vmem:[#allocation106_spill] sm:$0xff]  ;;  %v6583_v37 = vld [vmem:[#allocation111_spill] sm:$0xff] }
 0x51a   : > { %2201 = vmatpush.msrb.mxu0 %v6521_v19  ;;  %2221 = vmatpush.msrb.mxu1 %v6522_v28  ;;  %v6584_v19 = vld [vmem:[#allocation107_spill] sm:$0xff] }
 0x51b   : > { %2241 = vmatpush.msrb.mxu2 %v6523_v34  ;;  %2261 = vmatpush.msrb.mxu3 %v6524_v26 }
 0x51c   : > { %2202 = vmatpush.msrb.mxu0 %v6525_v10  ;;  %2222 = vmatpush.msrb.mxu1 %v6526_v50 }
 0x51d   : > { %2242 = vmatpush.msrb.mxu2 %v6527_v29  ;;  %2262 = vmatpush.msrb.mxu3 %v6528_v30 }
 0x51e   : > { %2203 = vmatpush.msrb.mxu0 %v6529_v31  ;;  %2223 = vmatpush.msrb.mxu1 %v6530_v32  ;;  %v6585_v31 = vld [vmem:[#allocation112_spill] sm:$0xff] }
 0x51f   : > { %2243 = vmatpush.msrb.mxu2 %v6531_v33  ;;  %2263 = vmatpush.msrb.mxu3 %v6532_v38  ;;  %v6586_v33 = vld [vmem:[#allocation113_spill] sm:$0xff] }
 0x520   : > { %2204 = vmatpush.msrb.mxu0 %v6533_v41  ;;  %2224 = vmatpush.msrb.mxu1 %v6534_v44 }
 0x521   : > { %2244 = vmatpush.msrb.mxu2 %v6535_v45  ;;  %2264 = vmatpush.msrb.mxu3 %v6536_v61 }
 0x522   : > { %2205 = vmatpush.msrb.mxu0 %v6537_v48  ;;  %2225 = vmatpush.msrb.mxu1 %v6538_v5  ;;  %v6587_v5 = vld [vmem:[#allocation114_spill] sm:$0xff] }
 0x523   : > { %2245 = vmatpush.msrb.mxu2 %v6539_v43  ;;  %2265 = vmatpush.msrb.mxu3 %v6540_v53 }
 0x524   : > { %2206 = vmatpush.msrb.mxu0 %v6541_v63  ;;  %2226 = vmatpush.msrb.mxu1 %v6542_v49 }
 0x525   : > { %2246 = vmatpush.msrb.mxu2 %v6543_v54  ;;  %2266 = vmatpush.msrb.mxu3 %v6544_v51 }
 0x526   : > { %2207 = vmatpush.msrb.mxu0 %v6545_v47  ;;  %2227 = vmatpush.msrb.mxu1 %v6546_v55 }
 0x527   : > { %2247 = vmatpush.msrb.mxu2 %v6547_v42  ;;  %2267 = vmatpush.msrb.mxu3 %v6548_v60 }
 0x528   : > { %2208 = vmatpush.msrb.mxu0 %v6549_v52  ;;  %2228 = vmatpush.msrb.mxu1 %v6550_v58  ;;  %v6588_v58 = vld [vmem:[#allocation115_spill] sm:$0xff] }
 0x529   : > { %2248 = vmatpush.msrb.mxu2 %v6551_v39  ;;  %2268 = vmatpush.msrb.mxu3 %v6552_v46 }
 0x52a   : > { %2209 = vmatpush.msrb.mxu0 %v6553_v21  ;;  %2229 = vmatpush.msrb.mxu1 %v6554_v11 }
 0x52b   : > { %2249 = vmatpush.msrb.mxu2 %v6555_v57  ;;  %2269 = vmatpush.msrb.mxu3 %v6556_v6 }
 0x52c   : > { %2210 = vmatpush.msrb.mxu0 %v6557_v4  ;;  %2230 = vmatpush.msrb.mxu1 %v6558_v62 }
 0x52d   : > { %2250 = vmatpush.msrb.mxu2 %v6559_v23  ;;  %2270 = vmatpush.msrb.mxu3 %v6560_v36 }
 0x52e   : > { %2211 = vmatpush.msrb.mxu0 %v6561_v0  ;;  %2231 = vmatpush.msrb.mxu1 %v6562_v1 }
 0x52f   : > { %2251 = vmatpush.msrb.mxu2 %v6563_v2  ;;  %2271 = vmatpush.msrb.mxu3 %v6564_v3 }
 0x530   : > { %2212 = vmatpush.msrb.mxu0 %v6565_v7  ;;  %2232 = vmatpush.msrb.mxu1 %v6566_v20 }
 0x531   : > { %2252 = vmatpush.msrb.mxu2 %v6567_v8  ;;  %2272 = vmatpush.msrb.mxu3 %v6568_v9 }
 0x532   : > { %2213 = vmatpush.msrb.mxu0 %v6569_v27  ;;  %2233 = vmatpush.msrb.mxu1 %v6570_v35 }
 0x533   : > { %2253 = vmatpush.msrb.mxu2 %v6571_v12  ;;  %2273 = vmatpush.msrb.mxu3 %v6572_v16 }
 0x534   : > { %2214 = vmatpush.msrb.mxu0 %v6573_v22  ;;  %2234 = vmatpush.msrb.mxu1 %v6574_v25 }
 0x535   : > { %2254 = vmatpush.msrb.mxu2 %v6575_v56  ;;  %2274 = vmatpush.msrb.mxu3 %v6576_v14 }
 0x536   : > { %2215 = vmatpush.msrb.mxu0 %v6577_v18  ;;  %2235 = vmatpush.msrb.mxu1 %v6578_v40 }
 0x537   : > { %2255 = vmatpush.msrb.mxu2 %v6579_v17  ;;  %2275 = vmatpush.msrb.mxu3 %v6580_v24 }
 0x538   : > { %2216 = vmatpush.msrb.mxu0 %v6581_v13  ;;  %2236 = vmatpush.msrb.mxu1 %v6582_v15 }
 0x539   : > { %2256 = vmatpush.msrb.mxu2 %v6583_v37  ;;  %2276 = vmatpush.msrb.mxu3 %v6584_v19 }
 0x573   : > { %v1909_v28 = vpop.f32.mrf.mxu0  ;;  %v1929_v34 = vpop.f32.mrf.mxu1 }
 0x57a   : > { %v1969_v26 = vpop.f32.mrf.mxu3  ;;  %v1949_v41 = vpop.f32.mrf.mxu2 }
 0x57b   : > { %v1989_v10 = vpop.f32.mrf.mxu0  ;;  %v2009_v50 = vpop.f32.mrf.mxu1 }
 0x57c   : > { %v1990_v29 = vadd.f32 %v1989_v10, %v1909_v28  ;;  %v2010_v30 = vadd.f32 %v2009_v50, %v1929_v34 }
 0x57e   : > { %v2052_v32 = vadd.f32 %v1990_v29, %v6585_v31  ;;  %v2053_v38 = vadd.f32 %v2010_v30, %v6586_v33 }
 0x580   : > { %v2545_v44 = vmul.f32 -1.442695, %v2052_v32  ;;  %v2546_v45 = vmul.f32 -1.442695, %v2053_v38 }
 0x582   : > { %2735 = vpow2.f32 %v2545_v44  ;;  %v2049_v61 = vpop.f32.mrf.mxu3  ;;  %v2029_v47 = vpop.f32.mrf.mxu2 }
 0x583   : > { %2737 = vpow2.f32 %v2546_v45  ;;  %v2050_v48 = vadd.f32 %v2049_v61, %v1969_v26  ;;  %v2030_v55 = vadd.f32 %v2029_v47, %v1949_v41 }
 0x585   : > { %v2055_v43 = vadd.f32 %v2050_v48, %v6587_v5  ;;  %v2054_v39 = vadd.f32 %v2030_v55, %v6588_v58 }
 0x587   : > { %v2547_v53 = vmul.f32 -1.442695, %v2055_v43 }
 0x588   : > { %v2736_v63 = vpop.eup %2735 }
 0x589   : > { %v2738_v49 = vpop.eup %2737  ;;  %v2059_v54 = vadd.f32 1.0, %v2736_v63  ;;  %2739 = vpow2.f32 %v2547_v53 }
 0x58a   : > { %v2078_v51 = vadd.f32 1.0, %v2738_v49 }
 0x58b   : > { %2741 = vrcp.f32 %v2059_v54  ;;  %v2071_v4 = vand.u32 2147483648, %v2059_v54  ;;  %v2069_v36 = vand.u32 2147483647, %v2059_v54  ;;  %vm2065_vm10 = vweird.f32 %v2059_v54 }
 0x58c   : > { %2743 = vrcp.f32 %v2078_v51  ;;  %v2090_v62 = vand.u32 2147483648, %v2078_v51  ;;  %v2088_v1 = vand.u32 2147483647, %v2078_v51  ;;  %vm2084_vm11 = vweird.f32 %v2078_v51 }
 0x58d   : > { %v2072_v7 = vor.u32 1.1754944e-38, %v2071_v4  ;;  %vm2070_vm14 = vcmp.eq.f32.partialorder %v2069_v36, 8.507059e+37 }
 0x58e   : > { %v2091_v9 = vor.u32 1.1754944e-38, %v2090_v62  ;;  %vm2089_vm15 = vcmp.eq.f32.partialorder %v2088_v1, 8.507059e+37 }
 0x58f   : > { %v2740_v42 = vpop.eup %2739 }
 0x590   : > { %v2098_v60 = vadd.f32 1.0, %v2740_v42 }
 0x591   : > { %v2742_v52 = vpop.eup %2741 }
 0x592   : > { %v2744_v46 = vpop.eup %2743  ;;  %v2061_v21 = vmul.f32 %v2742_v52, %v2059_v54  ;;  %2745 = vrcp.f32 %v2098_v60  ;;  %vm2066_vm8 = vweird.f32 %v2742_v52  ;;  %v2110_v24 = vand.u32 2147483648, %v2098_v60 }
 0x593   : > { %v2080_v11 = vmul.f32 %v2744_v46, %v2078_v51  ;;  %2747 = vtanh.f32 %v2054_v39  ;;  %vm2085_vm9 = vweird.f32 %v2744_v46  ;;  %vm2067_vm12 = vmor %vm2065_vm10, %vm2066_vm8  ;;  %vm2104_vm1 = vweird.f32 %v2098_v60 }
 0x594   : > { %v2062_v57 = vsub.f32 1.0, %v2061_v21  ;;  %vm2086_vm13 = vmor %vm2084_vm11, %vm2085_vm9  ;;  %v2108_v13 = vand.u32 2147483647, %v2098_v60  ;;  %v2111_v37 = vor.u32 1.1754944e-38, %v2110_v24 }
 0x595   : > { %v2081_v6 = vsub.f32 1.0, %v2080_v11 }
 0x596   : > { %v2063_v23 = vmul.f32 %v2742_v52, %v2062_v57  ;;  %vm2109_vm3 = vcmp.eq.f32.partialorder %v2108_v13, 8.507059e+37  ;;  %v2348_v13 = vld [vmem:[%s309_s12] sm:$0xff] }
 0x597   : > { %v2082_v0 = vmul.f32 %v2744_v46, %v2081_v6 }
 0x598   : > { %v2746_v2 = vpop.eup %2745  ;;  %v2064_v3 = vadd.f32 %v2742_v52, %v2063_v23 }
 0x599   : > { %v2083_v20 = vadd.f32 %v2744_v46, %v2082_v0  ;;  %v2100_v8 = vmul.f32 %v2746_v2, %v2098_v60  ;;  %v2748_v35 = vpop.eup %2747  ;;  %vm2105_vm0 = vweird.f32 %v2746_v2 }
 0x59a   : > { %v2068_v27 = vsel %vm2067_vm12, %v2742_v52, %v2064_v3  ;;  %vm2106_vm2 = vmor %vm2104_vm1, %vm2105_vm0 }
 0x59b   : > { %v2073_v12 = vsel %vm2070_vm14, %v2072_v7, %v2068_v27  ;;  %v2087_v16 = vsel %vm2086_vm13, %v2744_v46, %v2083_v20  ;;  %v2101_v22 = vsub.f32 1.0, %v2100_v8 }
 0x59c   : > { %v2092_v25 = vsel %vm2089_vm15, %v2091_v9, %v2087_v16  ;;  %v2115_v56 = vmul.f32 %v2748_v35, %v2073_v12 }
 0x59d   : > { %v2114_v14 = vmul.f32 %v2092_v25, %v5208_v59  ;;  %v2102_v18 = vmul.f32 %v2746_v2, %v2101_v22  ;;  %v2548_v59 = vld [vmem:[%s3477_s1 + $0x38] sm:$0xff] }
 0x59f   : > { %v5345_v40 = vadd.f32 %v2115_v56, %v2114_v14  ;;  %v2103_v17 = vadd.f32 %v2746_v2, %v2102_v18 }
 0x5a1   : > { %2749 = vtanh.f32 %v5345_v40  ;;  %v2107_v15 = vsel %vm2106_vm2, %v2746_v2, %v2103_v17 }
 0x5a2   : > { %v2112_v28 = vsel %vm2109_vm3, %v2111_v37, %v2107_v15  ;;  %v2349_v15 = vld [vmem:[%s319_s26] sm:$0xff] }
 0x5a7   : > { %v2750_v19 = vpop.eup %2749 }
 0x5a8   : > { %v2118_v34 = vmul.f32 %v2750_v19, %v2112_v28  ;;  %v2350_v28 = vmul.f32 %v2349_v15, %v2348_v13 }
 0x5aa   : > { %2137 = vmatmul.f32.vlgmr.msra.gmra.mxu0 %v2118_v34  ;;  %2157 = vmatmul.f32.vlgmr.msra.gmra.mxu1 %v2118_v34 }
 0x5ab   : > { %2177 = vmatmul.f32.vlgmr.msra.gmra.mxu2 %v2118_v34  ;;  %2197 = vmatmul.f32.vlgmr.msra.gmra.mxu3 %v2118_v34 }
 0x5b2   : > { %2217 = vmatmul.f32.vlgmr.msrb.gmra.mxu0 %v2548_v59  ;;  %2237 = vmatmul.f32.vlgmr.msrb.gmra.mxu1 %v2548_v59 }
 0x5b3   : > { %2257 = vmatmul.f32.vlgmr.msrb.gmra.mxu2 %v2548_v59  ;;  %2277 = vmatmul.f32.vlgmr.msrb.gmra.mxu3 %v2548_v59 }
 0x627   : > { %v2138_v26 = vpop.f32.mrf.mxu0  ;;  %v2158_v10 = vpop.f32.mrf.mxu1 }
 0x62e   : > { %v2198_v50 = vpop.f32.mrf.mxu3  ;;  %v2178_v45 = vpop.f32.mrf.mxu2 }
 0x62f   : > { %v2218_v29 = vpop.f32.mrf.mxu0  ;;  %v2238_v30 = vpop.f32.mrf.mxu1 }
 0x630   : > { %v2219_v32 = vadd.f32 %v2218_v29, %v2138_v26  ;;  %v2239_v38 = vadd.f32 %v2238_v30, %v2158_v10 }
 0x632   : > { %v2281_v41 = vadd.f32 %v2219_v32, %v6585_v31  ;;  %v2282_v44 = vadd.f32 %v2239_v38, %v6586_v33 }
 0x634   : > { %v2549_v61 = vmul.f32 -1.442695, %v2281_v41  ;;  %v2550_v48 = vmul.f32 -1.442695, %v2282_v44 }
 0x636   : > { %2751 = vpow2.f32 %v2549_v61  ;;  %v2278_v43 = vpop.f32.mrf.mxu3  ;;  %v2258_v42 = vpop.f32.mrf.mxu2 }
 0x637   : > { %2753 = vpow2.f32 %v2550_v48  ;;  %v2279_v53 = vadd.f32 %v2278_v43, %v2198_v50  ;;  %v2259_v31 = vadd.f32 %v2258_v42, %v2178_v45 }
 0x639   : > { %v2284_v63 = vadd.f32 %v2279_v53, %v6587_v5  ;;  %v2283_v39 = vadd.f32 %v2259_v31, %v6588_v58 }
 0x63b   : > { %v2551_v49 = vmul.f32 -1.442695, %v2284_v63 }
 0x63c   : > { %v2752_v54 = vpop.eup %2751 }
 0x63d   : > { %v2754_v51 = vpop.eup %2753  ;;  %v2288_v47 = vadd.f32 1.0, %v2752_v54  ;;  %2755 = vpow2.f32 %v2551_v49 }
 0x63e   : > { %v2307_v55 = vadd.f32 1.0, %v2754_v51 }
 0x63f   : > { %2757 = vrcp.f32 %v2288_v47  ;;  %v2300_v6 = vand.u32 2147483648, %v2288_v47  ;;  %v2298_v62 = vand.u32 2147483647, %v2288_v47  ;;  %vm2294_vm6 = vweird.f32 %v2288_v47 }
 0x640   : > { %2759 = vrcp.f32 %v2307_v55  ;;  %v2319_v23 = vand.u32 2147483648, %v2307_v55  ;;  %v2317_v0 = vand.u32 2147483647, %v2307_v55  ;;  %vm2313_vm7 = vweird.f32 %v2307_v55 }
 0x641   : > { %v2301_v58 = vor.u32 1.1754944e-38, %v2300_v6  ;;  %vm2299_vm9 = vcmp.eq.f32.partialorder %v2298_v62, 8.507059e+37 }
 0x642   : > { %v2320_v8 = vor.u32 1.1754944e-38, %v2319_v23  ;;  %vm2318_vm11 = vcmp.eq.f32.partialorder %v2317_v0, 8.507059e+37 }
 0x643   : > { %v2756_v33 = vpop.eup %2755 }
 0x644   : > { %v2327_v60 = vadd.f32 1.0, %v2756_v33 }
 0x645   : > { %v2758_v52 = vpop.eup %2757 }
 0x646   : > { %v2760_v46 = vpop.eup %2759  ;;  %v2290_v21 = vmul.f32 %v2758_v52, %v2288_v47  ;;  %2761 = vrcp.f32 %v2327_v60  ;;  %vm2295_vm4 = vweird.f32 %v2758_v52  ;;  %v2339_v17 = vand.u32 2147483648, %v2327_v60 }
 0x647   : > { %v2309_v11 = vmul.f32 %v2760_v46, %v2307_v55  ;;  %2763 = vtanh.f32 %v2283_v39  ;;  %vm2314_vm5 = vweird.f32 %v2760_v46  ;;  %vm2296_vm8 = vmor %vm2294_vm6, %vm2295_vm4  ;;  %vm2333_vm13 = vweird.f32 %v2327_v60 }
 0x648   : > { %v2291_v5 = vsub.f32 1.0, %v2290_v21  ;;  %vm2315_vm10 = vmor %vm2313_vm7, %vm2314_vm5  ;;  %v2337_v24 = vand.u32 2147483647, %v2327_v60  ;;  %v2340_v19 = vor.u32 1.1754944e-38, %v2339_v17 }
 0x649   : > { %v2310_v57 = vsub.f32 1.0, %v2309_v11 }
 0x64a   : > { %v2292_v4 = vmul.f32 %v2758_v52, %v2291_v5  ;;  %vm2338_vm15 = vcmp.eq.f32.partialorder %v2337_v24, 8.507059e+37 }
 0x64b   : > { %v2311_v36 = vmul.f32 %v2760_v46, %v2310_v57 }
 0x64c   : > { %v2762_v1 = vpop.eup %2761  ;;  %v2293_v2 = vadd.f32 %v2758_v52, %v2292_v4 }
 0x64d   : > { %v2312_v3 = vadd.f32 %v2760_v46, %v2311_v36  ;;  %v2329_v7 = vmul.f32 %v2762_v1, %v2327_v60  ;;  %v2764_v9 = vpop.eup %2763  ;;  %vm2334_vm12 = vweird.f32 %v2762_v1 }
 0x64e   : > { %v2297_v20 = vsel %vm2296_vm8, %v2758_v52, %v2293_v2  ;;  %vm2335_vm14 = vmor %vm2333_vm13, %vm2334_vm12 }
 0x64f   : > { %v2302_v27 = vsel %vm2299_vm9, %v2301_v58, %v2297_v20  ;;  %v2316_v35 = vsel %vm2315_vm10, %v2760_v46, %v2312_v3  ;;  %v2330_v12 = vsub.f32 1.0, %v2329_v7 }
 0x650   : > { %v2344_v16 = vmul.f32 %v2764_v9, %v2302_v27  ;;  %v2321_v22 = vsel %vm2318_vm11, %v2320_v8, %v2316_v35 }
 0x651   : > { %v2331_v25 = vmul.f32 %v2762_v1, %v2330_v12  ;;  %v2343_v56 = vmul.f32 %v2321_v22, %v5345_v40 }
 0x653   : > { %v2345_v14 = vadd.f32 %v2344_v16, %v2343_v56  ;;  %v2332_v18 = vadd.f32 %v2762_v1, %v2331_v25 }
 0x655   : > { %2765 = vtanh.f32 %v2345_v14  ;;  %v2336_v37 = vsel %vm2335_vm14, %v2762_v1, %v2332_v18 }
 0x656   : > { %v2341_v34 = vsel %vm2338_vm15, %v2340_v19, %v2336_v37 }
 0x65b   : > { %v2766_v40 = vpop.eup %2765 }
 0x65c   : > { %v2347_v59 = vmul.f32 %v2766_v40, %v2341_v34 }
 0x65e   : > { %v2351_v26 = vmul.f32 %v2350_v28, %v2347_v59 }
 0x660   : > { %2352 = vadd.xlane.f32.xlu0 %v2351_v26 }
 0x6d3   : > { %v2353_v10 = vpop.xlane.xlu0 %2352 }
 0x6d4   : > { %2354 = vst [vmem:[%s378_s15] sm:$0xff] %v2353_v10 }
 0x6d5   : > { %3200 = shalt.err (!%p3197_p9)
}
 0x6d6   : > { %2570 = dma.vmem_to_hbm [thread:$0]  (%p3360_p13), %s2369_s13, 128, %s2371_s9, %s2356_s21  }
 0x6d7 PF: > { %s6589_s11 = sld [smem:[#allocation16_spill]]  ;;  %p2598_p5 = scmp.ge.s32.totalorder %s3247_s24, 2 }
 0x6d9   : > { %p2590_p10 = pnand %p2598_p5, %p3368_p4 }
 0x6db   : > { %p2591_p11 = pneg %p2590_p10 }
 0x6dd   : > { %s2382_s29 = sand.u32 1, %s6589_s11  }
 0x6de   : > { %s2383_s26 = scalar_lea.sflag [#allocation4], %s2382_s29 }
 0x6df   : > { %3230 = dma.done.wait (%p2591_p11), %s2383_s26, 128  }
 0x6e0   : > { %3232 = vsyncadd (%p2591_p11), %s2383_s26, 4294967168  ;;  %s6591_s24 = sld [smem:[#allocation18_spill]]  ;;  %s6594_s21 = smov %s3239_s22 }
 0x6e1   : > { %s6592_s23 = sld [smem:[#allocation17_spill]] }
 0x6e2   : > { %s6593_s1 = sld [smem:[#allocation19_spill]] }
 0x6e6   : > { %p23_p3 = scmp.ge.s32.totalorder %s6591_s24, 5  }
 0x6e7   : > { %s6595_s22 = smov %s6592_s23 }
 0x6e8   : > { %s6596_s23 = smov %s6593_s1  ;;  %25 = sbr.rel (!%p23_p3) target bundleno = 11 (0xb), region = 128 }
 0x6ed   :  { %2389 = vsyncpa [#allocation3], 1 }
 0x6ee   :  { %2391 = vsyncpa [#allocation3 + $0x1], 1 }
 0x6ef   :  { %2392 = vsyncpa [#allocation6], 1 }
 0x6f0   :  { %2394 = vsyncpa [#allocation6 + $0x1], 1 }
 0x6f1   :  { %2395 = vsyncpa [#allocation9], 1 }
 0x6f2   :  { %2396 = vsyncpa [#allocation4], 1 }
 0x6f3   :  { %2398 = vsyncpa [#allocation4 + $0x1], 1 }

</bundles_post_ra>
